<compile_context>
chip_gen: v5e
topology: v5e:2x2
jax: 0.10.0
libtpu: 0.0.40
codegen_flags: <defaults>
</compile_context>

<pallas_src>
import numpy as np

import jax
import jax.numpy as jnp
from jax.experimental import pallas as pl
from jax.experimental.pallas import tpu as pltpu  # noqa: F401  (TPU backend assumed)

EPS = 1e-5        # PyTorch BatchNorm2d default eps
MXU_BF16 = True   # bf16 MXU operands (v6e/v7x native); f32 accumulation kept


# ---------------------------------------------------------------------------
# In-kernel helpers
# ---------------------------------------------------------------------------
def _mxu_dot(a, b):
    """Real matmuls: bf16 operands (optional), f32 accumulation on the MXU."""
    if MXU_BF16:
        a = a.astype(jnp.bfloat16)
        b = b.astype(jnp.bfloat16)
    return jnp.dot(a, b, preferred_element_type=jnp.float32)


def _f32_dot(a, b):
    """Exact f32 matmul — used for the 0/1 row-selection (gather) matrices."""
    return jnp.dot(a, b, preferred_element_type=jnp.float32)


def _bn(x, gamma, beta):
    """Training-mode BatchNorm over rows (rows = N*H*W), biased variance."""
    mean = jnp.mean(x, axis=0, keepdims=True)
    var = jnp.mean(jnp.square(x - mean), axis=0, keepdims=True)
    return (x - mean) * jax.lax.rsqrt(var + EPS) * gamma + beta


# ---------------------------------------------------------------------------
# The single fused kernel
# ---------------------------------------------------------------------------
def _fused_forward_kernel(
    # conv1: im2col patches (Rc, Kp) + flattened weight (Kp, 64) + bias (1, 64)
    patches_ref, w1_ref, b1_ref,
    # BatchNorm affine params, each (1, C)
    g64_ref, be64_ref, g128_ref, be128_ref, g256_ref, be256_ref,
    # constant selection matrices: maxpool gather (9,Rp,Rc),
    # 3x3-conv shifts (9,Rp,Rp), avg-pool (N,Rp)
    poolg_ref, shift_ref, avg_ref,
    # 3x3 conv weights (9, Cin, Cout) + biases (1, Cout)
    w21_ref, b21_ref, w31_ref, b31_ref, w41_ref, b41_ref,
    # fully-connected head
    fw1_ref, fb1_ref, fw2_ref, fb2_ref, fw3_ref, fb3_ref,
    # output (N, 1)
    out_ref,
):
    g64 = g64_ref[...]
    be64 = be64_ref[...]

    # ---- conv1 -> ReLU -> bn64  (rows = N*Hc*Wc) ---------------------------
    a = _mxu_dot(patches_ref[...], w1_ref[...]) + b1_ref[...]
    a = _bn(jnp.maximum(a, 0.0), g64, be64)

    # ---- maxpool(3,2) -> ReLU -> bn64  (rows = N*Hp*Wp) --------------------
    # Each poolg[t] row selects exactly one input row, so the elementwise max
    # over the 9 gathered copies == the spatial 3x3/stride-2 max-pool.
    p = _f32_dot(poolg_ref[0], a)
    for t in range(1, 9):
        p = jnp.maximum(p, _f32_dot(poolg_ref[t], a))
    p = _bn(jnp.maximum(p, 0.0), g64, be64)

    # ---- 3x3 / stride 1 / pad 1 convs on the Hp x Wp grid ------------------
    # out = sum_t (S_t @ X) @ W_t : S_t shifts rows (zero-padded borders).
    def conv3x3(x, w_ref, b_row):
        acc = None
        for t in range(9):
            gathered = _f32_dot(shift_ref[t], x)
            y = _mxu_dot(gathered, w_ref[t])
            acc = y if acc is None else acc + y
        return acc + b_row

    a = _bn(jnp.maximum(conv3x3(p, w21_ref, b21_ref[...]), 0.0), g64, be64)
    a = _bn(jnp.maximum(conv3x3(a, w31_ref, b31_ref[...]), 0.0),
            g128_ref[...], be128_ref[...])
    a = _bn(jnp.maximum(conv3x3(a, w41_ref, b41_ref[...]), 0.0),
            g256_ref[...], be256_ref[...])

    # ---- adaptive avg-pool to (1,1) + fc1/fc2/fc3 --------------------------
    h = _f32_dot(avg_ref[...], a)                                    # (N, 256)
    h = jnp.maximum(_mxu_dot(h, fw1_ref[...]) + fb1_ref[...], 0.0)   # fc1+relu
    h = jnp.maximum(_mxu_dot(h, fw2_ref[...]) + fb2_ref[...], 0.0)   # fc2+relu
    out_ref[...] = (_f32_dot(h, fw3_ref[...]) + fb3_ref[...]).astype(out_ref.dtype)


# ---------------------------------------------------------------------------
# Wrapper-side helpers (pure XLA; run once on tiny arrays before the kernel)
# ---------------------------------------------------------------------------
def _im2col(x_nhwc, kh, kw, stride, pad):
    N, H, W, C = x_nhwc.shape
    xp = jnp.pad(x_nhwc, ((0, 0), (pad, pad), (pad, pad), (0, 0)))
    Ho = (H + 2 * pad - kh) // stride + 1
    Wo = (W + 2 * pad - kw) // stride + 1
    taps = []
    for i in range(kh):
        for j in range(kw):
            taps.append(xp[:, i:i + stride * (Ho - 1) + 1:stride,
                              j:j + stride * (Wo - 1) + 1:stride, :])
    p = jnp.stack(taps, axis=3)                    # (N, Ho, Wo, kh*kw, C)
    return p.reshape(N * Ho * Wo, kh * kw * C), Ho, Wo


def _pool_shift_avg_constants(N, Hc, Wc, Hp, Wp):
    """0/1 row-selection matrices for maxpool(3,2), 3x3/pad-1 conv, avg-pool."""
    rows_c = N * Hc * Wc
    rows_p = N * Hp * Wp
    G = np.zeros((9, rows_p, rows_c), np.float32)
    S = np.zeros((9, rows_p, rows_p), np.float32)
    A = np.zeros((N, rows_p), np.float32)
    for n in range(N):
        for oh in range(Hp):
            for ow in range(Wp):
                r_out = n * Hp * Wp + oh * Wp + ow
                # maxpool(kernel=3, stride=2, pad=0) taps
                for i in range(3):
                    for j in range(3):
                        r_in = n * Hc * Wc + (2 * oh + i) * Wc + (2 * ow + j)
                        G[i * 3 + j, r_out, r_in] = 1.0
                # 3x3 / pad=1 conv taps on the pooled Hp x Wp grid
                for di in (-1, 0, 1):
                    for dj in (-1, 0, 1):
                        ih, iw = oh + di, ow + dj
                        if 0 <= ih < Hp and 0 <= iw < Wp:
                            t = (di + 1) * 3 + (dj + 1)
                            S[t, r_out, n * Hp * Wp + ih * Wp + iw] = 1.0
                A[n, r_out] = 1.0 / float(Hp * Wp)
    return jnp.asarray(G), jnp.asarray(S), jnp.asarray(A)


# ---------------------------------------------------------------------------
# Forward pass (mirrors MyModel_shallow.forward)
# ---------------------------------------------------------------------------
def forward(x_nchw, p):
    N, C, H, W = x_nchw.shape

    # XLA-side prep on the tiny input; fused ahead of the single Pallas call.
    x = jnp.transpose(x_nchw, (0, 2, 3, 1))                         # NCHW->NHWC
    Cp = max(8, ((C + 7) // 8) * 8)                                 # align cin
    x = jnp.pad(x, ((0, 0), (0, 0), (0, 0), (0, Cp - C)))
    patches, Hc, Wc = _im2col(x, 5, 5, stride=2, pad=1)             # (N*Hc*Wc, 25*Cp)

    K = 25 * Cp
    Kp = ((K + 127) // 128) * 128                                   # lane-dense K
    patches = jnp.pad(patches, ((0, 0), (0, Kp - K)))

    w1 = jnp.pad(p["conv1_w"], ((0, 0), (0, 0), (0, Cp - C), (0, 0)))
    w1 = jnp.pad(w1.reshape(K, -1), ((0, Kp - K), (0, 0)))          # (Kp, 64)

    Hp, Wp = (Hc - 3) // 2 + 1, (Wc - 3) // 2 + 1                   # maxpool(3,2)
    G, S, A = _pool_shift_avg_constants(N, Hc, Wc, Hp, Wp)

    row = lambda v: v.reshape(1, -1)

    return pl.pallas_call(
        _fused_forward_kernel,
        out_shape=jax.ShapeDtypeStruct((N, 1), jnp.float32),
        # No grid / BlockSpecs: every operand is a whole-array VMEM-resident
        # block (total footprint ~2.5 MiB << VMEM on v5e/v6e/v7x).
    )(
        patches, w1, row(p["conv1_b"]),
        row(p["bn64_g"]), row(p["bn64_b"]),
        row(p["bn128_g"]), row(p["bn128_b"]),
        row(p["bn256_g"]), row(p["bn256_b"]),
        G, S, A,
        p["conv21_w"], row(p["conv21_b"]),
        p["conv31_w"], row(p["conv31_b"]),
        p["conv41_w"], row(p["conv41_b"]),
        p["fc1_w"], row(p["fc1_b"]),
        p["fc2_w"], row(p["fc2_b"]),
        p["fc3_w"], row(p["fc3_b"]),
    )


# ---------------------------------------------------------------------------
# Parameters (deterministic synthetic init)
# ---------------------------------------------------------------------------
def init_params(channels, key):
    keys = iter(jax.random.split(key, 32))

    def conv5x5(cin, cout):
        w = jax.random.normal(next(keys), (5, 5, cin, cout), jnp.float32)
        w = w / jnp.sqrt(float(25 * cin))
        b = 0.01 * jax.random.normal(next(keys), (cout,), jnp.float32)
        return w, b

    def conv3x3(cin, cout):
        # tap-major layout (9, cin, cout); tap t = (di+1)*3 + (dj+1)
        w = jax.random.normal(next(keys), (9, cin, cout), jnp.float32)
        w = w / jnp.sqrt(float(9 * cin))
        b = 0.01 * jax.random.normal(next(keys), (cout,), jnp.float32)
        return w, b

    def linear(cin, cout):
        w = jax.random.normal(next(keys), (cin, cout), jnp.float32) / jnp.sqrt(float(cin))
        b = 0.01 * jax.random.normal(next(keys), (cout,), jnp.float32)
        return w, b

    def bn(c):
        g = 1.0 + 0.1 * jax.random.normal(next(keys), (c,), jnp.float32)
        b = 0.1 * jax.random.normal(next(keys), (c,), jnp.float32)
        return g, b

    p = {}
    p["conv1_w"], p["conv1_b"] = conv5x5(channels, 64)
    p["conv21_w"], p["conv21_b"] = conv3x3(64, 64)
    p["conv31_w"], p["conv31_b"] = conv3x3(64, 128)
    p["conv41_w"], p["conv41_b"] = conv3x3(128, 256)
    p["bn64_g"], p["bn64_b"] = bn(64)
    p["bn128_g"], p["bn128_b"] = bn(128)
    p["bn256_g"], p["bn256_b"] = bn(256)
    p["fc1_w"], p["fc1_b"] = linear(256, 128)
    p["fc2_w"], p["fc2_b"] = linear(128, 64)
    p["fc3_w"], p["fc3_b"] = linear(64, 1)
    return p


if __name__ == "__main__":
    key = jax.random.PRNGKey(0)
    k_x, k_p = jax.random.split(key)

    batch, channels, spatial = 2, 4, 16
    x = jax.random.normal(k_x, (batch, channels, spatial, spatial), jnp.float32)
    params = init_params(channels, k_p)

    out = jax.jit(forward)(x, params)
    out = jax.block_until_ready(out)
    assert out.shape == (batch, 1), out.shape
    assert bool(jnp.all(jnp.isfinite(out))), "non-finite output"
    print("KERNEL_OK")
</pallas_src>

<mosaic_0001>
module attributes {stable_mosaic.version = 11 : i64} {
  func.func @_fused_forward_kernel(%arg0: memref<98x256xf32, #tpu.memory_space<vmem>>, %arg1: memref<256x64xf32, #tpu.memory_space<vmem>>, %arg2: memref<1x64xf32, #tpu.memory_space<vmem>>, %arg3: memref<1x64xf32, #tpu.memory_space<vmem>>, %arg4: memref<1x64xf32, #tpu.memory_space<vmem>>, %arg5: memref<1x128xf32, #tpu.memory_space<vmem>>, %arg6: memref<1x128xf32, #tpu.memory_space<vmem>>, %arg7: memref<1x256xf32, #tpu.memory_space<vmem>>, %arg8: memref<1x256xf32, #tpu.memory_space<vmem>>, %arg9: memref<9x18x98xf32, #tpu.memory_space<vmem>>, %arg10: memref<9x18x18xf32, #tpu.memory_space<vmem>>, %arg11: memref<2x18xf32, #tpu.memory_space<vmem>>, %arg12: memref<9x64x64xf32, #tpu.memory_space<vmem>>, %arg13: memref<1x64xf32, #tpu.memory_space<vmem>>, %arg14: memref<9x64x128xf32, #tpu.memory_space<vmem>>, %arg15: memref<1x128xf32, #tpu.memory_space<vmem>>, %arg16: memref<9x128x256xf32, #tpu.memory_space<vmem>>, %arg17: memref<1x256xf32, #tpu.memory_space<vmem>>, %arg18: memref<256x128xf32, #tpu.memory_space<vmem>>, %arg19: memref<1x128xf32, #tpu.memory_space<vmem>>, %arg20: memref<128x64xf32, #tpu.memory_space<vmem>>, %arg21: memref<1x64xf32, #tpu.memory_space<vmem>>, %arg22: memref<64x1xf32, #tpu.memory_space<vmem>>, %arg23: memref<1x1xf32, #tpu.memory_space<vmem>>, %arg24: memref<2x1xf32, #tpu.memory_space<vmem>>) attributes {dimension_semantics = [], scalar_prefetch = 0 : i64, scratch_operands = 0 : i64, tpu.core_type = #tpu.core_type<tc>} {
    %c0 = arith.constant 0 : index
    %c0_0 = arith.constant 0 : index
    %0 = vector.load %arg3[%c0, %c0_0] : memref<1x64xf32, #tpu.memory_space<vmem>>, vector<1x64xf32>
    %c0_1 = arith.constant 0 : index
    %c0_2 = arith.constant 0 : index
    %1 = vector.load %arg4[%c0_1, %c0_2] : memref<1x64xf32, #tpu.memory_space<vmem>>, vector<1x64xf32>
    %c0_3 = arith.constant 0 : index
    %c0_4 = arith.constant 0 : index
    %2 = vector.load %arg0[%c0_3, %c0_4] : memref<98x256xf32, #tpu.memory_space<vmem>>, vector<98x256xf32>
    %c0_5 = arith.constant 0 : index
    %c0_6 = arith.constant 0 : index
    %3 = vector.load %arg1[%c0_5, %c0_6] : memref<256x64xf32, #tpu.memory_space<vmem>>, vector<256x64xf32>
    %4 = arith.truncf %2 : vector<98x256xf32> to vector<98x256xbf16>
    %5 = arith.truncf %3 : vector<256x64xf32> to vector<256x64xbf16>
    %cst = arith.constant dense<0.000000e+00> : vector<98x64xf32>
    %6 = tpu.matmul %4, %5, %cst {dimension_numbers = #tpu.dot_dimension_numbers<[1], [0], [0], [1], [0, 0, 1, 1], [], []>} : vector<98x256xbf16>, vector<256x64xbf16>, vector<98x64xf32> -> vector<98x64xf32>
    %c0_7 = arith.constant 0 : index
    %c0_8 = arith.constant 0 : index
    %7 = vector.load %arg2[%c0_7, %c0_8] : memref<1x64xf32, #tpu.memory_space<vmem>>, vector<1x64xf32>
    %8 = vector.broadcast %7 : vector<1x64xf32> to vector<98x64xf32>
    %9 = arith.addf %6, %8 : vector<98x64xf32>
    %cst_9 = arith.constant 0.000000e+00 : f32
    %10 = vector.broadcast %cst_9 : f32 to vector<98x64xf32>
    %11 = arith.maximumf %9, %10 : vector<98x64xf32>
    %cst_10 = arith.constant dense<0.000000e+00> : vector<64xf32>
    %12 = vector.multi_reduction <add>, %11, %cst_10 [0] : vector<98x64xf32> to vector<64xf32>
    %13 = vector.shape_cast %12 : vector<64xf32> to vector<1x64xf32>
    %cst_11 = arith.constant 9.800000e+01 : f32
    %14 = vector.broadcast %cst_11 : f32 to vector<1x64xf32>
    %15 = arith.divf %13, %14 : vector<1x64xf32>
    %16 = vector.broadcast %15 : vector<1x64xf32> to vector<98x64xf32>
    %17 = arith.subf %11, %16 : vector<98x64xf32>
    %18 = arith.mulf %17, %17 : vector<98x64xf32>
    %cst_12 = arith.constant dense<0.000000e+00> : vector<64xf32>
    %19 = vector.multi_reduction <add>, %18, %cst_12 [0] : vector<98x64xf32> to vector<64xf32>
    %20 = vector.shape_cast %19 : vector<64xf32> to vector<1x64xf32>
    %cst_13 = arith.constant 9.800000e+01 : f32
    %21 = vector.broadcast %cst_13 : f32 to vector<1x64xf32>
    %22 = arith.divf %20, %21 : vector<1x64xf32>
    %23 = vector.broadcast %15 : vector<1x64xf32> to vector<98x64xf32>
    %24 = arith.subf %11, %23 : vector<98x64xf32>
    %cst_14 = arith.constant 9.99999974E-6 : f32
    %25 = vector.broadcast %cst_14 : f32 to vector<1x64xf32>
    %26 = arith.addf %22, %25 : vector<1x64xf32>
    %27 = math.rsqrt %26 : vector<1x64xf32>
    %28 = vector.broadcast %27 : vector<1x64xf32> to vector<98x64xf32>
    %29 = arith.mulf %24, %28 : vector<98x64xf32>
    %30 = vector.broadcast %0 : vector<1x64xf32> to vector<98x64xf32>
    %31 = arith.mulf %29, %30 : vector<98x64xf32>
    %32 = vector.broadcast %1 : vector<1x64xf32> to vector<98x64xf32>
    %33 = arith.addf %31, %32 : vector<98x64xf32>
    %c0_15 = arith.constant 0 : index
    %c0_16 = arith.constant 0 : index
    %c0_17 = arith.constant 0 : index
    %34 = vector.load %arg9[%c0_15, %c0_16, %c0_17] : memref<9x18x98xf32, #tpu.memory_space<vmem>>, vector<1x18x98xf32>
    %35 = vector.shape_cast %34 : vector<1x18x98xf32> to vector<18x98xf32>
    %cst_18 = arith.constant dense<0.000000e+00> : vector<18x64xf32>
    %36 = tpu.matmul %35, %33, %cst_18 {dimension_numbers = #tpu.dot_dimension_numbers<[1], [0], [0], [1], [0, 0, 1, 1], [], []>} : vector<18x98xf32>, vector<98x64xf32>, vector<18x64xf32> -> vector<18x64xf32>
    %c1 = arith.constant 1 : index
    %c0_19 = arith.constant 0 : index
    %c0_20 = arith.constant 0 : index
    %37 = vector.load %arg9[%c1, %c0_19, %c0_20] : memref<9x18x98xf32, #tpu.memory_space<vmem>>, vector<1x18x98xf32>
    %38 = vector.shape_cast %37 : vector<1x18x98xf32> to vector<18x98xf32>
    %cst_21 = arith.constant dense<0.000000e+00> : vector<18x64xf32>
    %39 = tpu.matmul %38, %33, %cst_21 {dimension_numbers = #tpu.dot_dimension_numbers<[1], [0], [0], [1], [0, 0, 1, 1], [], []>} : vector<18x98xf32>, vector<98x64xf32>, vector<18x64xf32> -> vector<18x64xf32>
    %40 = arith.maximumf %36, %39 : vector<18x64xf32>
    %c2 = arith.constant 2 : index
    %c0_22 = arith.constant 0 : index
    %c0_23 = arith.constant 0 : index
    %41 = vector.load %arg9[%c2, %c0_22, %c0_23] : memref<9x18x98xf32, #tpu.memory_space<vmem>>, vector<1x18x98xf32>
    %42 = vector.shape_cast %41 : vector<1x18x98xf32> to vector<18x98xf32>
    %cst_24 = arith.constant dense<0.000000e+00> : vector<18x64xf32>
    %43 = tpu.matmul %42, %33, %cst_24 {dimension_numbers = #tpu.dot_dimension_numbers<[1], [0], [0], [1], [0, 0, 1, 1], [], []>} : vector<18x98xf32>, vector<98x64xf32>, vector<18x64xf32> -> vector<18x64xf32>
    %44 = arith.maximumf %40, %43 : vector<18x64xf32>
    %c3 = arith.constant 3 : index
    %c0_25 = arith.constant 0 : index
    %c0_26 = arith.constant 0 : index
    %45 = vector.load %arg9[%c3, %c0_25, %c0_26] : memref<9x18x98xf32, #tpu.memory_space<vmem>>, vector<1x18x98xf32>
    %46 = vector.shape_cast %45 : vector<1x18x98xf32> to vector<18x98xf32>
    %cst_27 = arith.constant dense<0.000000e+00> : vector<18x64xf32>
    %47 = tpu.matmul %46, %33, %cst_27 {dimension_numbers = #tpu.dot_dimension_numbers<[1], [0], [0], [1], [0, 0, 1, 1], [], []>} : vector<18x98xf32>, vector<98x64xf32>, vector<18x64xf32> -> vector<18x64xf32>
    %48 = arith.maximumf %44, %47 : vector<18x64xf32>
    %c4 = arith.constant 4 : index
    %c0_28 = arith.constant 0 : index
    %c0_29 = arith.constant 0 : index
    %49 = vector.load %arg9[%c4, %c0_28, %c0_29] : memref<9x18x98xf32, #tpu.memory_space<vmem>>, vector<1x18x98xf32>
    %50 = vector.shape_cast %49 : vector<1x18x98xf32> to vector<18x98xf32>
    %cst_30 = arith.constant dense<0.000000e+00> : vector<18x64xf32>
    %51 = tpu.matmul %50, %33, %cst_30 {dimension_numbers = #tpu.dot_dimension_numbers<[1], [0], [0], [1], [0, 0, 1, 1], [], []>} : vector<18x98xf32>, vector<98x64xf32>, vector<18x64xf32> -> vector<18x64xf32>
    %52 = arith.maximumf %48, %51 : vector<18x64xf32>
    %c5 = arith.constant 5 : index
    %c0_31 = arith.constant 0 : index
    %c0_32 = arith.constant 0 : index
    %53 = vector.load %arg9[%c5, %c0_31, %c0_32] : memref<9x18x98xf32, #tpu.memory_space<vmem>>, vector<1x18x98xf32>
    %54 = vector.shape_cast %53 : vector<1x18x98xf32> to vector<18x98xf32>
    %cst_33 = arith.constant dense<0.000000e+00> : vector<18x64xf32>
    %55 = tpu.matmul %54, %33, %cst_33 {dimension_numbers = #tpu.dot_dimension_numbers<[1], [0], [0], [1], [0, 0, 1, 1], [], []>} : vector<18x98xf32>, vector<98x64xf32>, vector<18x64xf32> -> vector<18x64xf32>
    %56 = arith.maximumf %52, %55 : vector<18x64xf32>
    %c6 = arith.constant 6 : index
    %c0_34 = arith.constant 0 : index
    %c0_35 = arith.constant 0 : index
    %57 = vector.load %arg9[%c6, %c0_34, %c0_35] : memref<9x18x98xf32, #tpu.memory_space<vmem>>, vector<1x18x98xf32>
    %58 = vector.shape_cast %57 : vector<1x18x98xf32> to vector<18x98xf32>
    %cst_36 = arith.constant dense<0.000000e+00> : vector<18x64xf32>
    %59 = tpu.matmul %58, %33, %cst_36 {dimension_numbers = #tpu.dot_dimension_numbers<[1], [0], [0], [1], [0, 0, 1, 1], [], []>} : vector<18x98xf32>, vector<98x64xf32>, vector<18x64xf32> -> vector<18x64xf32>
    %60 = arith.maximumf %56, %59 : vector<18x64xf32>
    %c7 = arith.constant 7 : index
    %c0_37 = arith.constant 0 : index
    %c0_38 = arith.constant 0 : index
    %61 = vector.load %arg9[%c7, %c0_37, %c0_38] : memref<9x18x98xf32, #tpu.memory_space<vmem>>, vector<1x18x98xf32>
    %62 = vector.shape_cast %61 : vector<1x18x98xf32> to vector<18x98xf32>
    %cst_39 = arith.constant dense<0.000000e+00> : vector<18x64xf32>
    %63 = tpu.matmul %62, %33, %cst_39 {dimension_numbers = #tpu.dot_dimension_numbers<[1], [0], [0], [1], [0, 0, 1, 1], [], []>} : vector<18x98xf32>, vector<98x64xf32>, vector<18x64xf32> -> vector<18x64xf32>
    %64 = arith.maximumf %60, %63 : vector<18x64xf32>
    %c8 = arith.constant 8 : index
    %c0_40 = arith.constant 0 : index
    %c0_41 = arith.constant 0 : index
    %65 = vector.load %arg9[%c8, %c0_40, %c0_41] : memref<9x18x98xf32, #tpu.memory_space<vmem>>, vector<1x18x98xf32>
    %66 = vector.shape_cast %65 : vector<1x18x98xf32> to vector<18x98xf32>
    %cst_42 = arith.constant dense<0.000000e+00> : vector<18x64xf32>
    %67 = tpu.matmul %66, %33, %cst_42 {dimension_numbers = #tpu.dot_dimension_numbers<[1], [0], [0], [1], [0, 0, 1, 1], [], []>} : vector<18x98xf32>, vector<98x64xf32>, vector<18x64xf32> -> vector<18x64xf32>
    %68 = arith.maximumf %64, %67 : vector<18x64xf32>
    %cst_43 = arith.constant 0.000000e+00 : f32
    %69 = vector.broadcast %cst_43 : f32 to vector<18x64xf32>
    %70 = arith.maximumf %68, %69 : vector<18x64xf32>
    %cst_44 = arith.constant dense<0.000000e+00> : vector<64xf32>
    %71 = vector.multi_reduction <add>, %70, %cst_44 [0] : vector<18x64xf32> to vector<64xf32>
    %72 = vector.shape_cast %71 : vector<64xf32> to vector<1x64xf32>
    %cst_45 = arith.constant 1.800000e+01 : f32
    %73 = vector.broadcast %cst_45 : f32 to vector<1x64xf32>
    %74 = arith.divf %72, %73 : vector<1x64xf32>
    %75 = vector.broadcast %74 : vector<1x64xf32> to vector<18x64xf32>
    %76 = arith.subf %70, %75 : vector<18x64xf32>
    %77 = arith.mulf %76, %76 : vector<18x64xf32>
    %cst_46 = arith.constant dense<0.000000e+00> : vector<64xf32>
    %78 = vector.multi_reduction <add>, %77, %cst_46 [0] : vector<18x64xf32> to vector<64xf32>
    %79 = vector.shape_cast %78 : vector<64xf32> to vector<1x64xf32>
    %cst_47 = arith.constant 1.800000e+01 : f32
    %80 = vector.broadcast %cst_47 : f32 to vector<1x64xf32>
    %81 = arith.divf %79, %80 : vector<1x64xf32>
    %82 = vector.broadcast %74 : vector<1x64xf32> to vector<18x64xf32>
    %83 = arith.subf %70, %82 : vector<18x64xf32>
    %cst_48 = arith.constant 9.99999974E-6 : f32
    %84 = vector.broadcast %cst_48 : f32 to vector<1x64xf32>
    %85 = arith.addf %81, %84 : vector<1x64xf32>
    %86 = math.rsqrt %85 : vector<1x64xf32>
    %87 = vector.broadcast %86 : vector<1x64xf32> to vector<18x64xf32>
    %88 = arith.mulf %83, %87 : vector<18x64xf32>
    %89 = vector.broadcast %0 : vector<1x64xf32> to vector<18x64xf32>
    %90 = arith.mulf %88, %89 : vector<18x64xf32>
    %91 = vector.broadcast %1 : vector<1x64xf32> to vector<18x64xf32>
    %92 = arith.addf %90, %91 : vector<18x64xf32>
    %c0_49 = arith.constant 0 : index
    %c0_50 = arith.constant 0 : index
    %93 = vector.load %arg13[%c0_49, %c0_50] : memref<1x64xf32, #tpu.memory_space<vmem>>, vector<1x64xf32>
    %c0_51 = arith.constant 0 : index
    %c0_52 = arith.constant 0 : index
    %c0_53 = arith.constant 0 : index
    %94 = vector.load %arg10[%c0_51, %c0_52, %c0_53] : memref<9x18x18xf32, #tpu.memory_space<vmem>>, vector<1x18x18xf32>
    %95 = vector.shape_cast %94 : vector<1x18x18xf32> to vector<18x18xf32>
    %cst_54 = arith.constant dense<0.000000e+00> : vector<18x64xf32>
    %96 = tpu.matmul %95, %92, %cst_54 {dimension_numbers = #tpu.dot_dimension_numbers<[1], [0], [0], [1], [0, 0, 1, 1], [], []>} : vector<18x18xf32>, vector<18x64xf32>, vector<18x64xf32> -> vector<18x64xf32>
    %c0_55 = arith.constant 0 : index
    %c0_56 = arith.constant 0 : index
    %c0_57 = arith.constant 0 : index
    %97 = vector.load %arg12[%c0_55, %c0_56, %c0_57] : memref<9x64x64xf32, #tpu.memory_space<vmem>>, vector<1x64x64xf32>
    %98 = vector.shape_cast %97 : vector<1x64x64xf32> to vector<64x64xf32>
    %99 = arith.truncf %96 : vector<18x64xf32> to vector<18x64xbf16>
    %100 = arith.truncf %98 : vector<64x64xf32> to vector<64x64xbf16>
    %cst_58 = arith.constant dense<0.000000e+00> : vector<18x64xf32>
    %101 = tpu.matmul %99, %100, %cst_58 {dimension_numbers = #tpu.dot_dimension_numbers<[1], [0], [0], [1], [0, 0, 1, 1], [], []>} : vector<18x64xbf16>, vector<64x64xbf16>, vector<18x64xf32> -> vector<18x64xf32>
    %c1_59 = arith.constant 1 : index
    %c0_60 = arith.constant 0 : index
    %c0_61 = arith.constant 0 : index
    %102 = vector.load %arg10[%c1_59, %c0_60, %c0_61] : memref<9x18x18xf32, #tpu.memory_space<vmem>>, vector<1x18x18xf32>
    %103 = vector.shape_cast %102 : vector<1x18x18xf32> to vector<18x18xf32>
    %cst_62 = arith.constant dense<0.000000e+00> : vector<18x64xf32>
    %104 = tpu.matmul %103, %92, %cst_62 {dimension_numbers = #tpu.dot_dimension_numbers<[1], [0], [0], [1], [0, 0, 1, 1], [], []>} : vector<18x18xf32>, vector<18x64xf32>, vector<18x64xf32> -> vector<18x64xf32>
    %c1_63 = arith.constant 1 : index
    %c0_64 = arith.constant 0 : index
    %c0_65 = arith.constant 0 : index
    %105 = vector.load %arg12[%c1_63, %c0_64, %c0_65] : memref<9x64x64xf32, #tpu.memory_space<vmem>>, vector<1x64x64xf32>
    %106 = vector.shape_cast %105 : vector<1x64x64xf32> to vector<64x64xf32>
    %107 = arith.truncf %104 : vector<18x64xf32> to vector<18x64xbf16>
    %108 = arith.truncf %106 : vector<64x64xf32> to vector<64x64xbf16>
    %cst_66 = arith.constant dense<0.000000e+00> : vector<18x64xf32>
    %109 = tpu.matmul %107, %108, %cst_66 {dimension_numbers = #tpu.dot_dimension_numbers<[1], [0], [0], [1], [0, 0, 1, 1], [], []>} : vector<18x64xbf16>, vector<64x64xbf16>, vector<18x64xf32> -> vector<18x64xf32>
    %110 = arith.addf %101, %109 : vector<18x64xf32>
    %c2_67 = arith.constant 2 : index
    %c0_68 = arith.constant 0 : index
    %c0_69 = arith.constant 0 : index
    %111 = vector.load %arg10[%c2_67, %c0_68, %c0_69] : memref<9x18x18xf32, #tpu.memory_space<vmem>>, vector<1x18x18xf32>
    %112 = vector.shape_cast %111 : vector<1x18x18xf32> to vector<18x18xf32>
    %cst_70 = arith.constant dense<0.000000e+00> : vector<18x64xf32>
    %113 = tpu.matmul %112, %92, %cst_70 {dimension_numbers = #tpu.dot_dimension_numbers<[1], [0], [0], [1], [0, 0, 1, 1], [], []>} : vector<18x18xf32>, vector<18x64xf32>, vector<18x64xf32> -> vector<18x64xf32>
    %c2_71 = arith.constant 2 : index
    %c0_72 = arith.constant 0 : index
    %c0_73 = arith.constant 0 : index
    %114 = vector.load %arg12[%c2_71, %c0_72, %c0_73] : memref<9x64x64xf32, #tpu.memory_space<vmem>>, vector<1x64x64xf32>
    %115 = vector.shape_cast %114 : vector<1x64x64xf32> to vector<64x64xf32>
    %116 = arith.truncf %113 : vector<18x64xf32> to vector<18x64xbf16>
    %117 = arith.truncf %115 : vector<64x64xf32> to vector<64x64xbf16>
    %cst_74 = arith.constant dense<0.000000e+00> : vector<18x64xf32>
    %118 = tpu.matmul %116, %117, %cst_74 {dimension_numbers = #tpu.dot_dimension_numbers<[1], [0], [0], [1], [0, 0, 1, 1], [], []>} : vector<18x64xbf16>, vector<64x64xbf16>, vector<18x64xf32> -> vector<18x64xf32>
    %119 = arith.addf %110, %118 : vector<18x64xf32>
    %c3_75 = arith.constant 3 : index
    %c0_76 = arith.constant 0 : index
    %c0_77 = arith.constant 0 : index
    %120 = vector.load %arg10[%c3_75, %c0_76, %c0_77] : memref<9x18x18xf32, #tpu.memory_space<vmem>>, vector<1x18x18xf32>
    %121 = vector.shape_cast %120 : vector<1x18x18xf32> to vector<18x18xf32>
    %cst_78 = arith.constant dense<0.000000e+00> : vector<18x64xf32>
    %122 = tpu.matmul %121, %92, %cst_78 {dimension_numbers = #tpu.dot_dimension_numbers<[1], [0], [0], [1], [0, 0, 1, 1], [], []>} : vector<18x18xf32>, vector<18x64xf32>, vector<18x64xf32> -> vector<18x64xf32>
    %c3_79 = arith.constant 3 : index
    %c0_80 = arith.constant 0 : index
    %c0_81 = arith.constant 0 : index
    %123 = vector.load %arg12[%c3_79, %c0_80, %c0_81] : memref<9x64x64xf32, #tpu.memory_space<vmem>>, vector<1x64x64xf32>
    %124 = vector.shape_cast %123 : vector<1x64x64xf32> to vector<64x64xf32>
    %125 = arith.truncf %122 : vector<18x64xf32> to vector<18x64xbf16>
    %126 = arith.truncf %124 : vector<64x64xf32> to vector<64x64xbf16>
    %cst_82 = arith.constant dense<0.000000e+00> : vector<18x64xf32>
    %127 = tpu.matmul %125, %126, %cst_82 {dimension_numbers = #tpu.dot_dimension_numbers<[1], [0], [0], [1], [0, 0, 1, 1], [], []>} : vector<18x64xbf16>, vector<64x64xbf16>, vector<18x64xf32> -> vector<18x64xf32>
    %128 = arith.addf %119, %127 : vector<18x64xf32>
    %c4_83 = arith.constant 4 : index
    %c0_84 = arith.constant 0 : index
    %c0_85 = arith.constant 0 : index
    %129 = vector.load %arg10[%c4_83, %c0_84, %c0_85] : memref<9x18x18xf32, #tpu.memory_space<vmem>>, vector<1x18x18xf32>
    %130 = vector.shape_cast %129 : vector<1x18x18xf32> to vector<18x18xf32>
    %cst_86 = arith.constant dense<0.000000e+00> : vector<18x64xf32>
    %131 = tpu.matmul %130, %92, %cst_86 {dimension_numbers = #tpu.dot_dimension_numbers<[1], [0], [0], [1], [0, 0, 1, 1], [], []>} : vector<18x18xf32>, vector<18x64xf32>, vector<18x64xf32> -> vector<18x64xf32>
    %c4_87 = arith.constant 4 : index
    %c0_88 = arith.constant 0 : index
    %c0_89 = arith.constant 0 : index
    %132 = vector.load %arg12[%c4_87, %c0_88, %c0_89] : memref<9x64x64xf32, #tpu.memory_space<vmem>>, vector<1x64x64xf32>
    %133 = vector.shape_cast %132 : vector<1x64x64xf32> to vector<64x64xf32>
    %134 = arith.truncf %131 : vector<18x64xf32> to vector<18x64xbf16>
    %135 = arith.truncf %133 : vector<64x64xf32> to vector<64x64xbf16>
    %cst_90 = arith.constant dense<0.000000e+00> : vector<18x64xf32>
    %136 = tpu.matmul %134, %135, %cst_90 {dimension_numbers = #tpu.dot_dimension_numbers<[1], [0], [0], [1], [0, 0, 1, 1], [], []>} : vector<18x64xbf16>, vector<64x64xbf16>, vector<18x64xf32> -> vector<18x64xf32>
    %137 = arith.addf %128, %136 : vector<18x64xf32>
    %c5_91 = arith.constant 5 : index
    %c0_92 = arith.constant 0 : index
    %c0_93 = arith.constant 0 : index
    %138 = vector.load %arg10[%c5_91, %c0_92, %c0_93] : memref<9x18x18xf32, #tpu.memory_space<vmem>>, vector<1x18x18xf32>
    %139 = vector.shape_cast %138 : vector<1x18x18xf32> to vector<18x18xf32>
    %cst_94 = arith.constant dense<0.000000e+00> : vector<18x64xf32>
    %140 = tpu.matmul %139, %92, %cst_94 {dimension_numbers = #tpu.dot_dimension_numbers<[1], [0], [0], [1], [0, 0, 1, 1], [], []>} : vector<18x18xf32>, vector<18x64xf32>, vector<18x64xf32> -> vector<18x64xf32>
    %c5_95 = arith.constant 5 : index
    %c0_96 = arith.constant 0 : index
    %c0_97 = arith.constant 0 : index
    %141 = vector.load %arg12[%c5_95, %c0_96, %c0_97] : memref<9x64x64xf32, #tpu.memory_space<vmem>>, vector<1x64x64xf32>
    %142 = vector.shape_cast %141 : vector<1x64x64xf32> to vector<64x64xf32>
    %143 = arith.truncf %140 : vector<18x64xf32> to vector<18x64xbf16>
    %144 = arith.truncf %142 : vector<64x64xf32> to vector<64x64xbf16>
    %cst_98 = arith.constant dense<0.000000e+00> : vector<18x64xf32>
    %145 = tpu.matmul %143, %144, %cst_98 {dimension_numbers = #tpu.dot_dimension_numbers<[1], [0], [0], [1], [0, 0, 1, 1], [], []>} : vector<18x64xbf16>, vector<64x64xbf16>, vector<18x64xf32> -> vector<18x64xf32>
    %146 = arith.addf %137, %145 : vector<18x64xf32>
    %c6_99 = arith.constant 6 : index
    %c0_100 = arith.constant 0 : index
    %c0_101 = arith.constant 0 : index
    %147 = vector.load %arg10[%c6_99, %c0_100, %c0_101] : memref<9x18x18xf32, #tpu.memory_space<vmem>>, vector<1x18x18xf32>
    %148 = vector.shape_cast %147 : vector<1x18x18xf32> to vector<18x18xf32>
    %cst_102 = arith.constant dense<0.000000e+00> : vector<18x64xf32>
    %149 = tpu.matmul %148, %92, %cst_102 {dimension_numbers = #tpu.dot_dimension_numbers<[1], [0], [0], [1], [0, 0, 1, 1], [], []>} : vector<18x18xf32>, vector<18x64xf32>, vector<18x64xf32> -> vector<18x64xf32>
    %c6_103 = arith.constant 6 : index
    %c0_104 = arith.constant 0 : index
    %c0_105 = arith.constant 0 : index
    %150 = vector.load %arg12[%c6_103, %c0_104, %c0_105] : memref<9x64x64xf32, #tpu.memory_space<vmem>>, vector<1x64x64xf32>
    %151 = vector.shape_cast %150 : vector<1x64x64xf32> to vector<64x64xf32>
    %152 = arith.truncf %149 : vector<18x64xf32> to vector<18x64xbf16>
    %153 = arith.truncf %151 : vector<64x64xf32> to vector<64x64xbf16>
    %cst_106 = arith.constant dense<0.000000e+00> : vector<18x64xf32>
    %154 = tpu.matmul %152, %153, %cst_106 {dimension_numbers = #tpu.dot_dimension_numbers<[1], [0], [0], [1], [0, 0, 1, 1], [], []>} : vector<18x64xbf16>, vector<64x64xbf16>, vector<18x64xf32> -> vector<18x64xf32>
    %155 = arith.addf %146, %154 : vector<18x64xf32>
    %c7_107 = arith.constant 7 : index
    %c0_108 = arith.constant 0 : index
    %c0_109 = arith.constant 0 : index
    %156 = vector.load %arg10[%c7_107, %c0_108, %c0_109] : memref<9x18x18xf32, #tpu.memory_space<vmem>>, vector<1x18x18xf32>
    %157 = vector.shape_cast %156 : vector<1x18x18xf32> to vector<18x18xf32>
    %cst_110 = arith.constant dense<0.000000e+00> : vector<18x64xf32>
    %158 = tpu.matmul %157, %92, %cst_110 {dimension_numbers = #tpu.dot_dimension_numbers<[1], [0], [0], [1], [0, 0, 1, 1], [], []>} : vector<18x18xf32>, vector<18x64xf32>, vector<18x64xf32> -> vector<18x64xf32>
    %c7_111 = arith.constant 7 : index
    %c0_112 = arith.constant 0 : index
    %c0_113 = arith.constant 0 : index
    %159 = vector.load %arg12[%c7_111, %c0_112, %c0_113] : memref<9x64x64xf32, #tpu.memory_space<vmem>>, vector<1x64x64xf32>
    %160 = vector.shape_cast %159 : vector<1x64x64xf32> to vector<64x64xf32>
    %161 = arith.truncf %158 : vector<18x64xf32> to vector<18x64xbf16>
    %162 = arith.truncf %160 : vector<64x64xf32> to vector<64x64xbf16>
    %cst_114 = arith.constant dense<0.000000e+00> : vector<18x64xf32>
    %163 = tpu.matmul %161, %162, %cst_114 {dimension_numbers = #tpu.dot_dimension_numbers<[1], [0], [0], [1], [0, 0, 1, 1], [], []>} : vector<18x64xbf16>, vector<64x64xbf16>, vector<18x64xf32> -> vector<18x64xf32>
    %164 = arith.addf %155, %163 : vector<18x64xf32>
    %c8_115 = arith.constant 8 : index
    %c0_116 = arith.constant 0 : index
    %c0_117 = arith.constant 0 : index
    %165 = vector.load %arg10[%c8_115, %c0_116, %c0_117] : memref<9x18x18xf32, #tpu.memory_space<vmem>>, vector<1x18x18xf32>
    %166 = vector.shape_cast %165 : vector<1x18x18xf32> to vector<18x18xf32>
    %cst_118 = arith.constant dense<0.000000e+00> : vector<18x64xf32>
    %167 = tpu.matmul %166, %92, %cst_118 {dimension_numbers = #tpu.dot_dimension_numbers<[1], [0], [0], [1], [0, 0, 1, 1], [], []>} : vector<18x18xf32>, vector<18x64xf32>, vector<18x64xf32> -> vector<18x64xf32>
    %c8_119 = arith.constant 8 : index
    %c0_120 = arith.constant 0 : index
    %c0_121 = arith.constant 0 : index
    %168 = vector.load %arg12[%c8_119, %c0_120, %c0_121] : memref<9x64x64xf32, #tpu.memory_space<vmem>>, vector<1x64x64xf32>
    %169 = vector.shape_cast %168 : vector<1x64x64xf32> to vector<64x64xf32>
    %170 = arith.truncf %167 : vector<18x64xf32> to vector<18x64xbf16>
    %171 = arith.truncf %169 : vector<64x64xf32> to vector<64x64xbf16>
    %cst_122 = arith.constant dense<0.000000e+00> : vector<18x64xf32>
    %172 = tpu.matmul %170, %171, %cst_122 {dimension_numbers = #tpu.dot_dimension_numbers<[1], [0], [0], [1], [0, 0, 1, 1], [], []>} : vector<18x64xbf16>, vector<64x64xbf16>, vector<18x64xf32> -> vector<18x64xf32>
    %173 = arith.addf %164, %172 : vector<18x64xf32>
    %174 = vector.broadcast %93 : vector<1x64xf32> to vector<18x64xf32>
    %175 = arith.addf %173, %174 : vector<18x64xf32>
    %cst_123 = arith.constant 0.000000e+00 : f32
    %176 = vector.broadcast %cst_123 : f32 to vector<18x64xf32>
    %177 = arith.maximumf %175, %176 : vector<18x64xf32>
    %cst_124 = arith.constant dense<0.000000e+00> : vector<64xf32>
    %178 = vector.multi_reduction <add>, %177, %cst_124 [0] : vector<18x64xf32> to vector<64xf32>
    %179 = vector.shape_cast %178 : vector<64xf32> to vector<1x64xf32>
    %cst_125 = arith.constant 1.800000e+01 : f32
    %180 = vector.broadcast %cst_125 : f32 to vector<1x64xf32>
    %181 = arith.divf %179, %180 : vector<1x64xf32>
    %182 = vector.broadcast %181 : vector<1x64xf32> to vector<18x64xf32>
    %183 = arith.subf %177, %182 : vector<18x64xf32>
    %184 = arith.mulf %183, %183 : vector<18x64xf32>
    %cst_126 = arith.constant dense<0.000000e+00> : vector<64xf32>
    %185 = vector.multi_reduction <add>, %184, %cst_126 [0] : vector<18x64xf32> to vector<64xf32>
    %186 = vector.shape_cast %185 : vector<64xf32> to vector<1x64xf32>
    %cst_127 = arith.constant 1.800000e+01 : f32
    %187 = vector.broadcast %cst_127 : f32 to vector<1x64xf32>
    %188 = arith.divf %186, %187 : vector<1x64xf32>
    %189 = vector.broadcast %181 : vector<1x64xf32> to vector<18x64xf32>
    %190 = arith.subf %177, %189 : vector<18x64xf32>
    %cst_128 = arith.constant 9.99999974E-6 : f32
    %191 = vector.broadcast %cst_128 : f32 to vector<1x64xf32>
    %192 = arith.addf %188, %191 : vector<1x64xf32>
    %193 = math.rsqrt %192 : vector<1x64xf32>
    %194 = vector.broadcast %193 : vector<1x64xf32> to vector<18x64xf32>
    %195 = arith.mulf %190, %194 : vector<18x64xf32>
    %196 = vector.broadcast %0 : vector<1x64xf32> to vector<18x64xf32>
    %197 = arith.mulf %195, %196 : vector<18x64xf32>
    %198 = vector.broadcast %1 : vector<1x64xf32> to vector<18x64xf32>
    %199 = arith.addf %197, %198 : vector<18x64xf32>
    %c0_129 = arith.constant 0 : index
    %c0_130 = arith.constant 0 : index
    %200 = vector.load %arg15[%c0_129, %c0_130] : memref<1x128xf32, #tpu.memory_space<vmem>>, vector<1x128xf32>
    %c0_131 = arith.constant 0 : index
    %c0_132 = arith.constant 0 : index
    %c0_133 = arith.constant 0 : index
    %201 = vector.load %arg10[%c0_131, %c0_132, %c0_133] : memref<9x18x18xf32, #tpu.memory_space<vmem>>, vector<1x18x18xf32>
    %202 = vector.shape_cast %201 : vector<1x18x18xf32> to vector<18x18xf32>
    %cst_134 = arith.constant dense<0.000000e+00> : vector<18x64xf32>
    %203 = tpu.matmul %202, %199, %cst_134 {dimension_numbers = #tpu.dot_dimension_numbers<[1], [0], [0], [1], [0, 0, 1, 1], [], []>} : vector<18x18xf32>, vector<18x64xf32>, vector<18x64xf32> -> vector<18x64xf32>
    %c0_135 = arith.constant 0 : index
    %c0_136 = arith.constant 0 : index
    %c0_137 = arith.constant 0 : index
    %204 = vector.load %arg14[%c0_135, %c0_136, %c0_137] : memref<9x64x128xf32, #tpu.memory_space<vmem>>, vector<1x64x128xf32>
    %205 = vector.shape_cast %204 : vector<1x64x128xf32> to vector<64x128xf32>
    %206 = arith.truncf %203 : vector<18x64xf32> to vector<18x64xbf16>
    %207 = arith.truncf %205 : vector<64x128xf32> to vector<64x128xbf16>
    %cst_138 = arith.constant dense<0.000000e+00> : vector<18x128xf32>
    %208 = tpu.matmul %206, %207, %cst_138 {dimension_numbers = #tpu.dot_dimension_numbers<[1], [0], [0], [1], [0, 0, 1, 1], [], []>} : vector<18x64xbf16>, vector<64x128xbf16>, vector<18x128xf32> -> vector<18x128xf32>
    %c1_139 = arith.constant 1 : index
    %c0_140 = arith.constant 0 : index
    %c0_141 = arith.constant 0 : index
    %209 = vector.load %arg10[%c1_139, %c0_140, %c0_141] : memref<9x18x18xf32, #tpu.memory_space<vmem>>, vector<1x18x18xf32>
    %210 = vector.shape_cast %209 : vector<1x18x18xf32> to vector<18x18xf32>
    %cst_142 = arith.constant dense<0.000000e+00> : vector<18x64xf32>
    %211 = tpu.matmul %210, %199, %cst_142 {dimension_numbers = #tpu.dot_dimension_numbers<[1], [0], [0], [1], [0, 0, 1, 1], [], []>} : vector<18x18xf32>, vector<18x64xf32>, vector<18x64xf32> -> vector<18x64xf32>
    %c1_143 = arith.constant 1 : index
    %c0_144 = arith.constant 0 : index
    %c0_145 = arith.constant 0 : index
    %212 = vector.load %arg14[%c1_143, %c0_144, %c0_145] : memref<9x64x128xf32, #tpu.memory_space<vmem>>, vector<1x64x128xf32>
    %213 = vector.shape_cast %212 : vector<1x64x128xf32> to vector<64x128xf32>
    %214 = arith.truncf %211 : vector<18x64xf32> to vector<18x64xbf16>
    %215 = arith.truncf %213 : vector<64x128xf32> to vector<64x128xbf16>
    %cst_146 = arith.constant dense<0.000000e+00> : vector<18x128xf32>
    %216 = tpu.matmul %214, %215, %cst_146 {dimension_numbers = #tpu.dot_dimension_numbers<[1], [0], [0], [1], [0, 0, 1, 1], [], []>} : vector<18x64xbf16>, vector<64x128xbf16>, vector<18x128xf32> -> vector<18x128xf32>
    %217 = arith.addf %208, %216 : vector<18x128xf32>
    %c2_147 = arith.constant 2 : index
    %c0_148 = arith.constant 0 : index
    %c0_149 = arith.constant 0 : index
    %218 = vector.load %arg10[%c2_147, %c0_148, %c0_149] : memref<9x18x18xf32, #tpu.memory_space<vmem>>, vector<1x18x18xf32>
    %219 = vector.shape_cast %218 : vector<1x18x18xf32> to vector<18x18xf32>
    %cst_150 = arith.constant dense<0.000000e+00> : vector<18x64xf32>
    %220 = tpu.matmul %219, %199, %cst_150 {dimension_numbers = #tpu.dot_dimension_numbers<[1], [0], [0], [1], [0, 0, 1, 1], [], []>} : vector<18x18xf32>, vector<18x64xf32>, vector<18x64xf32> -> vector<18x64xf32>
    %c2_151 = arith.constant 2 : index
    %c0_152 = arith.constant 0 : index
    %c0_153 = arith.constant 0 : index
    %221 = vector.load %arg14[%c2_151, %c0_152, %c0_153] : memref<9x64x128xf32, #tpu.memory_space<vmem>>, vector<1x64x128xf32>
    %222 = vector.shape_cast %221 : vector<1x64x128xf32> to vector<64x128xf32>
    %223 = arith.truncf %220 : vector<18x64xf32> to vector<18x64xbf16>
    %224 = arith.truncf %222 : vector<64x128xf32> to vector<64x128xbf16>
    %cst_154 = arith.constant dense<0.000000e+00> : vector<18x128xf32>
    %225 = tpu.matmul %223, %224, %cst_154 {dimension_numbers = #tpu.dot_dimension_numbers<[1], [0], [0], [1], [0, 0, 1, 1], [], []>} : vector<18x64xbf16>, vector<64x128xbf16>, vector<18x128xf32> -> vector<18x128xf32>
    %226 = arith.addf %217, %225 : vector<18x128xf32>
    %c3_155 = arith.constant 3 : index
    %c0_156 = arith.constant 0 : index
    %c0_157 = arith.constant 0 : index
    %227 = vector.load %arg10[%c3_155, %c0_156, %c0_157] : memref<9x18x18xf32, #tpu.memory_space<vmem>>, vector<1x18x18xf32>
    %228 = vector.shape_cast %227 : vector<1x18x18xf32> to vector<18x18xf32>
    %cst_158 = arith.constant dense<0.000000e+00> : vector<18x64xf32>
    %229 = tpu.matmul %228, %199, %cst_158 {dimension_numbers = #tpu.dot_dimension_numbers<[1], [0], [0], [1], [0, 0, 1, 1], [], []>} : vector<18x18xf32>, vector<18x64xf32>, vector<18x64xf32> -> vector<18x64xf32>
    %c3_159 = arith.constant 3 : index
    %c0_160 = arith.constant 0 : index
    %c0_161 = arith.constant 0 : index
    %230 = vector.load %arg14[%c3_159, %c0_160, %c0_161] : memref<9x64x128xf32, #tpu.memory_space<vmem>>, vector<1x64x128xf32>
    %231 = vector.shape_cast %230 : vector<1x64x128xf32> to vector<64x128xf32>
    %232 = arith.truncf %229 : vector<18x64xf32> to vector<18x64xbf16>
    %233 = arith.truncf %231 : vector<64x128xf32> to vector<64x128xbf16>
    %cst_162 = arith.constant dense<0.000000e+00> : vector<18x128xf32>
    %234 = tpu.matmul %232, %233, %cst_162 {dimension_numbers = #tpu.dot_dimension_numbers<[1], [0], [0], [1], [0, 0, 1, 1], [], []>} : vector<18x64xbf16>, vector<64x128xbf16>, vector<18x128xf32> -> vector<18x128xf32>
    %235 = arith.addf %226, %234 : vector<18x128xf32>
    %c4_163 = arith.constant 4 : index
    %c0_164 = arith.constant 0 : index
    %c0_165 = arith.constant 0 : index
    %236 = vector.load %arg10[%c4_163, %c0_164, %c0_165] : memref<9x18x18xf32, #tpu.memory_space<vmem>>, vector<1x18x18xf32>
    %237 = vector.shape_cast %236 : vector<1x18x18xf32> to vector<18x18xf32>
    %cst_166 = arith.constant dense<0.000000e+00> : vector<18x64xf32>
    %238 = tpu.matmul %237, %199, %cst_166 {dimension_numbers = #tpu.dot_dimension_numbers<[1], [0], [0], [1], [0, 0, 1, 1], [], []>} : vector<18x18xf32>, vector<18x64xf32>, vector<18x64xf32> -> vector<18x64xf32>
    %c4_167 = arith.constant 4 : index
    %c0_168 = arith.constant 0 : index
    %c0_169 = arith.constant 0 : index
    %239 = vector.load %arg14[%c4_167, %c0_168, %c0_169] : memref<9x64x128xf32, #tpu.memory_space<vmem>>, vector<1x64x128xf32>
    %240 = vector.shape_cast %239 : vector<1x64x128xf32> to vector<64x128xf32>
    %241 = arith.truncf %238 : vector<18x64xf32> to vector<18x64xbf16>
    %242 = arith.truncf %240 : vector<64x128xf32> to vector<64x128xbf16>
    %cst_170 = arith.constant dense<0.000000e+00> : vector<18x128xf32>
    %243 = tpu.matmul %241, %242, %cst_170 {dimension_numbers = #tpu.dot_dimension_numbers<[1], [0], [0], [1], [0, 0, 1, 1], [], []>} : vector<18x64xbf16>, vector<64x128xbf16>, vector<18x128xf32> -> vector<18x128xf32>
    %244 = arith.addf %235, %243 : vector<18x128xf32>
    %c5_171 = arith.constant 5 : index
    %c0_172 = arith.constant 0 : index
    %c0_173 = arith.constant 0 : index
    %245 = vector.load %arg10[%c5_171, %c0_172, %c0_173] : memref<9x18x18xf32, #tpu.memory_space<vmem>>, vector<1x18x18xf32>
    %246 = vector.shape_cast %245 : vector<1x18x18xf32> to vector<18x18xf32>
    %cst_174 = arith.constant dense<0.000000e+00> : vector<18x64xf32>
    %247 = tpu.matmul %246, %199, %cst_174 {dimension_numbers = #tpu.dot_dimension_numbers<[1], [0], [0], [1], [0, 0, 1, 1], [], []>} : vector<18x18xf32>, vector<18x64xf32>, vector<18x64xf32> -> vector<18x64xf32>
    %c5_175 = arith.constant 5 : index
    %c0_176 = arith.constant 0 : index
    %c0_177 = arith.constant 0 : index
    %248 = vector.load %arg14[%c5_175, %c0_176, %c0_177] : memref<9x64x128xf32, #tpu.memory_space<vmem>>, vector<1x64x128xf32>
    %249 = vector.shape_cast %248 : vector<1x64x128xf32> to vector<64x128xf32>
    %250 = arith.truncf %247 : vector<18x64xf32> to vector<18x64xbf16>
    %251 = arith.truncf %249 : vector<64x128xf32> to vector<64x128xbf16>
    %cst_178 = arith.constant dense<0.000000e+00> : vector<18x128xf32>
    %252 = tpu.matmul %250, %251, %cst_178 {dimension_numbers = #tpu.dot_dimension_numbers<[1], [0], [0], [1], [0, 0, 1, 1], [], []>} : vector<18x64xbf16>, vector<64x128xbf16>, vector<18x128xf32> -> vector<18x128xf32>
    %253 = arith.addf %244, %252 : vector<18x128xf32>
    %c6_179 = arith.constant 6 : index
    %c0_180 = arith.constant 0 : index
    %c0_181 = arith.constant 0 : index
    %254 = vector.load %arg10[%c6_179, %c0_180, %c0_181] : memref<9x18x18xf32, #tpu.memory_space<vmem>>, vector<1x18x18xf32>
    %255 = vector.shape_cast %254 : vector<1x18x18xf32> to vector<18x18xf32>
    %cst_182 = arith.constant dense<0.000000e+00> : vector<18x64xf32>
    %256 = tpu.matmul %255, %199, %cst_182 {dimension_numbers = #tpu.dot_dimension_numbers<[1], [0], [0], [1], [0, 0, 1, 1], [], []>} : vector<18x18xf32>, vector<18x64xf32>, vector<18x64xf32> -> vector<18x64xf32>
    %c6_183 = arith.constant 6 : index
    %c0_184 = arith.constant 0 : index
    %c0_185 = arith.constant 0 : index
    %257 = vector.load %arg14[%c6_183, %c0_184, %c0_185] : memref<9x64x128xf32, #tpu.memory_space<vmem>>, vector<1x64x128xf32>
    %258 = vector.shape_cast %257 : vector<1x64x128xf32> to vector<64x128xf32>
    %259 = arith.truncf %256 : vector<18x64xf32> to vector<18x64xbf16>
    %260 = arith.truncf %258 : vector<64x128xf32> to vector<64x128xbf16>
    %cst_186 = arith.constant dense<0.000000e+00> : vector<18x128xf32>
    %261 = tpu.matmul %259, %260, %cst_186 {dimension_numbers = #tpu.dot_dimension_numbers<[1], [0], [0], [1], [0, 0, 1, 1], [], []>} : vector<18x64xbf16>, vector<64x128xbf16>, vector<18x128xf32> -> vector<18x128xf32>
    %262 = arith.addf %253, %261 : vector<18x128xf32>
    %c7_187 = arith.constant 7 : index
    %c0_188 = arith.constant 0 : index
    %c0_189 = arith.constant 0 : index
    %263 = vector.load %arg10[%c7_187, %c0_188, %c0_189] : memref<9x18x18xf32, #tpu.memory_space<vmem>>, vector<1x18x18xf32>
    %264 = vector.shape_cast %263 : vector<1x18x18xf32> to vector<18x18xf32>
    %cst_190 = arith.constant dense<0.000000e+00> : vector<18x64xf32>
    %265 = tpu.matmul %264, %199, %cst_190 {dimension_numbers = #tpu.dot_dimension_numbers<[1], [0], [0], [1], [0, 0, 1, 1], [], []>} : vector<18x18xf32>, vector<18x64xf32>, vector<18x64xf32> -> vector<18x64xf32>
    %c7_191 = arith.constant 7 : index
    %c0_192 = arith.constant 0 : index
    %c0_193 = arith.constant 0 : index
    %266 = vector.load %arg14[%c7_191, %c0_192, %c0_193] : memref<9x64x128xf32, #tpu.memory_space<vmem>>, vector<1x64x128xf32>
    %267 = vector.shape_cast %266 : vector<1x64x128xf32> to vector<64x128xf32>
    %268 = arith.truncf %265 : vector<18x64xf32> to vector<18x64xbf16>
    %269 = arith.truncf %267 : vector<64x128xf32> to vector<64x128xbf16>
    %cst_194 = arith.constant dense<0.000000e+00> : vector<18x128xf32>
    %270 = tpu.matmul %268, %269, %cst_194 {dimension_numbers = #tpu.dot_dimension_numbers<[1], [0], [0], [1], [0, 0, 1, 1], [], []>} : vector<18x64xbf16>, vector<64x128xbf16>, vector<18x128xf32> -> vector<18x128xf32>
    %271 = arith.addf %262, %270 : vector<18x128xf32>
    %c8_195 = arith.constant 8 : index
    %c0_196 = arith.constant 0 : index
    %c0_197 = arith.constant 0 : index
    %272 = vector.load %arg10[%c8_195, %c0_196, %c0_197] : memref<9x18x18xf32, #tpu.memory_space<vmem>>, vector<1x18x18xf32>
    %273 = vector.shape_cast %272 : vector<1x18x18xf32> to vector<18x18xf32>
    %cst_198 = arith.constant dense<0.000000e+00> : vector<18x64xf32>
    %274 = tpu.matmul %273, %199, %cst_198 {dimension_numbers = #tpu.dot_dimension_numbers<[1], [0], [0], [1], [0, 0, 1, 1], [], []>} : vector<18x18xf32>, vector<18x64xf32>, vector<18x64xf32> -> vector<18x64xf32>
    %c8_199 = arith.constant 8 : index
    %c0_200 = arith.constant 0 : index
    %c0_201 = arith.constant 0 : index
    %275 = vector.load %arg14[%c8_199, %c0_200, %c0_201] : memref<9x64x128xf32, #tpu.memory_space<vmem>>, vector<1x64x128xf32>
    %276 = vector.shape_cast %275 : vector<1x64x128xf32> to vector<64x128xf32>
    %277 = arith.truncf %274 : vector<18x64xf32> to vector<18x64xbf16>
    %278 = arith.truncf %276 : vector<64x128xf32> to vector<64x128xbf16>
    %cst_202 = arith.constant dense<0.000000e+00> : vector<18x128xf32>
    %279 = tpu.matmul %277, %278, %cst_202 {dimension_numbers = #tpu.dot_dimension_numbers<[1], [0], [0], [1], [0, 0, 1, 1], [], []>} : vector<18x64xbf16>, vector<64x128xbf16>, vector<18x128xf32> -> vector<18x128xf32>
    %280 = arith.addf %271, %279 : vector<18x128xf32>
    %281 = vector.broadcast %200 : vector<1x128xf32> to vector<18x128xf32>
    %282 = arith.addf %280, %281 : vector<18x128xf32>
    %cst_203 = arith.constant 0.000000e+00 : f32
    %283 = vector.broadcast %cst_203 : f32 to vector<18x128xf32>
    %284 = arith.maximumf %282, %283 : vector<18x128xf32>
    %c0_204 = arith.constant 0 : index
    %c0_205 = arith.constant 0 : index
    %285 = vector.load %arg5[%c0_204, %c0_205] : memref<1x128xf32, #tpu.memory_space<vmem>>, vector<1x128xf32>
    %c0_206 = arith.constant 0 : index
    %c0_207 = arith.constant 0 : index
    %286 = vector.load %arg6[%c0_206, %c0_207] : memref<1x128xf32, #tpu.memory_space<vmem>>, vector<1x128xf32>
    %cst_208 = arith.constant dense<0.000000e+00> : vector<128xf32>
    %287 = vector.multi_reduction <add>, %284, %cst_208 [0] : vector<18x128xf32> to vector<128xf32>
    %288 = vector.shape_cast %287 : vector<128xf32> to vector<1x128xf32>
    %cst_209 = arith.constant 1.800000e+01 : f32
    %289 = vector.broadcast %cst_209 : f32 to vector<1x128xf32>
    %290 = arith.divf %288, %289 : vector<1x128xf32>
    %291 = vector.broadcast %290 : vector<1x128xf32> to vector<18x128xf32>
    %292 = arith.subf %284, %291 : vector<18x128xf32>
    %293 = arith.mulf %292, %292 : vector<18x128xf32>
    %cst_210 = arith.constant dense<0.000000e+00> : vector<128xf32>
    %294 = vector.multi_reduction <add>, %293, %cst_210 [0] : vector<18x128xf32> to vector<128xf32>
    %295 = vector.shape_cast %294 : vector<128xf32> to vector<1x128xf32>
    %cst_211 = arith.constant 1.800000e+01 : f32
    %296 = vector.broadcast %cst_211 : f32 to vector<1x128xf32>
    %297 = arith.divf %295, %296 : vector<1x128xf32>
    %298 = vector.broadcast %290 : vector<1x128xf32> to vector<18x128xf32>
    %299 = arith.subf %284, %298 : vector<18x128xf32>
    %cst_212 = arith.constant 9.99999974E-6 : f32
    %300 = vector.broadcast %cst_212 : f32 to vector<1x128xf32>
    %301 = arith.addf %297, %300 : vector<1x128xf32>
    %302 = math.rsqrt %301 : vector<1x128xf32>
    %303 = vector.broadcast %302 : vector<1x128xf32> to vector<18x128xf32>
    %304 = arith.mulf %299, %303 : vector<18x128xf32>
    %305 = vector.broadcast %285 : vector<1x128xf32> to vector<18x128xf32>
    %306 = arith.mulf %304, %305 : vector<18x128xf32>
    %307 = vector.broadcast %286 : vector<1x128xf32> to vector<18x128xf32>
    %308 = arith.addf %306, %307 : vector<18x128xf32>
    %c0_213 = arith.constant 0 : index
    %c0_214 = arith.constant 0 : index
    %309 = vector.load %arg17[%c0_213, %c0_214] : memref<1x256xf32, #tpu.memory_space<vmem>>, vector<1x256xf32>
    %c0_215 = arith.constant 0 : index
    %c0_216 = arith.constant 0 : index
    %c0_217 = arith.constant 0 : index
    %310 = vector.load %arg10[%c0_215, %c0_216, %c0_217] : memref<9x18x18xf32, #tpu.memory_space<vmem>>, vector<1x18x18xf32>
    %311 = vector.shape_cast %310 : vector<1x18x18xf32> to vector<18x18xf32>
    %cst_218 = arith.constant dense<0.000000e+00> : vector<18x128xf32>
    %312 = tpu.matmul %311, %308, %cst_218 {dimension_numbers = #tpu.dot_dimension_numbers<[1], [0], [0], [1], [0, 0, 1, 1], [], []>} : vector<18x18xf32>, vector<18x128xf32>, vector<18x128xf32> -> vector<18x128xf32>
    %c0_219 = arith.constant 0 : index
    %c0_220 = arith.constant 0 : index
    %c0_221 = arith.constant 0 : index
    %313 = vector.load %arg16[%c0_219, %c0_220, %c0_221] : memref<9x128x256xf32, #tpu.memory_space<vmem>>, vector<1x128x256xf32>
    %314 = vector.shape_cast %313 : vector<1x128x256xf32> to vector<128x256xf32>
    %315 = arith.truncf %312 : vector<18x128xf32> to vector<18x128xbf16>
    %316 = arith.truncf %314 : vector<128x256xf32> to vector<128x256xbf16>
    %cst_222 = arith.constant dense<0.000000e+00> : vector<18x256xf32>
    %317 = tpu.matmul %315, %316, %cst_222 {dimension_numbers = #tpu.dot_dimension_numbers<[1], [0], [0], [1], [0, 0, 1, 1], [], []>} : vector<18x128xbf16>, vector<128x256xbf16>, vector<18x256xf32> -> vector<18x256xf32>
    %c1_223 = arith.constant 1 : index
    %c0_224 = arith.constant 0 : index
    %c0_225 = arith.constant 0 : index
    %318 = vector.load %arg10[%c1_223, %c0_224, %c0_225] : memref<9x18x18xf32, #tpu.memory_space<vmem>>, vector<1x18x18xf32>
    %319 = vector.shape_cast %318 : vector<1x18x18xf32> to vector<18x18xf32>
    %cst_226 = arith.constant dense<0.000000e+00> : vector<18x128xf32>
    %320 = tpu.matmul %319, %308, %cst_226 {dimension_numbers = #tpu.dot_dimension_numbers<[1], [0], [0], [1], [0, 0, 1, 1], [], []>} : vector<18x18xf32>, vector<18x128xf32>, vector<18x128xf32> -> vector<18x128xf32>
    %c1_227 = arith.constant 1 : index
    %c0_228 = arith.constant 0 : index
    %c0_229 = arith.constant 0 : index
    %321 = vector.load %arg16[%c1_227, %c0_228, %c0_229] : memref<9x128x256xf32, #tpu.memory_space<vmem>>, vector<1x128x256xf32>
    %322 = vector.shape_cast %321 : vector<1x128x256xf32> to vector<128x256xf32>
    %323 = arith.truncf %320 : vector<18x128xf32> to vector<18x128xbf16>
    %324 = arith.truncf %322 : vector<128x256xf32> to vector<128x256xbf16>
    %cst_230 = arith.constant dense<0.000000e+00> : vector<18x256xf32>
    %325 = tpu.matmul %323, %324, %cst_230 {dimension_numbers = #tpu.dot_dimension_numbers<[1], [0], [0], [1], [0, 0, 1, 1], [], []>} : vector<18x128xbf16>, vector<128x256xbf16>, vector<18x256xf32> -> vector<18x256xf32>
    %326 = arith.addf %317, %325 : vector<18x256xf32>
    %c2_231 = arith.constant 2 : index
    %c0_232 = arith.constant 0 : index
    %c0_233 = arith.constant 0 : index
    %327 = vector.load %arg10[%c2_231, %c0_232, %c0_233] : memref<9x18x18xf32, #tpu.memory_space<vmem>>, vector<1x18x18xf32>
    %328 = vector.shape_cast %327 : vector<1x18x18xf32> to vector<18x18xf32>
    %cst_234 = arith.constant dense<0.000000e+00> : vector<18x128xf32>
    %329 = tpu.matmul %328, %308, %cst_234 {dimension_numbers = #tpu.dot_dimension_numbers<[1], [0], [0], [1], [0, 0, 1, 1], [], []>} : vector<18x18xf32>, vector<18x128xf32>, vector<18x128xf32> -> vector<18x128xf32>
    %c2_235 = arith.constant 2 : index
    %c0_236 = arith.constant 0 : index
    %c0_237 = arith.constant 0 : index
    %330 = vector.load %arg16[%c2_235, %c0_236, %c0_237] : memref<9x128x256xf32, #tpu.memory_space<vmem>>, vector<1x128x256xf32>
    %331 = vector.shape_cast %330 : vector<1x128x256xf32> to vector<128x256xf32>
    %332 = arith.truncf %329 : vector<18x128xf32> to vector<18x128xbf16>
    %333 = arith.truncf %331 : vector<128x256xf32> to vector<128x256xbf16>
    %cst_238 = arith.constant dense<0.000000e+00> : vector<18x256xf32>
    %334 = tpu.matmul %332, %333, %cst_238 {dimension_numbers = #tpu.dot_dimension_numbers<[1], [0], [0], [1], [0, 0, 1, 1], [], []>} : vector<18x128xbf16>, vector<128x256xbf16>, vector<18x256xf32> -> vector<18x256xf32>
    %335 = arith.addf %326, %334 : vector<18x256xf32>
    %c3_239 = arith.constant 3 : index
    %c0_240 = arith.constant 0 : index
    %c0_241 = arith.constant 0 : index
    %336 = vector.load %arg10[%c3_239, %c0_240, %c0_241] : memref<9x18x18xf32, #tpu.memory_space<vmem>>, vector<1x18x18xf32>
    %337 = vector.shape_cast %336 : vector<1x18x18xf32> to vector<18x18xf32>
    %cst_242 = arith.constant dense<0.000000e+00> : vector<18x128xf32>
    %338 = tpu.matmul %337, %308, %cst_242 {dimension_numbers = #tpu.dot_dimension_numbers<[1], [0], [0], [1], [0, 0, 1, 1], [], []>} : vector<18x18xf32>, vector<18x128xf32>, vector<18x128xf32> -> vector<18x128xf32>
    %c3_243 = arith.constant 3 : index
    %c0_244 = arith.constant 0 : index
    %c0_245 = arith.constant 0 : index
    %339 = vector.load %arg16[%c3_243, %c0_244, %c0_245] : memref<9x128x256xf32, #tpu.memory_space<vmem>>, vector<1x128x256xf32>
    %340 = vector.shape_cast %339 : vector<1x128x256xf32> to vector<128x256xf32>
    %341 = arith.truncf %338 : vector<18x128xf32> to vector<18x128xbf16>
    %342 = arith.truncf %340 : vector<128x256xf32> to vector<128x256xbf16>
    %cst_246 = arith.constant dense<0.000000e+00> : vector<18x256xf32>
    %343 = tpu.matmul %341, %342, %cst_246 {dimension_numbers = #tpu.dot_dimension_numbers<[1], [0], [0], [1], [0, 0, 1, 1], [], []>} : vector<18x128xbf16>, vector<128x256xbf16>, vector<18x256xf32> -> vector<18x256xf32>
    %344 = arith.addf %335, %343 : vector<18x256xf32>
    %c4_247 = arith.constant 4 : index
    %c0_248 = arith.constant 0 : index
    %c0_249 = arith.constant 0 : index
    %345 = vector.load %arg10[%c4_247, %c0_248, %c0_249] : memref<9x18x18xf32, #tpu.memory_space<vmem>>, vector<1x18x18xf32>
    %346 = vector.shape_cast %345 : vector<1x18x18xf32> to vector<18x18xf32>
    %cst_250 = arith.constant dense<0.000000e+00> : vector<18x128xf32>
    %347 = tpu.matmul %346, %308, %cst_250 {dimension_numbers = #tpu.dot_dimension_numbers<[1], [0], [0], [1], [0, 0, 1, 1], [], []>} : vector<18x18xf32>, vector<18x128xf32>, vector<18x128xf32> -> vector<18x128xf32>
    %c4_251 = arith.constant 4 : index
    %c0_252 = arith.constant 0 : index
    %c0_253 = arith.constant 0 : index
    %348 = vector.load %arg16[%c4_251, %c0_252, %c0_253] : memref<9x128x256xf32, #tpu.memory_space<vmem>>, vector<1x128x256xf32>
    %349 = vector.shape_cast %348 : vector<1x128x256xf32> to vector<128x256xf32>
    %350 = arith.truncf %347 : vector<18x128xf32> to vector<18x128xbf16>
    %351 = arith.truncf %349 : vector<128x256xf32> to vector<128x256xbf16>
    %cst_254 = arith.constant dense<0.000000e+00> : vector<18x256xf32>
    %352 = tpu.matmul %350, %351, %cst_254 {dimension_numbers = #tpu.dot_dimension_numbers<[1], [0], [0], [1], [0, 0, 1, 1], [], []>} : vector<18x128xbf16>, vector<128x256xbf16>, vector<18x256xf32> -> vector<18x256xf32>
    %353 = arith.addf %344, %352 : vector<18x256xf32>
    %c5_255 = arith.constant 5 : index
    %c0_256 = arith.constant 0 : index
    %c0_257 = arith.constant 0 : index
    %354 = vector.load %arg10[%c5_255, %c0_256, %c0_257] : memref<9x18x18xf32, #tpu.memory_space<vmem>>, vector<1x18x18xf32>
    %355 = vector.shape_cast %354 : vector<1x18x18xf32> to vector<18x18xf32>
    %cst_258 = arith.constant dense<0.000000e+00> : vector<18x128xf32>
    %356 = tpu.matmul %355, %308, %cst_258 {dimension_numbers = #tpu.dot_dimension_numbers<[1], [0], [0], [1], [0, 0, 1, 1], [], []>} : vector<18x18xf32>, vector<18x128xf32>, vector<18x128xf32> -> vector<18x128xf32>
    %c5_259 = arith.constant 5 : index
    %c0_260 = arith.constant 0 : index
    %c0_261 = arith.constant 0 : index
    %357 = vector.load %arg16[%c5_259, %c0_260, %c0_261] : memref<9x128x256xf32, #tpu.memory_space<vmem>>, vector<1x128x256xf32>
    %358 = vector.shape_cast %357 : vector<1x128x256xf32> to vector<128x256xf32>
    %359 = arith.truncf %356 : vector<18x128xf32> to vector<18x128xbf16>
    %360 = arith.truncf %358 : vector<128x256xf32> to vector<128x256xbf16>
    %cst_262 = arith.constant dense<0.000000e+00> : vector<18x256xf32>
    %361 = tpu.matmul %359, %360, %cst_262 {dimension_numbers = #tpu.dot_dimension_numbers<[1], [0], [0], [1], [0, 0, 1, 1], [], []>} : vector<18x128xbf16>, vector<128x256xbf16>, vector<18x256xf32> -> vector<18x256xf32>
    %362 = arith.addf %353, %361 : vector<18x256xf32>
    %c6_263 = arith.constant 6 : index
    %c0_264 = arith.constant 0 : index
    %c0_265 = arith.constant 0 : index
    %363 = vector.load %arg10[%c6_263, %c0_264, %c0_265] : memref<9x18x18xf32, #tpu.memory_space<vmem>>, vector<1x18x18xf32>
    %364 = vector.shape_cast %363 : vector<1x18x18xf32> to vector<18x18xf32>
    %cst_266 = arith.constant dense<0.000000e+00> : vector<18x128xf32>
    %365 = tpu.matmul %364, %308, %cst_266 {dimension_numbers = #tpu.dot_dimension_numbers<[1], [0], [0], [1], [0, 0, 1, 1], [], []>} : vector<18x18xf32>, vector<18x128xf32>, vector<18x128xf32> -> vector<18x128xf32>
    %c6_267 = arith.constant 6 : index
    %c0_268 = arith.constant 0 : index
    %c0_269 = arith.constant 0 : index
    %366 = vector.load %arg16[%c6_267, %c0_268, %c0_269] : memref<9x128x256xf32, #tpu.memory_space<vmem>>, vector<1x128x256xf32>
    %367 = vector.shape_cast %366 : vector<1x128x256xf32> to vector<128x256xf32>
    %368 = arith.truncf %365 : vector<18x128xf32> to vector<18x128xbf16>
    %369 = arith.truncf %367 : vector<128x256xf32> to vector<128x256xbf16>
    %cst_270 = arith.constant dense<0.000000e+00> : vector<18x256xf32>
    %370 = tpu.matmul %368, %369, %cst_270 {dimension_numbers = #tpu.dot_dimension_numbers<[1], [0], [0], [1], [0, 0, 1, 1], [], []>} : vector<18x128xbf16>, vector<128x256xbf16>, vector<18x256xf32> -> vector<18x256xf32>
    %371 = arith.addf %362, %370 : vector<18x256xf32>
    %c7_271 = arith.constant 7 : index
    %c0_272 = arith.constant 0 : index
    %c0_273 = arith.constant 0 : index
    %372 = vector.load %arg10[%c7_271, %c0_272, %c0_273] : memref<9x18x18xf32, #tpu.memory_space<vmem>>, vector<1x18x18xf32>
    %373 = vector.shape_cast %372 : vector<1x18x18xf32> to vector<18x18xf32>
    %cst_274 = arith.constant dense<0.000000e+00> : vector<18x128xf32>
    %374 = tpu.matmul %373, %308, %cst_274 {dimension_numbers = #tpu.dot_dimension_numbers<[1], [0], [0], [1], [0, 0, 1, 1], [], []>} : vector<18x18xf32>, vector<18x128xf32>, vector<18x128xf32> -> vector<18x128xf32>
    %c7_275 = arith.constant 7 : index
    %c0_276 = arith.constant 0 : index
    %c0_277 = arith.constant 0 : index
    %375 = vector.load %arg16[%c7_275, %c0_276, %c0_277] : memref<9x128x256xf32, #tpu.memory_space<vmem>>, vector<1x128x256xf32>
    %376 = vector.shape_cast %375 : vector<1x128x256xf32> to vector<128x256xf32>
    %377 = arith.truncf %374 : vector<18x128xf32> to vector<18x128xbf16>
    %378 = arith.truncf %376 : vector<128x256xf32> to vector<128x256xbf16>
    %cst_278 = arith.constant dense<0.000000e+00> : vector<18x256xf32>
    %379 = tpu.matmul %377, %378, %cst_278 {dimension_numbers = #tpu.dot_dimension_numbers<[1], [0], [0], [1], [0, 0, 1, 1], [], []>} : vector<18x128xbf16>, vector<128x256xbf16>, vector<18x256xf32> -> vector<18x256xf32>
    %380 = arith.addf %371, %379 : vector<18x256xf32>
    %c8_279 = arith.constant 8 : index
    %c0_280 = arith.constant 0 : index
    %c0_281 = arith.constant 0 : index
    %381 = vector.load %arg10[%c8_279, %c0_280, %c0_281] : memref<9x18x18xf32, #tpu.memory_space<vmem>>, vector<1x18x18xf32>
    %382 = vector.shape_cast %381 : vector<1x18x18xf32> to vector<18x18xf32>
    %cst_282 = arith.constant dense<0.000000e+00> : vector<18x128xf32>
    %383 = tpu.matmul %382, %308, %cst_282 {dimension_numbers = #tpu.dot_dimension_numbers<[1], [0], [0], [1], [0, 0, 1, 1], [], []>} : vector<18x18xf32>, vector<18x128xf32>, vector<18x128xf32> -> vector<18x128xf32>
    %c8_283 = arith.constant 8 : index
    %c0_284 = arith.constant 0 : index
    %c0_285 = arith.constant 0 : index
    %384 = vector.load %arg16[%c8_283, %c0_284, %c0_285] : memref<9x128x256xf32, #tpu.memory_space<vmem>>, vector<1x128x256xf32>
    %385 = vector.shape_cast %384 : vector<1x128x256xf32> to vector<128x256xf32>
    %386 = arith.truncf %383 : vector<18x128xf32> to vector<18x128xbf16>
    %387 = arith.truncf %385 : vector<128x256xf32> to vector<128x256xbf16>
    %cst_286 = arith.constant dense<0.000000e+00> : vector<18x256xf32>
    %388 = tpu.matmul %386, %387, %cst_286 {dimension_numbers = #tpu.dot_dimension_numbers<[1], [0], [0], [1], [0, 0, 1, 1], [], []>} : vector<18x128xbf16>, vector<128x256xbf16>, vector<18x256xf32> -> vector<18x256xf32>
    %389 = arith.addf %380, %388 : vector<18x256xf32>
    %390 = vector.broadcast %309 : vector<1x256xf32> to vector<18x256xf32>
    %391 = arith.addf %389, %390 : vector<18x256xf32>
    %cst_287 = arith.constant 0.000000e+00 : f32
    %392 = vector.broadcast %cst_287 : f32 to vector<18x256xf32>
    %393 = arith.maximumf %391, %392 : vector<18x256xf32>
    %c0_288 = arith.constant 0 : index
    %c0_289 = arith.constant 0 : index
    %394 = vector.load %arg7[%c0_288, %c0_289] : memref<1x256xf32, #tpu.memory_space<vmem>>, vector<1x256xf32>
    %c0_290 = arith.constant 0 : index
    %c0_291 = arith.constant 0 : index
    %395 = vector.load %arg8[%c0_290, %c0_291] : memref<1x256xf32, #tpu.memory_space<vmem>>, vector<1x256xf32>
    %cst_292 = arith.constant dense<0.000000e+00> : vector<256xf32>
    %396 = vector.multi_reduction <add>, %393, %cst_292 [0] : vector<18x256xf32> to vector<256xf32>
    %397 = vector.shape_cast %396 : vector<256xf32> to vector<1x256xf32>
    %cst_293 = arith.constant 1.800000e+01 : f32
    %398 = vector.broadcast %cst_293 : f32 to vector<1x256xf32>
    %399 = arith.divf %397, %398 : vector<1x256xf32>
    %400 = vector.broadcast %399 : vector<1x256xf32> to vector<18x256xf32>
    %401 = arith.subf %393, %400 : vector<18x256xf32>
    %402 = arith.mulf %401, %401 : vector<18x256xf32>
    %cst_294 = arith.constant dense<0.000000e+00> : vector<256xf32>
    %403 = vector.multi_reduction <add>, %402, %cst_294 [0] : vector<18x256xf32> to vector<256xf32>
    %404 = vector.shape_cast %403 : vector<256xf32> to vector<1x256xf32>
    %cst_295 = arith.constant 1.800000e+01 : f32
    %405 = vector.broadcast %cst_295 : f32 to vector<1x256xf32>
    %406 = arith.divf %404, %405 : vector<1x256xf32>
    %407 = vector.broadcast %399 : vector<1x256xf32> to vector<18x256xf32>
    %408 = arith.subf %393, %407 : vector<18x256xf32>
    %cst_296 = arith.constant 9.99999974E-6 : f32
    %409 = vector.broadcast %cst_296 : f32 to vector<1x256xf32>
    %410 = arith.addf %406, %409 : vector<1x256xf32>
    %411 = math.rsqrt %410 : vector<1x256xf32>
    %412 = vector.broadcast %411 : vector<1x256xf32> to vector<18x256xf32>
    %413 = arith.mulf %408, %412 : vector<18x256xf32>
    %414 = vector.broadcast %394 : vector<1x256xf32> to vector<18x256xf32>
    %415 = arith.mulf %413, %414 : vector<18x256xf32>
    %416 = vector.broadcast %395 : vector<1x256xf32> to vector<18x256xf32>
    %417 = arith.addf %415, %416 : vector<18x256xf32>
    %c0_297 = arith.constant 0 : index
    %c0_298 = arith.constant 0 : index
    %418 = vector.load %arg11[%c0_297, %c0_298] : memref<2x18xf32, #tpu.memory_space<vmem>>, vector<2x18xf32>
    %cst_299 = arith.constant dense<0.000000e+00> : vector<2x256xf32>
    %419 = tpu.matmul %418, %417, %cst_299 {dimension_numbers = #tpu.dot_dimension_numbers<[1], [0], [0], [1], [0, 0, 1, 1], [], []>} : vector<2x18xf32>, vector<18x256xf32>, vector<2x256xf32> -> vector<2x256xf32>
    %c0_300 = arith.constant 0 : index
    %c0_301 = arith.constant 0 : index
    %420 = vector.load %arg18[%c0_300, %c0_301] : memref<256x128xf32, #tpu.memory_space<vmem>>, vector<256x128xf32>
    %421 = arith.truncf %419 : vector<2x256xf32> to vector<2x256xbf16>
    %422 = arith.truncf %420 : vector<256x128xf32> to vector<256x128xbf16>
    %cst_302 = arith.constant dense<0.000000e+00> : vector<2x128xf32>
    %423 = tpu.matmul %421, %422, %cst_302 {dimension_numbers = #tpu.dot_dimension_numbers<[1], [0], [0], [1], [0, 0, 1, 1], [], []>} : vector<2x256xbf16>, vector<256x128xbf16>, vector<2x128xf32> -> vector<2x128xf32>
    %c0_303 = arith.constant 0 : index
    %c0_304 = arith.constant 0 : index
    %424 = vector.load %arg19[%c0_303, %c0_304] : memref<1x128xf32, #tpu.memory_space<vmem>>, vector<1x128xf32>
    %425 = vector.broadcast %424 : vector<1x128xf32> to vector<2x128xf32>
    %426 = arith.addf %423, %425 : vector<2x128xf32>
    %cst_305 = arith.constant 0.000000e+00 : f32
    %427 = vector.broadcast %cst_305 : f32 to vector<2x128xf32>
    %428 = arith.maximumf %426, %427 : vector<2x128xf32>
    %c0_306 = arith.constant 0 : index
    %c0_307 = arith.constant 0 : index
    %429 = vector.load %arg20[%c0_306, %c0_307] : memref<128x64xf32, #tpu.memory_space<vmem>>, vector<128x64xf32>
    %430 = arith.truncf %428 : vector<2x128xf32> to vector<2x128xbf16>
    %431 = arith.truncf %429 : vector<128x64xf32> to vector<128x64xbf16>
    %cst_308 = arith.constant dense<0.000000e+00> : vector<2x64xf32>
    %432 = tpu.matmul %430, %431, %cst_308 {dimension_numbers = #tpu.dot_dimension_numbers<[1], [0], [0], [1], [0, 0, 1, 1], [], []>} : vector<2x128xbf16>, vector<128x64xbf16>, vector<2x64xf32> -> vector<2x64xf32>
    %c0_309 = arith.constant 0 : index
    %c0_310 = arith.constant 0 : index
    %433 = vector.load %arg21[%c0_309, %c0_310] : memref<1x64xf32, #tpu.memory_space<vmem>>, vector<1x64xf32>
    %434 = vector.broadcast %433 : vector<1x64xf32> to vector<2x64xf32>
    %435 = arith.addf %432, %434 : vector<2x64xf32>
    %cst_311 = arith.constant 0.000000e+00 : f32
    %436 = vector.broadcast %cst_311 : f32 to vector<2x64xf32>
    %437 = arith.maximumf %435, %436 : vector<2x64xf32>
    %c0_312 = arith.constant 0 : index
    %c0_313 = arith.constant 0 : index
    %438 = vector.load %arg22[%c0_312, %c0_313] : memref<64x1xf32, #tpu.memory_space<vmem>>, vector<64x1xf32>
    %cst_314 = arith.constant dense<0.000000e+00> : vector<2x1xf32>
    %439 = tpu.matmul %437, %438, %cst_314 {dimension_numbers = #tpu.dot_dimension_numbers<[1], [0], [0], [1], [0, 0, 1, 1], [], []>} : vector<2x64xf32>, vector<64x1xf32>, vector<2x1xf32> -> vector<2x1xf32>
    %c0_315 = arith.constant 0 : index
    %c0_316 = arith.constant 0 : index
    %440 = vector.load %arg23[%c0_315, %c0_316] : memref<1x1xf32, #tpu.memory_space<vmem>>, vector<1x1xf32>
    %441 = vector.broadcast %440 : vector<1x1xf32> to vector<2x1xf32>
    %442 = arith.addf %439, %441 : vector<2x1xf32>
    %c0_317 = arith.constant 0 : index
    %c0_318 = arith.constant 0 : index
    %443 = vector.load %arg24[%c0_317, %c0_318] : memref<2x1xf32, #tpu.memory_space<vmem>>, vector<2x1xf32>
    tpu.vector_store %arg24[%c0_317, %c0_318], %442 {strides = array<i32>} : memref<2x1xf32, #tpu.memory_space<vmem>>, vector<2x1xf32>,
    return
  }
}

</mosaic_0001>

<bundles_post_ra>
// kernel: forward.1
= control target key start
LH: loop header
LB: loop body
LE: loop exit
PB: predicated region body
PF: predicated region fallthrough
CT: control target
= control target key end

     0   :  { %vm273_vm0 = vcmask 523264   ;;  %vm297_vm1 = vcmask 517120   ;;  %vm441_vm6 = vcmask 1041408   ;;  %vm431_vm7 = vcmask 801792   ;;  %s7444_s1 = inlined_call_operand.vmem [shape: f32[256,64], index: 1, kind: input, shape index: {}]   ;;  %s7445_s2 = inlined_call_operand.vmem [shape: f32[1,64], index: 2, kind: input, shape index: {}]   ;;  %s7446_s0 = inlined_call_operand.vmem [shape: f32[98,256], index: 0, kind: input, shape index: {}]   ;;  %s7447_s3 = inlined_call_operand.vmem [shape: f32[1,64], index: 3, kind: input, shape index: {}]   ;;  %s7448_s4 = inlined_call_operand.vmem [shape: f32[1,64], index: 4, kind: input, shape index: {}]   ;;  %s7449_s9 = inlined_call_operand.vmem [shape: f32[9,18,98], index: 9, kind: input, shape index: {}]   ;;  %s7450_s12 = inlined_call_operand.vmem [shape: f32[9,64,64], index: 12, kind: input, shape index: {}]   ;;  %s7451_s10 = inlined_call_operand.vmem [shape: f32[9,18,18], index: 10, kind: input, shape index: {}]   ;;  %s7452_s13 = inlined_call_operand.vmem [shape: f32[1,64], index: 13, kind: input, shape index: {}]   ;;  %s7453_s14 = inlined_call_operand.vmem [shape: f32[9,64,128], index: 14, kind: input, shape index: {}]   ;;  %s7454_s15 = inlined_call_operand.vmem [shape: f32[1,128], index: 15, kind: input, shape index: {}]   ;;  %s7455_s5 = inlined_call_operand.vmem [shape: f32[1,128], index: 5, kind: input, shape index: {}]   ;;  %s7456_s6 = inlined_call_operand.vmem [shape: f32[1,128], index: 6, kind: input, shape index: {}]   ;;  %s7457_s16 = inlined_call_operand.vmem [shape: f32[9,128,256], index: 16, kind: input, shape index: {}]   ;;  %s7458_s17 = inlined_call_operand.vmem [shape: f32[1,256], index: 17, kind: input, shape index: {}]   ;;  %s7459_s18 = inlined_call_operand.vmem [shape: f32[256,128], index: 18, kind: input, shape index: {}]   ;;  %s7460_s7 = inlined_call_operand.vmem [shape: f32[1,256], index: 7, kind: input, shape index: {}]   ;;  %s7461_s8 = inlined_call_operand.vmem [shape: f32[1,256], index: 8, kind: input, shape index: {}]   ;;  %s7462_s11 = inlined_call_operand.vmem [shape: f32[2,18], index: 11, kind: input, shape index: {}]   ;;  %s7463_s19 = inlined_call_operand.vmem [shape: f32[1,128], index: 19, kind: input, shape index: {}]   ;;  %s7464_s20 = inlined_call_operand.vmem [shape: f32[128,64], index: 20, kind: input, shape index: {}]   ;;  %s7465_s21 = inlined_call_operand.vmem [shape: f32[1,64], index: 21, kind: input, shape index: {}]   ;;  %s7466_s22 = inlined_call_operand.vmem [shape: f32[64,1], index: 22, kind: input, shape index: {}]   ;;  %s7467_s23 = inlined_call_operand.<no memory space> [shape: f32[1,1], index: 23, kind: input, shape index: {}]   ;;  %s7468_s24 = inlined_call_operand.vmem [shape: f32[2,1], index: 24, kind: output, shape index: {}]  }
   0x1   :  { %7476 = sst [smem:[#allocation3_spill]] %s7444_s1  ;;  %vm871_vm12 = vcmask 146432  }
   0x2   :  { %7477 = sst [smem:[#allocation4_spill]] %s7445_s2 }
   0x3   :  { %7478 = sst [smem:[#allocation5_spill]] %s7446_s0 }
   0x4   :  { %7479 = sst [smem:[#allocation6_spill]] %s7447_s3 }
   0x5   :  { %7480 = sst [smem:[#allocation7_spill]] %s7448_s4 }
   0x6   :  { %7481 = sst [smem:[#allocation8_spill]] %s7449_s9 }
   0x7   :  { %7482 = sst [smem:[#allocation9_spill]] %s7450_s12 }
   0x8   :  { %7483 = sst [smem:[#allocation10_spill]] %s7451_s10 }
   0x9   :  { %7484 = sst [smem:[#allocation11_spill]] %s7452_s13 }
   0xa   :  { %s7485_s27 = sld [smem:[#allocation3_spill]] }
   0xb   :  { %s7486_s25 = sld [smem:[#allocation5_spill]] }
   0xc   :  { %s7487_s29 = sld [smem:[#allocation4_spill]] }
   0xd   :  { %s7488_s30 = sld [smem:[#allocation6_spill]] }
   0xe   :  { %s7489_s4 = sld [smem:[#allocation7_spill]] }
   0xf   :  { %s7490_s26 = sld [smem:[#allocation8_spill]] }
  0x10   :  { %v122_v0 = vld [vmem:[%s7485_s27 + $0x70] sm:$0xff]  ;;  %v123_v1 = vld [vmem:[%s7485_s27 + $0x78] sm:$0xff]  ;;  %v120_v5 = vld [vmem:[%s7485_s27 + $0x60] sm:$0xff]  ;;  %s7492_s12 = sld [smem:[#allocation10_spill]] }
  0x11   :  { %v138_v2 = vld [vmem:[%s7485_s27 + $0xf0] sm:$0xff]  ;;  %v161_v3 = vpack.c.bf16 %v123_v1, %v122_v0  ;;  %v139_v4 = vld [vmem:[%s7485_s27 + $0xf8] sm:$0xff]  ;;  %v121_v6 = vld [vmem:[%s7485_s27 + $0x68] sm:$0xff] }
  0x12   :  { %v169_v7 = vpack.c.bf16 %v139_v4, %v138_v2  ;;  %v136_v8 = vld [vmem:[%s7485_s27 + $0xe0] sm:$0xff]  ;;  %v137_v9 = vld [vmem:[%s7485_s27 + $0xe8] sm:$0xff]  ;;  %v160_v10 = vpack.c.bf16 %v121_v6, %v120_v5  ;;  %v118_v12 = vld [vmem:[%s7485_s27 + $0x50] sm:$0xff] }
  0x13   :  { %174 = vmatpush.bf16.msra.mxu0 %v161_v3  ;;  %v168_v11 = vpack.c.bf16 %v137_v9, %v136_v8  ;;  %v119_v13 = vld [vmem:[%s7485_s27 + $0x58] sm:$0xff]  ;;  %v134_v14 = vld [vmem:[%s7485_s27 + $0xd0] sm:$0xff]  ;;  %v116_v18 = vld [vmem:[%s7485_s27 + $0x40] sm:$0xff] }
  0x14   :  { %217 = vmatpush.bf16.msra.mxu1 %v169_v7  ;;  %v135_v15 = vld [vmem:[%s7485_s27 + $0xd8] sm:$0xff]  ;;  %v159_v16 = vpack.c.bf16 %v119_v13, %v118_v12  ;;  %v117_v19 = vld [vmem:[%s7485_s27 + $0x48] sm:$0xff]  ;;  %v132_v20 = vld [vmem:[%s7485_s27 + $0xc0] sm:$0xff] }
  0x15   :  { %v167_v17 = vpack.c.bf16 %v135_v15, %v134_v14  ;;  %v133_v21 = vld [vmem:[%s7485_s27 + $0xc8] sm:$0xff]  ;;  %v158_v22 = vpack.c.bf16 %v117_v19, %v116_v18  ;;  %v114_v24 = vld [vmem:[%s7485_s27 + $0x30] sm:$0xff]  ;;  %v115_v25 = vld [vmem:[%s7485_s27 + $0x38] sm:$0xff] }
  0x16   :  { %v166_v23 = vpack.c.bf16 %v133_v21, %v132_v20  ;;  %v130_v26 = vld [vmem:[%s7485_s27 + $0xb0] sm:$0xff]  ;;  %v131_v27 = vld [vmem:[%s7485_s27 + $0xb8] sm:$0xff]  ;;  %v157_v28 = vpack.c.bf16 %v115_v25, %v114_v24  ;;  %v112_v30 = vld [vmem:[%s7485_s27 + $0x20] sm:$0xff] }
  0x17   :  { %175 = vmatpush.bf16.msra.mxu0 %v160_v10  ;;  %v165_v29 = vpack.c.bf16 %v131_v27, %v130_v26  ;;  %v113_v31 = vld [vmem:[%s7485_s27 + $0x28] sm:$0xff]  ;;  %v128_v32 = vld [vmem:[%s7485_s27 + $0xa0] sm:$0xff]  ;;  %v110_v36 = vld [vmem:[%s7485_s27 + $0x10] sm:$0xff] }
  0x18   :  { %218 = vmatpush.bf16.msra.mxu1 %v168_v11  ;;  %v129_v33 = vld [vmem:[%s7485_s27 + $0xa8] sm:$0xff]  ;;  %v156_v34 = vpack.c.bf16 %v113_v31, %v112_v30  ;;  %v111_v37 = vld [vmem:[%s7485_s27 + $0x18] sm:$0xff]  ;;  %v126_v38 = vld [vmem:[%s7485_s27 + $0x90] sm:$0xff] }
  0x19   :  { %v164_v35 = vpack.c.bf16 %v129_v33, %v128_v32  ;;  %v127_v39 = vld [vmem:[%s7485_s27 + $0x98] sm:$0xff]  ;;  %v155_v40 = vpack.c.bf16 %v111_v37, %v110_v36  ;;  %v108_v42 = vld [vmem:[%s7485_s27] sm:$0xff]  ;;  %v109_v43 = vld [vmem:[%s7485_s27 + $0x8] sm:$0xff] }
  0x1a   :  { %v163_v41 = vpack.c.bf16 %v127_v39, %v126_v38  ;;  %v124_v44 = vld [vmem:[%s7485_s27 + $0x80] sm:$0xff]  ;;  %v125_v45 = vld [vmem:[%s7485_s27 + $0x88] sm:$0xff]  ;;  %v154_v46 = vpack.c.bf16 %v109_v43, %v108_v42  ;;  %v84_v48 = vld [vmem:[%s7486_s25 + $0x10] sm:$0xff] }
  0x1b   :  { %176 = vmatpush.bf16.msra.mxu0 %v159_v16  ;;  %v82_v47 = vld [vmem:[%s7486_s25] sm:$0xff]  ;;  %v162_v49 = vpack.c.bf16 %v125_v45, %v124_v44  ;;  %v83_v50 = vld [vmem:[%s7486_s25 + $0x8] sm:$0xff]  ;;  %v85_v51 = vld [vmem:[%s7486_s25 + $0x18] sm:$0xff] }
  0x1c   :  { %219 = vmatpush.bf16.msra.mxu1 %v167_v17  ;;  %v140_v52 = vpack.c.bf16 %v84_v48, %v82_v47  ;;  %v141_v53 = vpack.c.bf16 %v85_v51, %v83_v50  ;;  %v86_v54 = vld [vmem:[%s7486_s25 + $0x20] sm:$0xff]  ;;  %v88_v55 = vld [vmem:[%s7486_s25 + $0x30] sm:$0xff]  ;;  %v87_v56 = vld [vmem:[%s7486_s25 + $0x28] sm:$0xff] }
  0x1d   :  { %v89_v57 = vld [vmem:[%s7486_s25 + $0x38] sm:$0xff]  ;;  %v142_v58 = vpack.c.bf16 %v88_v55, %v86_v54  ;;  %v90_v60 = vld [vmem:[%s7486_s25 + $0x40] sm:$0xff]  ;;  %v92_v61 = vld [vmem:[%s7486_s25 + $0x50] sm:$0xff] }
  0x1e   :  { %v143_v59 = vpack.c.bf16 %v89_v57, %v87_v56  ;;  %v91_v62 = vld [vmem:[%s7486_s25 + $0x48] sm:$0xff]  ;;  %v93_v63 = vld [vmem:[%s7486_s25 + $0x58] sm:$0xff]  ;;  %v144_v0 = vpack.c.bf16 %v92_v61, %v90_v60  ;;  %v94_v2 = vld [vmem:[%s7486_s25 + $0x60] sm:$0xff] }
  0x1f   :  { %177 = vmatpush.bf16.msra.mxu0 %v158_v22  ;;  %v145_v1 = vpack.c.bf16 %v93_v63, %v91_v62  ;;  %v96_v3 = vld [vmem:[%s7486_s25 + $0x70] sm:$0xff]  ;;  %v95_v4 = vld [vmem:[%s7486_s25 + $0x68] sm:$0xff]  ;;  %v97_v5 = vld [vmem:[%s7486_s25 + $0x78] sm:$0xff] }
  0x20   :  { %220 = vmatpush.bf16.msra.mxu1 %v166_v23  ;;  %v146_v6 = vpack.c.bf16 %v96_v3, %v94_v2  ;;  %v147_v7 = vpack.c.bf16 %v97_v5, %v95_v4  ;;  %v98_v8 = vld [vmem:[%s7486_s25 + $0x80] sm:$0xff]  ;;  %v100_v9 = vld [vmem:[%s7486_s25 + $0x90] sm:$0xff]  ;;  %v99_v10 = vld [vmem:[%s7486_s25 + $0x88] sm:$0xff] }
  0x21   :  { %v101_v11 = vld [vmem:[%s7486_s25 + $0x98] sm:$0xff]  ;;  %v148_v12 = vpack.c.bf16 %v100_v9, %v98_v8  ;;  %v102_v14 = vld [vmem:[%s7486_s25 + $0xa0] sm:$0xff]  ;;  %v104_v15 = vld [vmem:[%s7486_s25 + $0xb0] sm:$0xff] }
  0x22   :  { %v149_v13 = vpack.c.bf16 %v101_v11, %v99_v10  ;;  %v103_v16 = vld [vmem:[%s7486_s25 + $0xa8] sm:$0xff]  ;;  %v105_v17 = vld [vmem:[%s7486_s25 + $0xb8] sm:$0xff]  ;;  %v150_v18 = vpack.c.bf16 %v104_v15, %v102_v14  ;;  %v106_v20 = vld [vmem:[%s7486_s25 + $0xc0] sm:$0x3] }
  0x23   :  { %178 = vmatpush.bf16.msra.mxu0 %v157_v28  ;;  %v151_v19 = vpack.c.bf16 %v105_v17, %v103_v16  ;;  %v107_v21 = vld [vmem:[%s7486_s25 + $0xc8] sm:$0x3]  ;;  %v152_v22 = vpack.c.bf16 %v106_v20, %v106_v20 }
  0x24   :  { %221 = vmatpush.bf16.msra.mxu1 %v165_v29  ;;  %v153_v23 = vpack.c.bf16 %v107_v21, %v107_v21 }
  0x27   :  { %179 = vmatpush.bf16.msra.mxu0 %v156_v34 }
  0x28   :  { %222 = vmatpush.bf16.msra.mxu1 %v164_v35 }
  0x2b   :  { %180 = vmatpush.bf16.msra.mxu0 %v155_v40  ;;  %v4707_v40 = vld [vmem:[%s7487_s29] ss:$0 sm:$0xff]  ;;  %s7491_s29 = sld [smem:[#allocation9_spill]] }
  0x2c   :  { %223 = vmatpush.bf16.msra.mxu1 %v163_v41 }
  0x2f   :  { %181 = vmatpush.bf16.msra.mxu0 %v154_v46 }
  0x30   :  { %224 = vmatpush.bf16.msra.mxu1 %v162_v49 }
  0x32   :  { %182 = vmatmul.bf16.vlgmr.msra.gmra.mxu0 %v140_v52 }
  0x33   :  { %225 = vmatmul.bf16.vlgmr.msra.gmra.mxu1 %v141_v53 }
  0x42   :  { %187 = vmatmul.bf16.gmra.mxu0 %v142_v58 }
  0x43   :  { %230 = vmatmul.bf16.gmra.mxu1 %v143_v59 }
  0x52   :  { %192 = vmatmul.bf16.gmra.mxu0 %v144_v0 }
  0x53   :  { %235 = vmatmul.bf16.gmra.mxu1 %v145_v1 }
  0x62   :  { %197 = vmatmul.bf16.gmra.mxu0 %v146_v6 }
  0x63   :  { %240 = vmatmul.bf16.gmra.mxu1 %v147_v7 }
  0x72   :  { %202 = vmatmul.bf16.gmra.mxu0 %v148_v12 }
  0x73   :  { %245 = vmatmul.bf16.gmra.mxu1 %v149_v13 }
  0x82   :  { %207 = vmatmul.bf16.gmra.mxu0 %v150_v18 }
  0x83   :  { %250 = vmatmul.bf16.gmra.mxu1 %v151_v19 }
  0x92   :  { %212 = vmatmul.bf16.gmra.mxu0 %v152_v22 }
  0x93   :  { %255 = vmatmul.bf16.gmra.mxu1 %v153_v23 }
  0xaf   :  { %v183_v24 = vpop.f32.mrf.mxu0 }
  0xb0   :  { %v226_v25 = vpop.f32.mrf.mxu1  ;;  %v184_v44 = vadd.f32 %v4707_v40, %v183_v24 }
  0xb2   :  { %v4715_v48 = vadd.f32 %v226_v25, %v184_v44 }
  0xb4   :  { %v260_v56 = vmax.f32 %v4715_v48, 0.0 }
  0xb6   :  { %v274_v0 = vsel %vm273_vm0, %v260_v56, 0.0 }
  0xb7   :  { %v185_v26 = vpop.f32.mrf.mxu0 }
  0xb8   :  { %v228_v27 = vpop.f32.mrf.mxu1  ;;  %v186_v43 = vadd.f32 %v4707_v40, %v185_v26 }
  0xba   :  { %v4712_v46 = vadd.f32 %v228_v27, %v186_v43 }
  0xbc   :  { %v261_v53 = vmax.f32 %v4712_v46, 0.0 }
  0xbe   :  { %v275_v60 = vsel %vm273_vm0, %v261_v53, 0.0 }
  0xbf   :  { %v188_v28 = vpop.f32.mrf.mxu0  ;;  %v276_v7 = vadd.f32 %v275_v60, %v274_v0 }
  0xc0   :  { %v231_v29 = vpop.f32.mrf.mxu1  ;;  %v189_v45 = vadd.f32 %v4707_v40, %v188_v28 }
  0xc2   :  { %v4717_v50 = vadd.f32 %v231_v29, %v189_v45  ;;  %v4403_v29 = vmov 98.0  }
  0xc3   :  { %4358 = vrcp.f32 %v4403_v29 }
  0xc4   :  { %v262_v57 = vmax.f32 %v4717_v50, 0.0 }
  0xc6   :  { %v277_v2 = vsel %vm273_vm0, %v262_v57, 0.0 }
  0xc7   :  { %v190_v30 = vpop.f32.mrf.mxu0  ;;  %v278_v12 = vadd.f32 %v277_v2, %v276_v7 }
  0xc8   :  { %v233_v31 = vpop.f32.mrf.mxu1  ;;  %v191_v47 = vadd.f32 %v4707_v40, %v190_v30 }
  0xca   :  { %v4721_v54 = vadd.f32 %v233_v31, %v191_v47 }
  0xcc   :  { %v263_v61 = vmax.f32 %v4721_v54, 0.0 }
  0xce   :  { %v279_v8 = vsel %vm273_vm0, %v263_v61, 0.0 }
  0xcf   :  { %v193_v32 = vpop.f32.mrf.mxu0  ;;  %v280_v17 = vadd.f32 %v279_v8, %v278_v12 }
  0xd0   :  { %v236_v33 = vpop.f32.mrf.mxu1  ;;  %v194_v51 = vadd.f32 %v4707_v40, %v193_v32 }
  0xd2   :  { %v4726_v58 = vadd.f32 %v236_v33, %v194_v51 }
  0xd4   :  { %v264_v3 = vmax.f32 %v4726_v58, 0.0 }
  0xd6   :  { %v281_v13 = vsel %vm273_vm0, %v264_v3, 0.0 }
  0xd7   :  { %v195_v34 = vpop.f32.mrf.mxu0  ;;  %v282_v21 = vadd.f32 %v281_v13, %v280_v17 }
  0xd8   :  { %v238_v35 = vpop.f32.mrf.mxu1  ;;  %v196_v55 = vadd.f32 %v4707_v40, %v195_v34 }
  0xda   :  { %v4733_v62 = vadd.f32 %v238_v35, %v196_v55 }
  0xdc   :  { %v265_v9 = vmax.f32 %v4733_v62, 0.0 }
  0xde   :  { %v283_v18 = vsel %vm273_vm0, %v265_v9, 0.0 }
  0xdf   :  { %v198_v36 = vpop.f32.mrf.mxu0  ;;  %v284_v28 = vadd.f32 %v283_v18, %v282_v21 }
  0xe0   :  { %v241_v37 = vpop.f32.mrf.mxu1  ;;  %v199_v59 = vadd.f32 %v4707_v40, %v198_v36 }
  0xe2   :  { %v4743_v4 = vadd.f32 %v241_v37, %v199_v59 }
  0xe4   :  { %v266_v14 = vmax.f32 %v4743_v4, 0.0 }
  0xe6   :  { %v285_v23 = vsel %vm273_vm0, %v266_v14, 0.0 }
  0xe7   :  { %v200_v38 = vpop.f32.mrf.mxu0  ;;  %v286_v33 = vadd.f32 %v285_v23, %v284_v28 }
  0xe8   :  { %v243_v39 = vpop.f32.mrf.mxu1  ;;  %v201_v63 = vadd.f32 %v4707_v40, %v200_v38 }
  0xea   :  { %v4750_v10 = vadd.f32 %v243_v39, %v201_v63  ;;  %v4359_v39 = vpop.eup %4358 }
  0xeb   :  { %vm311_vm2 = vweird.f32 %v4359_v39 }
  0xec   :  { %v267_v19 = vmax.f32 %v4750_v10, 0.0 }
  0xee   :  { %v287_v30 = vsel %vm273_vm0, %v267_v19, 0.0 }
  0xef   :  { %v203_v41 = vpop.f32.mrf.mxu0  ;;  %v288_v36 = vadd.f32 %v287_v30, %v286_v33 }
  0xf0   :  { %v246_v42 = vpop.f32.mrf.mxu1  ;;  %v204_v5 = vadd.f32 %v4707_v40, %v203_v41 }
  0xf2   :  { %v4757_v15 = vadd.f32 %v246_v42, %v204_v5 }
  0xf4   :  { %v268_v24 = vmax.f32 %v4757_v15, 0.0 }
  0xf6   :  { %v289_v34 = vsel %vm273_vm0, %v268_v24, 0.0 }
  0xf7   :  { %v205_v49 = vpop.f32.mrf.mxu0  ;;  %v290_v41 = vadd.f32 %v289_v34, %v288_v36 }
  0xf8   :  { %v248_v52 = vpop.f32.mrf.mxu1  ;;  %v206_v11 = vadd.f32 %v4707_v40, %v205_v49 }
  0xfa   :  { %v4764_v20 = vadd.f32 %v248_v52, %v206_v11  ;;  %v307_v52 = vmul.f32 98.0, %v4359_v39 }
  0xfc   :  { %v269_v31 = vmax.f32 %v4764_v20, 0.0  ;;  %v308_v0 = vsub.f32 1.0, %v307_v52 }
  0xfe   :  { %v291_v37 = vsel %vm273_vm0, %v269_v31, 0.0 }
  0xff   :  { %v208_v1 = vpop.f32.mrf.mxu0  ;;  %v292_v47 = vadd.f32 %v291_v37, %v290_v41 }
 0x100   :  { %v251_v6 = vpop.f32.mrf.mxu1  ;;  %v209_v16 = vadd.f32 %v4707_v40, %v208_v1 }
 0x102   :  { %v4770_v25 = vadd.f32 %v251_v6, %v209_v16 }
 0x104   :  { %v270_v35 = vmax.f32 %v4770_v25, 0.0 }
 0x106   :  { %v293_v43 = vsel %vm273_vm0, %v270_v35, 0.0 }
 0x107   :  { %v210_v22 = vpop.f32.mrf.mxu0  ;;  %v294_v55 = vadd.f32 %v293_v43, %v292_v47 }
 0x108   :  { %v211_v26 = vadd.f32 %v4707_v40, %v210_v22  ;;  %v253_v27 = vpop.f32.mrf.mxu1 }
 0x10a   :  { %v4777_v32 = vadd.f32 %v253_v27, %v211_v26 }
 0x10c   :  { %v271_v38 = vmax.f32 %v4777_v32, 0.0 }
 0x10e   :  { %v295_v49 = vsel %vm273_vm0, %v271_v38, 0.0 }
 0x10f   :  { %v213_v42 = vpop.f32.mrf.mxu0  ;;  %v296_v60 = vadd.f32 %v295_v49, %v294_v55 }
 0x110   :  { %v214_v44 = vadd.f32 %v4707_v40, %v213_v42  ;;  %v256_v45 = vpop.f32.mrf.mxu1  ;;  %v309_v40 = vmul.f32 %v4359_v39, %v308_v0 }
 0x112   :  { %v257_v51 = vadd.f32 %v256_v45, %v214_v44  ;;  %v310_v11 = vadd.f32 %v4359_v39, %v309_v40 }
 0x114   :  { %v272_v59 = vmax.f32 %v257_v51, 0.0  ;;  %v312_v16 = vsel %vm311_vm2, %v4359_v39, %v310_v11 }
 0x116   :  { %v298_v63 = vsel %vm297_vm1, %v272_v59, 0.0 }
 0x117   :  { %v299_v1 = vadd.f32 %v298_v63, %v296_v60  ;;  %v215_v2 = vpop.f32.mrf.mxu0 }
 0x118   :  { %v258_v5 = vpop.f32.mrf.mxu1 }
 0x119   :  { %v300_v6 = vrot.slane %v299_v1, 4 }
 0x11b   :  { %v301_v7 = vadd.f32 %v300_v6, %v299_v1 }
 0x11d   :  { %v302_v8 = vrot.slane %v301_v7, 2 }
 0x11f   :  { %v303_v12 = vadd.f32 %v302_v8, %v301_v7 }
 0x121   :  { %v304_v13 = vrot.slane %v303_v12, 1 }
 0x123   :  { %v305_v17 = vadd.f32 %v304_v13, %v303_v12 }
 0x125   :  { %v313_v18 = vmul.f32 %v312_v16, %v305_v17 }
 0x127   :  { %v4797_v21 = vsub.f32 %v260_v56, %v313_v18  ;;  %v4801_v22 = vsub.f32 %v261_v53, %v313_v18  ;;  %v4805_v23 = vsub.f32 %v262_v57, %v313_v18  ;;  %v4809_v26 = vsub.f32 %v263_v61, %v313_v18 }
 0x128   :  { %v4817_v56 = vsub.f32 %v264_v3, %v313_v18  ;;  %v4823_v50 = vsub.f32 %v265_v9, %v313_v18  ;;  %v4831_v58 = vsub.f32 %v266_v14, %v313_v18  ;;  %v4838_v9 = vsub.f32 %v267_v19, %v313_v18 }
 0x129   :  { %v327_v27 = vmul.f32 %v4797_v21, %v4797_v21  ;;  %v328_v48 = vmul.f32 %v4801_v22, %v4801_v22  ;;  %v329_v46 = vmul.f32 %v4805_v23, %v4805_v23  ;;  %v330_v53 = vmul.f32 %v4809_v26, %v4809_v26 }
 0x12a   :  { %v331_v3 = vmul.f32 %v4817_v56, %v4817_v56  ;;  %v332_v29 = vmul.f32 %v4823_v50, %v4823_v50  ;;  %v4845_v4 = vsub.f32 %v268_v24, %v313_v18  ;;  %v333_v14 = vmul.f32 %v4831_v58, %v4831_v58 }
 0x12b   :  { %v340_v54 = vsel %vm273_vm0, %v327_v27, 0.0  ;;  %v341_v57 = vsel %vm273_vm0, %v328_v48, 0.0  ;;  %v343_v28 = vsel %vm273_vm0, %v329_v46, 0.0  ;;  %v345_v30 = vsel %vm273_vm0, %v330_v53, 0.0 }
 0x12c   :  { %v342_v61 = vadd.f32 %v341_v57, %v340_v54  ;;  %v347_v34 = vsel %vm273_vm0, %v331_v3, 0.0  ;;  %v323_v10 = vsub.f32 %v269_v31, %v313_v18  ;;  %v334_v19 = vmul.f32 %v4838_v9, %v4838_v9 }
 0x12d   :  { %v349_v37 = vsel %vm273_vm0, %v332_v29, 0.0  ;;  %v324_v15 = vsub.f32 %v270_v35, %v313_v18  ;;  %v335_v24 = vmul.f32 %v4845_v4, %v4845_v4  ;;  %v351_v41 = vsel %vm273_vm0, %v333_v14, 0.0 }
 0x12e   :  { %v344_v62 = vadd.f32 %v343_v28, %v342_v61  ;;  %v325_v43 = vsub.f32 %v271_v38, %v313_v18  ;;  %v336_v20 = vmul.f32 %v323_v10, %v323_v10  ;;  %v353_v31 = vsel %vm273_vm0, %v334_v19, 0.0 }
 0x12f   :  { %v326_v45 = vsub.f32 %v272_v59, %v313_v18  ;;  %v337_v47 = vmul.f32 %v324_v15, %v324_v15  ;;  %v355_v49 = vsel %vm273_vm0, %v335_v24, 0.0 }
 0x130   :  { %v346_v33 = vadd.f32 %v345_v30, %v344_v62  ;;  %v338_v25 = vmul.f32 %v325_v43, %v325_v43  ;;  %v357_v35 = vsel %vm273_vm0, %v336_v20, 0.0  ;;  %v4878_v62 = vld [vmem:[%s7488_s30] ss:$0 sm:$0xff] }
 0x131   :  { %v339_v55 = vmul.f32 %v326_v45, %v326_v45  ;;  %v359_v60 = vsel %vm273_vm0, %v337_v47, 0.0 }
 0x132   :  { %v348_v36 = vadd.f32 %v347_v34, %v346_v33  ;;  %v361_v32 = vsel %vm273_vm0, %v338_v25, 0.0 }
 0x133   :  { %v363_v0 = vsel %vm297_vm1, %v339_v55, 0.0  ;;  %v3726_v55 = vld [vmem:[%s7490_s26 + $0x18] sm:$0xff] }
 0x134   :  { %v350_v39 = vadd.f32 %v349_v37, %v348_v36 }
 0x136   :  { %v352_v42 = vadd.f32 %v351_v41, %v350_v39 }
 0x138   :  { %v354_v44 = vadd.f32 %v353_v31, %v352_v42 }
 0x13a   :  { %v356_v51 = vadd.f32 %v355_v49, %v354_v44 }
 0x13c   :  { %v358_v52 = vadd.f32 %v357_v35, %v356_v51 }
 0x13e   :  { %v360_v63 = vadd.f32 %v359_v60, %v358_v52  ;;  %v428_v52 = vld [vmem:[%s7490_s26] sm:$0xff]  ;;  %v429_v60 = vld [vmem:[%s7490_s26 + $0x8] sm:$0xff] }
 0x140   :  { %v362_v38 = vadd.f32 %v361_v32, %v360_v63  ;;  %v3727_v63 = vld [vmem:[%s7490_s26 + $0x20] sm:$0xff]  ;;  %v430_v32 = vld [vmem:[%s7490_s26 + $0x10] sm:$0x3] }
 0x142   :  { %v364_v1 = vadd.f32 %v363_v0, %v362_v38  ;;  %v3728_v38 = vld [vmem:[%s7490_s26 + $0x28] sm:$0x3]  ;;  %v3733_v0 = vld [vmem:[%s7490_s26 + $0x30] sm:$0xff] }
 0x144   :  { %v365_v2 = vrot.slane %v364_v1, 4 }
 0x146   :  { %v366_v59 = vadd.f32 %v365_v2, %v364_v1  ;;  %v3740_v1 = vld [vmem:[%s7490_s26 + $0x48] sm:$0xff]  ;;  %v3734_v2 = vld [vmem:[%s7490_s26 + $0x38] sm:$0xff] }
 0x148   :  { %v367_v5 = vrot.slane %v366_v59, 2 }
 0x14a   :  { %v368_v6 = vadd.f32 %v367_v5, %v366_v59  ;;  %v3741_v59 = vld [vmem:[%s7490_s26 + $0x50] sm:$0xff]  ;;  %v3735_v5 = vld [vmem:[%s7490_s26 + $0x40] sm:$0x3] }
 0x14c   :  { %v369_v40 = vrot.slane %v368_v6, 1 }
 0x14e   :  { %v370_v7 = vadd.f32 %v369_v40, %v368_v6  ;;  %v3742_v6 = vld [vmem:[%s7490_s26 + $0x58] sm:$0x3]  ;;  %v3747_v40 = vld [vmem:[%s7490_s26 + $0x60] sm:$0xff] }
 0x150   :  { %v371_v8 = vmul.f32 %v370_v7, %v312_v16  ;;  %v3754_v7 = vld [vmem:[%s7490_s26 + $0x78] sm:$0xff] }
 0x152   :  { %v372_v11 = vadd.f32 1e-05, %v371_v8  ;;  %v3748_v8 = vld [vmem:[%s7490_s26 + $0x68] sm:$0xff] }
 0x154   :  { %4360 = vrsqrt.f32 %v372_v11  ;;  %vm379_vm4 = vweird.f32 %v372_v11 }
 0x15a   :  { %v4361_v12 = vpop.eup %4360 }
 0x15b   :  { %v374_v13 = vmul.f32 %v4361_v12, %v372_v11  ;;  %vm380_vm3 = vweird.f32 %v4361_v12  ;;  %v3755_v11 = vld [vmem:[%s7490_s26 + $0x80] sm:$0xff] }
 0x15c   :  { %vm381_vm5 = vmor %vm379_vm4, %vm380_vm3 }
 0x15d   :  { %v375_v17 = vmul.f32 %v4361_v12, %v374_v13  ;;  %v3756_v13 = vld [vmem:[%s7490_s26 + $0x88] sm:$0x3] }
 0x15f   :  { %v376_v18 = vmul.f32 0.5, %v375_v17  ;;  %v3768_v17 = vld [vmem:[%s7490_s26 + $0xa8] sm:$0xff] }
 0x161   :  { %v377_v27 = vsub.f32 1.5, %v376_v18  ;;  %v3761_v18 = vld [vmem:[%s7490_s26 + $0x90] sm:$0xff] }
 0x163   :  { %v378_v48 = vmul.f32 %v4361_v12, %v377_v27  ;;  %v3769_v27 = vld [vmem:[%s7490_s26 + $0xb0] sm:$0xff] }
 0x165   :  { %v382_v46 = vsel %vm381_vm5, %v4361_v12, %v378_v48  ;;  %v3749_v12 = vld [vmem:[%s7490_s26 + $0x70] sm:$0x3]  ;;  %v3762_v48 = vld [vmem:[%s7490_s26 + $0x98] sm:$0xff] }
 0x166   :  { %v383_v53 = vmul.f32 %v382_v46, %v4797_v21  ;;  %v384_v54 = vmul.f32 %v382_v46, %v4801_v22  ;;  %v385_v57 = vmul.f32 %v382_v46, %v4805_v23  ;;  %v386_v16 = vmul.f32 %v382_v46, %v4809_v26  ;;  %v4883_v22 = vld [vmem:[%s7489_s4] ss:$0 sm:$0xff] }
 0x167   :  { %v387_v61 = vmul.f32 %v382_v46, %v4817_v56  ;;  %v388_v3 = vmul.f32 %v382_v46, %v4823_v50  ;;  %v389_v28 = vmul.f32 %v382_v46, %v4831_v58  ;;  %v394_v29 = vmul.f32 %v382_v46, %v325_v43 }
 0x168   :  { %v395_v30 = vmul.f32 %v382_v46, %v326_v45  ;;  %v393_v21 = vmul.f32 %v382_v46, %v324_v15  ;;  %v392_v26 = vmul.f32 %v382_v46, %v323_v10  ;;  %v391_v50 = vmul.f32 %v382_v46, %v4845_v4 }
 0x169   :  { %v410_v56 = vmul.f32 %v4878_v62, %v394_v29  ;;  %v390_v14 = vmul.f32 %v382_v46, %v4838_v9  ;;  %v405_v37 = vmul.f32 %v4878_v62, %v389_v28  ;;  %v404_v15 = vmul.f32 %v4878_v62, %v388_v3  ;;  %v3770_v46 = vld [vmem:[%s7490_s26 + $0xb8] sm:$0x3] }
 0x16a   :  { %v411_v23 = vmul.f32 %v4878_v62, %v395_v30  ;;  %v409_v58 = vmul.f32 %v4878_v62, %v393_v21  ;;  %v408_v34 = vmul.f32 %v4878_v62, %v392_v26  ;;  %v407_v4 = vmul.f32 %v4878_v62, %v391_v50 }
 0x16b   :  { %v4895_v36 = vadd.f32 %v4883_v22, %v410_v56  ;;  %v406_v9 = vmul.f32 %v4878_v62, %v390_v14  ;;  %v403_v41 = vmul.f32 %v4878_v62, %v387_v61  ;;  %v4927_v42 = vadd.f32 %v4883_v22, %v405_v37 }
 0x16c   :  { %v4890_v33 = vadd.f32 %v4883_v22, %v411_v23  ;;  %v4903_v10 = vadd.f32 %v4883_v22, %v409_v58  ;;  %v4909_v19 = vadd.f32 %v4883_v22, %v408_v34  ;;  %v4915_v39 = vadd.f32 %v4883_v22, %v407_v4 }
 0x16d   :  { %v4921_v24 = vadd.f32 %v4883_v22, %v406_v9  ;;  %v402_v43 = vmul.f32 %v4878_v62, %v386_v16  ;;  %v4933_v20 = vadd.f32 %v4883_v22, %v404_v15  ;;  %v401_v31 = vmul.f32 %v4878_v62, %v385_v57  ;;  %v3776_v57 = vld [vmem:[%s7490_s26 + $0xc8] sm:$0xff]  ;;  %v3777_v16 = vld [vmem:[%s7490_s26 + $0xd0] sm:$0x3] }
 0x16e   :  { %3722 = vmatpush.msk.msra.mxu2 %vm441_vm6, %v4890_v33  ;;  %3729 = vmatpush.msk.msra.mxu3 %vm441_vm6, %v4890_v33  ;;  %v4939_v44 = vadd.f32 %v4883_v22, %v403_v41  ;;  %v400_v45 = vmul.f32 %v4878_v62, %v384_v54  ;;  %v399_v49 = vmul.f32 %v4878_v62, %v383_v53  ;;  %v3763_v53 = vld [vmem:[%s7490_s26 + $0xa0] sm:$0x3] }
 0x16f   :  { %v4945_v47 = vadd.f32 %v4883_v22, %v402_v43  ;;  %v4951_v51 = vadd.f32 %v4883_v22, %v401_v31  ;;  %v3775_v54 = vld [vmem:[%s7490_s26 + $0xc0] sm:$0xff]  ;;  %s7493_s26 = sld [smem:[#allocation11_spill]] }
 0x170   :  { %449 = vmatpush.msra.mxu2 %v4895_v36  ;;  %488 = vmatpush.msra.mxu3 %v4895_v36  ;;  %v4958_v25 = vadd.f32 %v4883_v22, %v400_v45  ;;  %v4963_v35 = vadd.f32 %v4883_v22, %v399_v49 }
 0x172   :  { %450 = vmatpush.msra.mxu2 %v4903_v10  ;;  %489 = vmatpush.msra.mxu3 %v4903_v10 }
 0x174   :  { %451 = vmatpush.msra.mxu2 %v4909_v19  ;;  %490 = vmatpush.msra.mxu3 %v4909_v19 }
 0x176   :  { %452 = vmatpush.msra.mxu2 %v4915_v39  ;;  %491 = vmatpush.msra.mxu3 %v4915_v39 }
 0x178   :  { %453 = vmatpush.msra.mxu2 %v4921_v24  ;;  %492 = vmatpush.msra.mxu3 %v4921_v24 }
 0x17a   :  { %454 = vmatpush.msra.mxu2 %v4927_v42  ;;  %493 = vmatpush.msra.mxu3 %v4927_v42 }
 0x17c   :  { %455 = vmatpush.msra.mxu2 %v4933_v20  ;;  %494 = vmatpush.msra.mxu3 %v4933_v20 }
 0x17e   :  { %456 = vmatpush.msra.mxu2 %v4939_v44  ;;  %495 = vmatpush.msra.mxu3 %v4939_v44 }
 0x180   :  { %457 = vmatpush.msra.mxu2 %v4945_v47  ;;  %496 = vmatpush.msra.mxu3 %v4945_v47 }
 0x182   :  { %458 = vmatpush.msra.mxu2 %v4951_v51  ;;  %497 = vmatpush.msra.mxu3 %v4951_v51 }
 0x184   :  { %459 = vmatpush.msra.mxu2 %v4958_v25  ;;  %498 = vmatpush.msra.mxu3 %v4958_v25 }
 0x186   :  { %460 = vmatpush.msra.mxu2 %v4963_v35  ;;  %499 = vmatpush.msra.mxu3 %v4963_v35 }
 0x187   :  { %3723 = vmatmul.msk.f32.vlgmr.msra.gmra.mxu2 %vm431_vm7, %v428_v52  ;;  %3730 = vmatmul.msk.f32.vlgmr.msra.gmra.mxu3 %vm431_vm7, %v3726_v55 }
 0x188   :  { %3736 = vmatpush.msk.msrb.mxu2 %vm441_vm6, %v4890_v33  ;;  %3743 = vmatpush.msk.msrb.mxu3 %vm441_vm6, %v4890_v33 }
 0x18a   :  { %530 = vmatpush.msrb.mxu2 %v4895_v36  ;;  %572 = vmatpush.msrb.mxu3 %v4895_v36 }
 0x18c   :  { %531 = vmatpush.msrb.mxu2 %v4903_v10  ;;  %573 = vmatpush.msrb.mxu3 %v4903_v10 }
 0x18e   :  { %532 = vmatpush.msrb.mxu2 %v4909_v19  ;;  %574 = vmatpush.msrb.mxu3 %v4909_v19 }
 0x18f   :  { %3724 = vmatmul.msk.f32.gmra.mxu2 %vm431_vm7, %v429_v60  ;;  %3731 = vmatmul.msk.f32.gmra.mxu3 %vm431_vm7, %v3727_v63 }
 0x190   :  { %533 = vmatpush.msrb.mxu2 %v4915_v39  ;;  %575 = vmatpush.msrb.mxu3 %v4915_v39 }
 0x192   :  { %534 = vmatpush.msrb.mxu2 %v4921_v24  ;;  %576 = vmatpush.msrb.mxu3 %v4921_v24 }
 0x194   :  { %535 = vmatpush.msrb.mxu2 %v4927_v42  ;;  %577 = vmatpush.msrb.mxu3 %v4927_v42 }
 0x196   :  { %536 = vmatpush.msrb.mxu2 %v4933_v20  ;;  %578 = vmatpush.msrb.mxu3 %v4933_v20 }
 0x197   :  { %3725 = vmatmul.msk.f32.gmra.mxu2 %vm431_vm7, %v430_v32  ;;  %3732 = vmatmul.msk.f32.gmra.mxu3 %vm431_vm7, %v3728_v38 }
 0x198   :  { %537 = vmatpush.msrb.mxu2 %v4939_v44  ;;  %579 = vmatpush.msrb.mxu3 %v4939_v44 }
 0x19a   :  { %538 = vmatpush.msrb.mxu2 %v4945_v47  ;;  %580 = vmatpush.msrb.mxu3 %v4945_v47 }
 0x19c   :  { %539 = vmatpush.msrb.mxu2 %v4951_v51  ;;  %581 = vmatpush.msrb.mxu3 %v4951_v51 }
 0x19e   :  { %540 = vmatpush.msrb.mxu2 %v4958_v25  ;;  %582 = vmatpush.msrb.mxu3 %v4958_v25 }
 0x1a0   :  { %541 = vmatpush.msrb.mxu2 %v4963_v35  ;;  %583 = vmatpush.msrb.mxu3 %v4963_v35 }
 0x1a1   :  { %3737 = vmatmul.msk.f32.vlgmr.msrb.gmra.mxu2 %vm431_vm7, %v3733_v0  ;;  %3744 = vmatmul.msk.f32.vlgmr.msrb.gmra.mxu3 %vm431_vm7, %v3740_v1 }
 0x1a2   :  { %3757 = vmatpush.msk.msra.mxu3 %vm441_vm6, %v4890_v33  ;;  %3750 = vmatpush.msk.msra.mxu2 %vm441_vm6, %v4890_v33 }
 0x1a4   :  { %656 = vmatpush.msra.mxu3 %v4895_v36  ;;  %614 = vmatpush.msra.mxu2 %v4895_v36 }
 0x1a6   :  { %657 = vmatpush.msra.mxu3 %v4903_v10  ;;  %615 = vmatpush.msra.mxu2 %v4903_v10 }
 0x1a8   :  { %658 = vmatpush.msra.mxu3 %v4909_v19  ;;  %616 = vmatpush.msra.mxu2 %v4909_v19 }
 0x1a9   :  { %3738 = vmatmul.msk.f32.gmra.mxu2 %vm431_vm7, %v3734_v2  ;;  %3745 = vmatmul.msk.f32.gmra.mxu3 %vm431_vm7, %v3741_v59  ;;  %v4404_v59 = vmov 18.0  }
 0x1aa   :  { %659 = vmatpush.msra.mxu3 %v4915_v39  ;;  %617 = vmatpush.msra.mxu2 %v4915_v39  ;;  %4362 = vrcp.f32 %v4404_v59 }
 0x1ac   :  { %660 = vmatpush.msra.mxu3 %v4921_v24  ;;  %618 = vmatpush.msra.mxu2 %v4921_v24 }
 0x1ae   :  { %661 = vmatpush.msra.mxu3 %v4927_v42  ;;  %619 = vmatpush.msra.mxu2 %v4927_v42 }
 0x1b0   :  { %662 = vmatpush.msra.mxu3 %v4933_v20  ;;  %620 = vmatpush.msra.mxu2 %v4933_v20 }
 0x1b1   :  { %3739 = vmatmul.msk.f32.gmra.mxu2 %vm431_vm7, %v3735_v5  ;;  %3746 = vmatmul.msk.f32.gmra.mxu3 %vm431_vm7, %v3742_v6 }
 0x1b2   :  { %663 = vmatpush.msra.mxu3 %v4939_v44  ;;  %621 = vmatpush.msra.mxu2 %v4939_v44 }
 0x1b4   :  { %664 = vmatpush.msra.mxu3 %v4945_v47  ;;  %622 = vmatpush.msra.mxu2 %v4945_v47 }
 0x1b6   :  { %665 = vmatpush.msra.mxu3 %v4951_v51  ;;  %623 = vmatpush.msra.mxu2 %v4951_v51 }
 0x1b8   :  { %666 = vmatpush.msra.mxu3 %v4958_v25  ;;  %624 = vmatpush.msra.mxu2 %v4958_v25 }
 0x1ba   :  { %667 = vmatpush.msra.mxu3 %v4963_v35  ;;  %625 = vmatpush.msra.mxu2 %v4963_v35 }
 0x1bb   :  { %3751 = vmatmul.msk.f32.vlgmr.msra.gmra.mxu2 %vm431_vm7, %v3747_v40  ;;  %3758 = vmatmul.msk.f32.vlgmr.msra.gmra.mxu3 %vm431_vm7, %v3754_v7 }
 0x1bc   :  { %3771 = vmatpush.msk.msrb.mxu3 %vm441_vm6, %v4890_v33  ;;  %3764 = vmatpush.msk.msrb.mxu2 %vm441_vm6, %v4890_v33 }
 0x1be   :  { %740 = vmatpush.msrb.mxu3 %v4895_v36  ;;  %698 = vmatpush.msrb.mxu2 %v4895_v36 }
 0x1c0   :  { %741 = vmatpush.msrb.mxu3 %v4903_v10  ;;  %699 = vmatpush.msrb.mxu2 %v4903_v10 }
 0x1c2   :  { %742 = vmatpush.msrb.mxu3 %v4909_v19  ;;  %700 = vmatpush.msrb.mxu2 %v4909_v19 }
 0x1c3   :  { %3752 = vmatmul.msk.f32.gmra.mxu2 %vm431_vm7, %v3748_v8  ;;  %3759 = vmatmul.msk.f32.gmra.mxu3 %vm431_vm7, %v3755_v11 }
 0x1c4   :  { %743 = vmatpush.msrb.mxu3 %v4915_v39  ;;  %701 = vmatpush.msrb.mxu2 %v4915_v39 }
 0x1c6   :  { %744 = vmatpush.msrb.mxu3 %v4921_v24  ;;  %702 = vmatpush.msrb.mxu2 %v4921_v24 }
 0x1c8   :  { %745 = vmatpush.msrb.mxu3 %v4927_v42  ;;  %703 = vmatpush.msrb.mxu2 %v4927_v42 }
 0x1ca   :  { %746 = vmatpush.msrb.mxu3 %v4933_v20  ;;  %704 = vmatpush.msrb.mxu2 %v4933_v20 }
 0x1cb   :  { %3753 = vmatmul.msk.f32.gmra.mxu2 %vm431_vm7, %v3749_v12  ;;  %3760 = vmatmul.msk.f32.gmra.mxu3 %vm431_vm7, %v3756_v13 }
 0x1cc   :  { %747 = vmatpush.msrb.mxu3 %v4939_v44  ;;  %705 = vmatpush.msrb.mxu2 %v4939_v44 }
 0x1ce   :  { %748 = vmatpush.msrb.mxu3 %v4945_v47  ;;  %706 = vmatpush.msrb.mxu2 %v4945_v47 }
 0x1d0   :  { %749 = vmatpush.msrb.mxu3 %v4951_v51  ;;  %707 = vmatpush.msrb.mxu2 %v4951_v51 }
 0x1d2   :  { %750 = vmatpush.msrb.mxu3 %v4958_v25  ;;  %708 = vmatpush.msrb.mxu2 %v4958_v25 }
 0x1d4   :  { %751 = vmatpush.msrb.mxu3 %v4963_v35  ;;  %709 = vmatpush.msrb.mxu2 %v4963_v35 }
 0x1d5   :  { %3772 = vmatmul.msk.f32.vlgmr.msrb.gmra.mxu3 %vm431_vm7, %v3768_v17  ;;  %3765 = vmatmul.msk.f32.vlgmr.msrb.gmra.mxu2 %vm431_vm7, %v3761_v18  ;;  %v4363_v17 = vpop.eup %4362 }
 0x1d6   :  { %3778 = vmatpush.msk.msra.mxu2 %vm441_vm6, %v4890_v33  ;;  %vm826_vm8 = vweird.f32 %v4363_v17 }
 0x1d8   :  { %782 = vmatpush.msra.mxu2 %v4895_v36 }
 0x1da   :  { %783 = vmatpush.msra.mxu2 %v4903_v10 }
 0x1dc   :  { %784 = vmatpush.msra.mxu2 %v4909_v19 }
 0x1dd   :  { %3773 = vmatmul.msk.f32.gmra.mxu3 %vm431_vm7, %v3769_v27  ;;  %3766 = vmatmul.msk.f32.gmra.mxu2 %vm431_vm7, %v3762_v48 }
 0x1de   :  { %785 = vmatpush.msra.mxu2 %v4915_v39 }
 0x1e0   :  { %786 = vmatpush.msra.mxu2 %v4921_v24 }
 0x1e2   :  { %787 = vmatpush.msra.mxu2 %v4927_v42 }
 0x1e4   :  { %788 = vmatpush.msra.mxu2 %v4933_v20 }
 0x1e5   :  { %3774 = vmatmul.msk.f32.gmra.mxu3 %vm431_vm7, %v3770_v46  ;;  %3767 = vmatmul.msk.f32.gmra.mxu2 %vm431_vm7, %v3763_v53  ;;  %v822_v53 = vmul.f32 18.0, %v4363_v17 }
 0x1e6   :  { %789 = vmatpush.msra.mxu2 %v4939_v44 }
 0x1e8   :  { %790 = vmatpush.msra.mxu2 %v4945_v47 }
 0x1ea   :  { %791 = vmatpush.msra.mxu2 %v4951_v51 }
 0x1ec   :  { %792 = vmatpush.msra.mxu2 %v4958_v25 }
 0x1ee   :  { %793 = vmatpush.msra.mxu2 %v4963_v35 }
 0x1ef   :  { %3779 = vmatmul.msk.f32.vlgmr.msra.gmra.mxu2 %vm431_vm7, %v3775_v54 }
 0x1f7   :  { %3780 = vmatmul.msk.f32.gmra.mxu2 %vm431_vm7, %v3776_v57 }
 0x1ff   :  { %3781 = vmatmul.msk.f32.gmra.mxu2 %vm431_vm7, %v3777_v16  ;;  %v823_v16 = vsub.f32 1.0, %v822_v53 }
 0x20a   :  { %v462_v61 = vpop.f32.mrf.mxu2  ;;  %v501_v3 = vpop.f32.mrf.mxu3 }
 0x20b   :  { %v510_v39 = vmax.f32 %v462_v61, %v501_v3 }
 0x212   :  { %v465_v28 = vpop.f32.mrf.mxu2  ;;  %v504_v29 = vpop.f32.mrf.mxu3 }
 0x213   :  { %v511_v24 = vmax.f32 %v465_v28, %v504_v29  ;;  %v824_v28 = vmul.f32 %v4363_v17, %v823_v16 }
 0x21a   :  { %v468_v30 = vpop.f32.mrf.mxu2  ;;  %v507_v21 = vpop.f32.mrf.mxu3 }
 0x21b   :  { %v512_v45 = vmax.f32 %v468_v30, %v507_v21  ;;  %v825_v21 = vadd.f32 %v4363_v17, %v824_v28 }
 0x224   :  { %v543_v23 = vpop.f32.mrf.mxu2  ;;  %v585_v56 = vpop.f32.mrf.mxu3 }
 0x225   :  { %v552_v15 = vmax.f32 %v510_v39, %v543_v23 }
 0x227   :  { %v594_v42 = vmax.f32 %v552_v15, %v585_v56  ;;  %v5176_v56 = vsel %vm826_vm8, %v4363_v17, %v825_v21  ;;  %v5294_v21 = vld [vmem:[%s7492_s12 + $0x20] sm:$0xff] }
 0x22c   :  { %v546_v26 = vpop.f32.mrf.mxu2  ;;  %v588_v58 = vpop.f32.mrf.mxu3 }
 0x22d   :  { %v553_v43 = vmax.f32 %v511_v24, %v546_v26 }
 0x22f   :  { %v595_v44 = vmax.f32 %v553_v43, %v588_v58 }
 0x234   :  { %v549_v50 = vpop.f32.mrf.mxu2  ;;  %v591_v14 = vpop.f32.mrf.mxu3 }
 0x235   :  { %v554_v51 = vmax.f32 %v512_v45, %v549_v50  ;;  %v3795_v45 = vld [vmem:[%s7491_s29 + $0x50] sm:$0xff] }
 0x237   :  { %v596_v60 = vmax.f32 %v554_v51, %v591_v14 }
 0x23e   :  { %v627_v33 = vpop.f32.mrf.mxu2  ;;  %v669_v36 = vpop.f32.mrf.mxu3 }
 0x23f   :  { %v636_v31 = vmax.f32 %v594_v42, %v627_v33  ;;  %v3798_v42 = vld [vmem:[%s7491_s29 + $0x68] sm:$0xff] }
 0x241   :  { %v678_v47 = vmax.f32 %v636_v31, %v669_v36  ;;  %v3799_v36 = vld [vmem:[%s7491_s29 + $0x70] sm:$0xff] }
 0x246   :  { %v630_v34 = vpop.f32.mrf.mxu2  ;;  %v672_v10 = vpop.f32.mrf.mxu3 }
 0x247   :  { %v637_v49 = vmax.f32 %v595_v44, %v630_v34 }
 0x249   :  { %v679_v52 = vmax.f32 %v637_v49, %v672_v10 }
 0x24e   :  { %v633_v4 = vpop.f32.mrf.mxu2  ;;  %v675_v19 = vpop.f32.mrf.mxu3 }
 0x24f   :  { %v638_v38 = vmax.f32 %v596_v60, %v633_v4  ;;  %v3800_v4 = vld [vmem:[%s7491_s29 + $0x78] sm:$0xff] }
 0x251   :  { %v680_v5 = vmax.f32 %v638_v38, %v675_v19 }
 0x258   :  { %v711_v9 = vpop.f32.mrf.mxu2  ;;  %v753_v20 = vpop.f32.mrf.mxu3 }
 0x259   :  { %v720_v25 = vmax.f32 %v678_v47, %v711_v9  ;;  %v3796_v47 = vld [vmem:[%s7491_s29 + $0x58] sm:$0xff] }
 0x25a   :  { %v5206_v49 = vpack.c.bf16 %v3796_v47, %v3795_v45  ;;  %v913_v45 = vld [vmem:[%s7491_s29 + $0x18] sm:$0xff] }
 0x25b   :  { %v762_v63 = vmax.f32 %v720_v25, %v753_v20 }
 0x260   :  { %v714_v37 = vpop.f32.mrf.mxu2  ;;  %v756_v55 = vpop.f32.mrf.mxu3 }
 0x261   :  { %v721_v32 = vmax.f32 %v679_v52, %v714_v37  ;;  %v5185_v37 = vpack.c.bf16 %v3800_v4, %v3799_v36  ;;  %v3794_v52 = vld [vmem:[%s7491_s29 + $0x48] sm:$0xff]  ;;  %v3829_v4 = vld [vmem:[%s7491_s29 + $0xc0] sm:$0xff] }
 0x263   :  { %v763_v1 = vmax.f32 %v721_v32, %v756_v55  ;;  %988 = vmatpush.bf16.msrb.mxu1 %v5185_v37 }
 0x268   :  { %v717_v41 = vpop.f32.mrf.mxu2  ;;  %v759_v11 = vpop.f32.mrf.mxu3 }
 0x269   :  { %v722_v7 = vmax.f32 %v680_v5, %v717_v41  ;;  %v3797_v41 = vld [vmem:[%s7491_s29 + $0x60] sm:$0xff] }
 0x26a   :  { %v5197_v20 = vpack.c.bf16 %v3798_v42, %v3797_v41  ;;  %v915_v41 = vld [vmem:[%s7491_s29 + $0x28] sm:$0xff] }
 0x26b   :  { %v764_v27 = vmax.f32 %v722_v7, %v759_v11 }
 0x26c   :  { %989 = vmatpush.bf16.msrb.mxu1 %v5197_v20 }
 0x270   :  { %990 = vmatpush.bf16.msrb.mxu1 %v5206_v49 }
 0x272   :  { %v795_v35 = vpop.f32.mrf.mxu2 }
 0x273   :  { %v804_v0 = vmax.f32 %v762_v63, %v795_v35  ;;  %v3793_v35 = vld [vmem:[%s7491_s29 + $0x40] sm:$0xff] }
 0x274   :  { %v5215_v55 = vpack.c.bf16 %v3794_v52, %v3793_v35  ;;  %v910_v35 = vld [vmem:[%s7491_s29] sm:$0xff]  ;;  %v911_v52 = vld [vmem:[%s7491_s29 + $0x8] sm:$0xff] }
 0x275   :  { %v807_v6 = vmax.f32 %v804_v0, 0.0 }
 0x276   :  { %991 = vmatpush.bf16.msrb.mxu1 %v5215_v55 }
 0x277   :  { %v810_v12 = vsel %vm273_vm0, %v807_v6, 0.0 }
 0x27a   :  { %v798_v2 = vpop.f32.mrf.mxu2 }
 0x27b   :  { %v805_v40 = vmax.f32 %v763_v1, %v798_v2 }
 0x27d   :  { %v808_v8 = vmax.f32 %v805_v40, 0.0 }
 0x27f   :  { %v811_v13 = vsel %vm273_vm0, %v808_v8, 0.0 }
 0x280   :  { %v812_v18 = vadd.f32 %v811_v13, %v810_v12 }
 0x282   :  { %v801_v48 = vpop.f32.mrf.mxu2 }
 0x283   :  { %v806_v46 = vmax.f32 %v764_v27, %v801_v48 }
 0x285   :  { %v809_v54 = vmax.f32 %v806_v46, 0.0  ;;  %v3819_v46 = vld [vmem:[%s7491_s29 + $0xb8] sm:$0xff] }
 0x287   :  { %v813_v57 = vsel %vm297_vm1, %v809_v54, 0.0 }
 0x288   :  { %v814_v61 = vadd.f32 %v813_v57, %v812_v18  ;;  %v5257_v57 = vld [vmem:[%s7492_s12 + $0x28] sm:$0x3] }
 0x28a   :  { %v815_v3 = vrot.slane %v814_v61, 4 }
 0x28c   :  { %v816_v29 = vadd.f32 %v815_v3, %v814_v61  ;;  %v3835_v61 = vld [vmem:[%s7491_s29 + $0xf0] sm:$0xff]  ;;  %v3836_v3 = vld [vmem:[%s7491_s29 + $0xf8] sm:$0xff] }
 0x28d   :  { %v1160_v28 = vpack.c.bf16 %v3836_v3, %v3835_v61  ;;  %v3869_v3 = vld [vmem:[%s7491_s29 + $0x170] sm:$0xff] }
 0x28e   :  { %v817_v30 = vrot.slane %v816_v29, 2 }
 0x290   :  { %v818_v23 = vadd.f32 %v817_v30, %v816_v29  ;;  %v3833_v29 = vld [vmem:[%s7491_s29 + $0xe0] sm:$0xff]  ;;  %v3834_v30 = vld [vmem:[%s7491_s29 + $0xe8] sm:$0xff] }
 0x292   :  { %v819_v26 = vrot.slane %v818_v23, 1 }
 0x294   :  { %v820_v50 = vadd.f32 %v819_v26, %v818_v23  ;;  %v5299_v23 = vld [vmem:[%s7492_s12 + $0x30] sm:$0xff]  ;;  %v1159_v26 = vpack.c.bf16 %v3834_v30, %v3833_v29 }
 0x296   :  { %v828_v58 = vmul.f32 %v5176_v56, %v820_v50  ;;  %v5304_v50 = vld [vmem:[%s7492_s12 + $0x8] sm:$0xff] }
 0x298   :  { %v829_v33 = vsub.f32 %v807_v6, %v828_v58  ;;  %v830_v14 = vsub.f32 %v808_v8, %v828_v58  ;;  %v831_v34 = vsub.f32 %v809_v54, %v828_v58  ;;  %v5252_v54 = vld [vmem:[%s7492_s12 + $0x18] sm:$0xff]  ;;  %v3831_v58 = vld [vmem:[%s7491_s29 + $0xd0] sm:$0xff] }
 0x29a   :  { %v832_v10 = vmul.f32 %v829_v33, %v829_v33  ;;  %v833_v9 = vmul.f32 %v830_v14, %v830_v14  ;;  %v834_v19 = vmul.f32 %v831_v34, %v831_v34 }
 0x29c   :  { %v835_v39 = vsel %vm273_vm0, %v832_v10, 0.0  ;;  %v836_v15 = vsel %vm273_vm0, %v833_v9, 0.0  ;;  %v838_v43 = vsel %vm297_vm1, %v834_v19, 0.0  ;;  %v3830_v10 = vld [vmem:[%s7491_s29 + $0xc8] sm:$0xff]  ;;  %v5335_v19 = vld [vmem:[%s7492_s12 + $0x38] sm:$0xff] }
 0x29d   :  { %v837_v24 = vadd.f32 %v836_v15, %v835_v39  ;;  %v5340_v39 = vld [vmem:[%s7492_s12 + $0x10] sm:$0x3]  ;;  %v5353_v15 = vld [vmem:[%s7492_s12 + $0x40] sm:$0x3] }
 0x29f   :  { %v839_v31 = vadd.f32 %v838_v43, %v837_v24  ;;  %v914_v24 = vld [vmem:[%s7491_s29 + $0x20] sm:$0xff] }
 0x2a0   :  { %v922_v42 = vpack.c.bf16 %v915_v41, %v914_v24  ;;  %v3816_v43 = vld [vmem:[%s7491_s29 + $0xa0] sm:$0xff]  ;;  %v3864_v41 = vld [vmem:[%s7491_s29 + $0x148] sm:$0xff] }
 0x2a1   :  { %v840_v44 = vrot.slane %v839_v31, 4  ;;  %v3863_v24 = vld [vmem:[%s7491_s29 + $0x140] sm:$0xff] }
 0x2a3   :  { %v841_v51 = vadd.f32 %v840_v44, %v839_v31  ;;  %v912_v31 = vld [vmem:[%s7491_s29 + $0x10] sm:$0xff] }
 0x2a4   :  { %v921_v47 = vpack.c.bf16 %v913_v45, %v912_v31 }
 0x2a5   :  { %v842_v25 = vrot.slane %v841_v51, 2 }
 0x2a7   :  { %v843_v60 = vadd.f32 %v842_v25, %v841_v51  ;;  %v3815_v51 = vld [vmem:[%s7491_s29 + $0x98] sm:$0xff] }
 0x2a9   :  { %v844_v63 = vrot.slane %v843_v60, 1 }
 0x2ab   :  { %v845_v32 = vadd.f32 %v844_v63, %v843_v60  ;;  %v3812_v60 = vld [vmem:[%s7491_s29 + $0x80] sm:$0xff]  ;;  %v3813_v63 = vld [vmem:[%s7491_s29 + $0x88] sm:$0xff] }
 0x2ad   :  { %v846_v38 = vmul.f32 %v845_v32, %v5176_v56  ;;  %v1076_v32 = vpack.c.bf16 %v3813_v63, %v3812_v60 }
 0x2af   :  { %v847_v0 = vadd.f32 1e-05, %v846_v38  ;;  %v3852_v38 = vld [vmem:[%s7491_s29 + $0x130] sm:$0xff] }
 0x2b1   :  { %4364 = vrsqrt.f32 %v847_v0  ;;  %vm854_vm10 = vweird.f32 %v847_v0 }
 0x2b7   :  { %v4365_v1 = vpop.eup %4364 }
 0x2b8   :  { %v849_v2 = vmul.f32 %v4365_v1, %v847_v0  ;;  %vm855_vm9 = vweird.f32 %v4365_v1  ;;  %v3853_v0 = vld [vmem:[%s7491_s29 + $0x138] sm:$0xff] }
 0x2b9   :  { %vm856_vm11 = vmor %vm854_vm10, %vm855_vm9 }
 0x2ba   :  { %v850_v59 = vmul.f32 %v4365_v1, %v849_v2  ;;  %v3850_v2 = vld [vmem:[%s7491_s29 + $0x120] sm:$0xff] }
 0x2bc   :  { %v851_v5 = vmul.f32 0.5, %v850_v59  ;;  %v3851_v59 = vld [vmem:[%s7491_s29 + $0x128] sm:$0xff] }
 0x2be   :  { %v852_v6 = vsub.f32 1.5, %v851_v5  ;;  %v1240_v5 = vpack.c.bf16 %v3851_v59, %v3850_v2 }
 0x2c0   :  { %v853_v40 = vmul.f32 %v4365_v1, %v852_v6  ;;  %v3848_v6 = vld [vmem:[%s7491_s29 + $0x110] sm:$0xff] }
 0x2c2   :  { %v857_v7 = vsel %vm856_vm11, %v4365_v1, %v853_v40  ;;  %v1241_v1 = vpack.c.bf16 %v3853_v0, %v3852_v38  ;;  %v3849_v40 = vld [vmem:[%s7491_s29 + $0x118] sm:$0xff] }
 0x2c3   :  { %v858_v8 = vmul.f32 %v857_v7, %v829_v33  ;;  %v859_v11 = vmul.f32 %v857_v7, %v830_v14  ;;  %v860_v12 = vmul.f32 %v857_v7, %v831_v34  ;;  %v3832_v33 = vld [vmem:[%s7491_s29 + $0xd8] sm:$0xff]  ;;  %v916_v14 = vld [vmem:[%s7491_s29 + $0x30] sm:$0xff]  ;;  %v1239_v7 = vpack.c.bf16 %v3849_v40, %v3848_v6 }
 0x2c4   :  { %v917_v34 = vld [vmem:[%s7491_s29 + $0x38] sm:$0xff]  ;;  %v1158_v36 = vpack.c.bf16 %v3832_v33, %v3831_v58 }
 0x2c5   :  { %v862_v13 = vmul.f32 %v4878_v62, %v859_v11  ;;  %v863_v17 = vmul.f32 %v4878_v62, %v860_v12  ;;  %v861_v18 = vmul.f32 %v4878_v62, %v858_v8  ;;  %v3818_v62 = vld [vmem:[%s7491_s29 + $0xb0] sm:$0xff]  ;;  %v923_v9 = vpack.c.bf16 %v917_v34, %v916_v14  ;;  %v3846_v8 = vld [vmem:[%s7491_s29 + $0x100] sm:$0xff]  ;;  %v3847_v11 = vld [vmem:[%s7491_s29 + $0x108] sm:$0xff] }
 0x2c6   :  { %v1079_v16 = vpack.c.bf16 %v3819_v46, %v3818_v62  ;;  %v1238_v12 = vpack.c.bf16 %v3847_v11, %v3846_v8  ;;  %v3867_v14 = vld [vmem:[%s7491_s29 + $0x160] sm:$0xff]  ;;  %v3868_v34 = vld [vmem:[%s7491_s29 + $0x168] sm:$0xff] }
 0x2c7   :  { %v5223_v27 = vadd.f32 %v4883_v22, %v863_v17  ;;  %v5226_v48 = vadd.f32 %v4883_v22, %v862_v13  ;;  %v5243_v53 = vadd.f32 %v4883_v22, %v861_v18  ;;  %v5264_v22 = vld [vmem:[%s7492_s12] sm:$0xff] }
 0x2c9   :  { %3782 = vmatpush.msk.msra.mxu3 %vm441_vm6, %v5223_v27  ;;  %3789 = vmatpush.msk.msrb.mxu0 %vm441_vm6, %v5223_v27 }
 0x2ca   :  { %4339 = vmatpush.msk.msrb.mxu2 %vm441_vm6, %v5223_v27  ;;  %3825 = vmatpush.msk.msra.mxu1 %vm441_vm6, %v5223_v27 }
 0x2cb   :  { %898 = vmatpush.msra.mxu3 %v5226_v48  ;;  %951 = vmatpush.msrb.mxu0 %v5226_v48 }
 0x2cc   :  { %4340 = vmatpush.msrb.mxu2 %v5226_v48  ;;  %1134 = vmatpush.msra.mxu1 %v5226_v48 }
 0x2cd   :  { %899 = vmatpush.msra.mxu3 %v5243_v53  ;;  %952 = vmatpush.msrb.mxu0 %v5243_v53 }
 0x2ce   :  { %4341 = vmatpush.msrb.mxu2 %v5243_v53  ;;  %1135 = vmatpush.msra.mxu1 %v5243_v53 }
 0x2cf   :  { %3790 = vmatmul.msk.f32.vlgmr.msrb.gmra.mxu0 %vm871_vm12, %v5252_v54  ;;  %3792 = vmatmul.msk.f32.vlgmr.msrb.gmra.mxu2 %vm871_vm12, %v5257_v57 }
 0x2d0   :  { %3808 = vmatpush.msk.msra.mxu2 %vm441_vm6, %v5223_v27  ;;  %3783 = vmatmul.msk.f32.vlgmr.msra.gmra.mxu3 %vm871_vm12, %v5264_v22 }
 0x2d1   :  { %4342 = vmatpush.bf16.msrb.mxu3 %v5185_v37  ;;  %1090 = vmatpush.bf16.msra.mxu0 %v1079_v16  ;;  %v1157_v37 = vpack.c.bf16 %v3830_v10, %v3829_v4  ;;  %v1321_v4 = vpack.c.bf16 %v3868_v34, %v3867_v14  ;;  %v3865_v10 = vld [vmem:[%s7491_s29 + $0x150] sm:$0xff]  ;;  %v5589_v14 = vld [vmem:[%s7492_s12 + $0xa8] sm:$0xff] }
 0x2d2   :  { %1053 = vmatpush.msra.mxu2 %v5226_v48  ;;  %v5596_v34 = vld [vmem:[%s7492_s12 + $0xd0] sm:$0x3] }
 0x2d4   :  { %1054 = vmatpush.msra.mxu2 %v5243_v53 }
 0x2d5   :  { %4343 = vmatpush.bf16.msrb.mxu3 %v5197_v20  ;;  %v3817_v20 = vld [vmem:[%s7491_s29 + $0xa8] sm:$0xff] }
 0x2d6   :  { %1171 = vmatpush.bf16.msrb.mxu2 %v1160_v28  ;;  %v1078_v44 = vpack.c.bf16 %v3817_v20, %v3816_v43  ;;  %v3870_v28 = vld [vmem:[%s7491_s29 + $0x178] sm:$0xff]  ;;  %v1319_v20 = vpack.c.bf16 %v3864_v41, %v3863_v24  ;;  %v3884_v41 = vld [vmem:[%s7491_s29 + $0x1a0] sm:$0xff] }
 0x2d7   :  { %3791 = vmatmul.msk.f32.gmra.mxu0 %vm871_vm12, %v5294_v21  ;;  %3809 = vmatmul.msk.f32.vlgmr.msra.gmra.mxu2 %vm871_vm12, %v5299_v23 }
 0x2d8   :  { %3784 = vmatmul.msk.f32.gmra.mxu3 %vm871_vm12, %v5304_v50  ;;  %1091 = vmatpush.bf16.msra.mxu0 %v1078_v44 }
 0x2d9   :  { %4344 = vmatpush.bf16.msrb.mxu3 %v5206_v49  ;;  %v3814_v49 = vld [vmem:[%s7491_s29 + $0x90] sm:$0xff] }
 0x2da   :  { %1172 = vmatpush.bf16.msrb.mxu2 %v1159_v26  ;;  %v1077_v25 = vpack.c.bf16 %v3815_v51, %v3814_v49  ;;  %v1322_v26 = vpack.c.bf16 %v3870_v28, %v3869_v3  ;;  %v5484_v49 = vld [vmem:[%s7492_s12 + $0x78] sm:$0xff]  ;;  %v5491_v51 = vld [vmem:[%s7492_s12 + $0x60] sm:$0xff] }
 0x2db   :  { %v5559_v28 = vld [vmem:[%s7492_s12 + $0x98] sm:$0xff] }
 0x2dc   :  { %1092 = vmatpush.bf16.msra.mxu0 %v1077_v25  ;;  %v5496_v25 = vld [vmem:[%s7492_s12 + $0x80] sm:$0xff] }
 0x2dd   :  { %4345 = vmatpush.bf16.msrb.mxu3 %v5215_v55  ;;  %v920_v55 = vpack.c.bf16 %v911_v52, %v910_v35  ;;  %v5509_v35 = vld [vmem:[%s7492_s12 + $0x68] sm:$0xff] }
 0x2de   :  { %1173 = vmatpush.bf16.msrb.mxu2 %v1158_v36  ;;  %v5443_v36 = vld [vmem:[%s7492_s12 + $0x48] sm:$0xff] }
 0x2df   :  { %3810 = vmatmul.msk.f32.gmra.mxu2 %vm871_vm12, %v5335_v19  ;;  %v5514_v52 = vld [vmem:[%s7492_s12 + $0x88] sm:$0x3] }
 0x2e0   :  { %3785 = vmatmul.msk.f32.gmra.mxu3 %vm871_vm12, %v5340_v39  ;;  %1093 = vmatpush.bf16.msra.mxu0 %v1076_v32 }
 0x2e1   :  { %1012 = vmatpush.bf16.msra.mxu3 %v923_v9  ;;  %v3866_v9 = vld [vmem:[%s7491_s29 + $0x158] sm:$0xff] }
 0x2e2   :  { %1174 = vmatpush.bf16.msrb.mxu2 %v1157_v37  ;;  %v1320_v37 = vpack.c.bf16 %v3866_v9, %v3865_v10  ;;  %v5610_v10 = vld [vmem:[%s7492_s12 + $0xb8] sm:$0x3]  ;;  %v3886_v9 = vld [vmem:[%s7491_s29 + $0x1b0] sm:$0xff] }
 0x2e4   :  { %1252 = vmatpush.bf16.msrb.mxu0 %v1241_v1 }
 0x2e5   :  { %1013 = vmatpush.bf16.msra.mxu3 %v922_v42  ;;  %v5468_v42 = vld [vmem:[%s7492_s12 + $0x50] sm:$0xff] }
 0x2e6   :  { %3876 = vmatpush.msk.msra.mxu2 %vm441_vm6, %v5223_v27 }
 0x2e7   :  { %3811 = vmatmul.msk.f32.gmra.mxu2 %vm871_vm12, %v5353_v15 }
 0x2e8   :  { %1377 = vmatpush.msra.mxu2 %v5226_v48  ;;  %1253 = vmatpush.bf16.msrb.mxu0 %v1240_v5 }
 0x2e9   :  { %1014 = vmatpush.bf16.msra.mxu3 %v921_v47  ;;  %v5475_v47 = vld [vmem:[%s7492_s12 + $0x58] sm:$0x3] }
 0x2ea   :  { %1378 = vmatpush.msra.mxu2 %v5243_v53 }
 0x2ec   :  { %1254 = vmatpush.bf16.msrb.mxu0 %v1239_v7 }
 0x2ed   :  { %1015 = vmatpush.bf16.msra.mxu3 %v920_v55 }
 0x2f0   :  { %1255 = vmatpush.bf16.msrb.mxu0 %v1238_v12 }
 0x34c   :  { %v954_v13 = vpop.f32.mrf.mxu0 }
 0x352   :  { %v960_v17 = vpop.f32.mrf.mxu2 }
 0x353   :  { %v973_v18 = vpack.c.bf16 %v960_v17, %v960_v17  ;;  %v901_v16 = vpop.f32.mrf.mxu3 }
 0x354   :  { %v957_v62 = vpop.f32.mrf.mxu0 }
 0x355   :  { %v972_v46 = vpack.c.bf16 %v957_v62, %v954_v13  ;;  %3802 = vmatmul.msk.bf16.vlgmr.msrb.gmra.mxu3 %vm273_vm0, %v973_v18  ;;  %v5551_v62 = vld [vmem:[%s7492_s12 + $0x90] sm:$0xff] }
 0x356   :  { %3842 = vmatpush.msk.msrb.mxu3 %vm441_vm6, %v5223_v27 }
 0x357   :  { %3801 = vmatmul.msk.bf16.vlgmr.msrb.gmra.mxu1 %vm273_vm0, %v972_v46 }
 0x358   :  { %1215 = vmatpush.msrb.mxu3 %v5226_v48  ;;  %3859 = vmatpush.msk.msrb.mxu1 %vm441_vm6, %v5223_v27 }
 0x35a   :  { %1216 = vmatpush.msrb.mxu3 %v5243_v53  ;;  %1296 = vmatpush.msrb.mxu1 %v5226_v48  ;;  %v1056_v61 = vpop.f32.mrf.mxu2 }
 0x35b   :  { %v904_v29 = vpop.f32.mrf.mxu3 }
 0x35c   :  { %1297 = vmatpush.msrb.mxu1 %v5243_v53  ;;  %v918_v58 = vpack.c.bf16 %v904_v29, %v901_v16 }
 0x362   :  { %v1059_v30 = vpop.f32.mrf.mxu2 }
 0x363   :  { %v1074_v33 = vpack.c.bf16 %v1059_v30, %v1056_v61  ;;  %v907_v43 = vpop.f32.mrf.mxu3  ;;  %v5567_v30 = vld [vmem:[%s7492_s12 + $0xa0] sm:$0x3] }
 0x364   :  { %v919_v44 = vpack.c.bf16 %v907_v43, %v907_v43  ;;  %v3885_v43 = vld [vmem:[%s7491_s29 + $0x1a8] sm:$0xff] }
 0x365   :  { %3803 = vmatmul.msk.bf16.vlgmr.msra.gmra.mxu3 %vm273_vm0, %v918_v58  ;;  %3820 = vmatmul.msk.bf16.vlgmr.msra.gmra.mxu0 %vm273_vm0, %v1074_v33  ;;  %v5575_v58 = vld [vmem:[%s7492_s12 + $0xc0] sm:$0xff]  ;;  %v5582_v33 = vld [vmem:[%s7492_s12 + $0xc8] sm:$0xff] }
 0x366   :  { %3893 = vmatpush.msk.msra.mxu0 %vm441_vm6, %v5223_v27  ;;  %1333 = vmatpush.bf16.msra.mxu3 %v1322_v26 }
 0x367   :  { %3826 = vmatmul.msk.f32.vlgmr.msra.gmra.mxu1 %vm871_vm12, %v5443_v36 }
 0x368   :  { %1458 = vmatpush.msra.mxu0 %v5226_v48 }
 0x36a   :  { %1459 = vmatpush.msra.mxu0 %v5243_v53  ;;  %1334 = vmatpush.bf16.msra.mxu3 %v1321_v4  ;;  %v1062_v31 = vpop.f32.mrf.mxu2  ;;  %v5603_v4 = vld [vmem:[%s7492_s12 + $0xb0] sm:$0xff] }
 0x36b   :  { %v1075_v45 = vpack.c.bf16 %v1062_v31, %v1062_v31 }
 0x36e   :  { %1335 = vmatpush.bf16.msra.mxu3 %v1320_v37  ;;  %v3887_v37 = vld [vmem:[%s7491_s29 + $0x1b8] sm:$0xff] }
 0x36f   :  { %3827 = vmatmul.msk.f32.gmra.mxu1 %vm871_vm12, %v5468_v42  ;;  %v1403_v24 = vpack.c.bf16 %v3887_v37, %v3886_v9  ;;  %v3917_v9 = vld [vmem:[%s7491_s29 + $0x218] sm:$0xff] }
 0x371   :  { %1414 = vmatpush.bf16.msra.mxu1 %v1403_v24  ;;  %v3901_v24 = vld [vmem:[%s7491_s29 + $0x1e0] sm:$0xff] }
 0x372   :  { %1336 = vmatpush.bf16.msra.mxu3 %v1319_v20  ;;  %v1402_v20 = vpack.c.bf16 %v3885_v43, %v3884_v41  ;;  %v3902_v41 = vld [vmem:[%s7491_s29 + $0x1e8] sm:$0xff] }
 0x373   :  { %v1483_v43 = vpack.c.bf16 %v3902_v41, %v3901_v24 }
 0x375   :  { %3804 = vmatmul.msk.bf16.gmra.mxu3 %vm273_vm0, %v919_v44  ;;  %3821 = vmatmul.msk.bf16.gmra.mxu0 %vm273_vm0, %v1075_v45  ;;  %v3882_v44 = vld [vmem:[%s7491_s29 + $0x190] sm:$0xff]  ;;  %v3883_v45 = vld [vmem:[%s7491_s29 + $0x198] sm:$0xff] }
 0x376   :  { %1415 = vmatpush.bf16.msra.mxu1 %v1402_v20 }
 0x377   :  { %3828 = vmatmul.msk.f32.gmra.mxu1 %vm871_vm12, %v5475_v47 }
 0x37f   :  { %3860 = vmatmul.msk.f32.vlgmr.msrb.gmra.mxu1 %vm871_vm12, %v5484_v49 }
 0x385   :  { %3843 = vmatmul.msk.f32.vlgmr.msrb.gmra.mxu3 %vm871_vm12, %v5491_v51 }
 0x386   :  { %3910 = vmatpush.msk.msrb.mxu3 %vm441_vm6, %v5223_v27  ;;  %v5523_v27 = vld [vmem:[%s7492_s12 + $0x70] sm:$0x3] }
 0x387   :  { %3861 = vmatmul.msk.f32.gmra.mxu1 %vm871_vm12, %v5496_v25 }
 0x388   :  { %1539 = vmatpush.msrb.mxu3 %v5226_v48 }
 0x38a   :  { %1540 = vmatpush.msrb.mxu3 %v5243_v53 }
 0x38d   :  { %3844 = vmatmul.msk.f32.gmra.mxu3 %vm871_vm12, %v5509_v35 }
 0x38f   :  { %3862 = vmatmul.msk.f32.gmra.mxu1 %vm871_vm12, %v5514_v52 }
 0x395   :  { %3845 = vmatmul.msk.f32.gmra.mxu3 %vm871_vm12, %v5523_v27 }
 0x3d4   :  { %v5527_v48 = vpop.f32.mrf.mxu1 }
 0x3d8   :  { %v5529_v53 = vpop.f32.mrf.mxu3 }
 0x3dc   :  { %v5531_v55 = vpop.f32.mrf.mxu1 }
 0x3e0   :  { %v1000_v60 = vpop.f32.mrf.mxu3 }
 0x3e1   :  { %v1401_v60 = vpack.c.bf16 %v3883_v45, %v3882_v44  ;;  %v3899_v44 = vld [vmem:[%s7491_s29 + $0x1d0] sm:$0xff]  ;;  %v3900_v45 = vld [vmem:[%s7491_s29 + $0x1d8] sm:$0xff] }
 0x3e2   :  { %v5533_v63 = vpop.f32.mrf.mxu0 }
 0x3e3   :  { %1416 = vmatpush.bf16.msra.mxu1 %v1401_v60  ;;  %v3914_v60 = vld [vmem:[%s7491_s29 + $0x200] sm:$0xff] }
 0x3e4   :  { %v1137_v32 = vpop.f32.mrf.mxu1 }
 0x3e8   :  { %v5535_v38 = vpop.f32.mrf.mxu3 }
 0x3ea   :  { %v5537_v0 = vpop.f32.mrf.mxu0 }
 0x3ec   :  { %v1140_v1 = vpop.f32.mrf.mxu1 }
 0x3ed   :  { %v1155_v2 = vpack.c.bf16 %v1140_v1, %v1137_v32  ;;  %v3880_v32 = vld [vmem:[%s7491_s29 + $0x180] sm:$0xff]  ;;  %v3881_v1 = vld [vmem:[%s7491_s29 + $0x188] sm:$0xff] }
 0x3ef   :  { %3837 = vmatmul.msk.bf16.vlgmr.msrb.gmra.mxu2 %vm273_vm0, %v1155_v2  ;;  %v1400_v2 = vpack.c.bf16 %v3881_v1, %v3880_v32  ;;  %v1482_v1 = vpack.c.bf16 %v3900_v45, %v3899_v44 }
 0x3f0   :  { %v5540_v59 = vpop.f32.mrf.mxu3 }
 0x3f1   :  { %1417 = vmatpush.bf16.msra.mxu1 %v1400_v2  ;;  %v1020_v32 = vadd.f32 %v5540_v59, %v5531_v55  ;;  %v3915_v2 = vld [vmem:[%s7491_s29 + $0x208] sm:$0xff] }
 0x3f2   :  { %v5542_v5 = vpop.f32.mrf.mxu0  ;;  %v3898_v55 = vld [vmem:[%s7491_s29 + $0x1c8] sm:$0xff] }
 0x3f4   :  { %v1143_v6 = vpop.f32.mrf.mxu1 }
 0x3f5   :  { %v1156_v8 = vpack.c.bf16 %v1143_v6, %v1143_v6 }
 0x3f8   :  { %v5544_v40 = vpop.f32.mrf.mxu3 }
 0x3fa   :  { %v1102_v7 = vpop.f32.mrf.mxu0 }
 0x3fc   :  { %v1299_v11 = vpop.f32.mrf.mxu1 }
 0x3ff   :  { %3838 = vmatmul.msk.bf16.gmra.mxu2 %vm273_vm0, %v1156_v8  ;;  %v3920_v8 = vld [vmem:[%s7491_s29 + $0x230] sm:$0xff] }
 0x400   :  { %v1024_v12 = vpop.f32.mrf.mxu3 }
 0x404   :  { %v1302_v13 = vpop.f32.mrf.mxu1 }
 0x405   :  { %v1317_v17 = vpack.c.bf16 %v1302_v13, %v1299_v11  ;;  %v3921_v11 = vld [vmem:[%s7491_s29 + $0x238] sm:$0xff]  ;;  %v3903_v13 = vld [vmem:[%s7491_s29 + $0x1f0] sm:$0xff] }
 0x406   :  { %v1565_v12 = vpack.c.bf16 %v3921_v11, %v3920_v8 }
 0x407   :  { %3871 = vmatmul.msk.bf16.vlgmr.msra.gmra.mxu3 %vm273_vm0, %v1317_v17  ;;  %v3904_v17 = vld [vmem:[%s7491_s29 + $0x1f8] sm:$0xff] }
 0x408   :  { %v1218_v18 = vpop.f32.mrf.mxu3 }
 0x40c   :  { %v1305_v16 = vpop.f32.mrf.mxu1 }
 0x40d   :  { %v1318_v3 = vpack.c.bf16 %v1305_v16, %v1305_v16  ;;  %v3919_v16 = vld [vmem:[%s7491_s29 + $0x228] sm:$0xff] }
 0x40f   :  { %3877 = vmatmul.msk.f32.vlgmr.msra.gmra.mxu2 %vm871_vm12, %v5551_v62 }
 0x410   :  { %v1221_v46 = vpop.f32.mrf.mxu3 }
 0x411   :  { %v1236_v61 = vpack.c.bf16 %v1221_v46, %v1218_v18  ;;  %v3918_v18 = vld [vmem:[%s7491_s29 + $0x220] sm:$0xff]  ;;  %v1484_v46 = vpack.c.bf16 %v3904_v17, %v3903_v13  ;;  %v1105_v13 = vadd.f32 %v5537_v0, %v1020_v32 }
 0x412   :  { %v3897_v17 = vld [vmem:[%s7491_s29 + $0x1c0] sm:$0xff] }
 0x413   :  { %3854 = vmatmul.msk.bf16.vlgmr.msrb.gmra.mxu0 %vm273_vm0, %v1236_v61  ;;  %1495 = vmatpush.bf16.msrb.mxu2 %v1484_v46 }
 0x414   :  { %1576 = vmatpush.bf16.msrb.mxu0 %v1565_v12  ;;  %v1562_v12 = vpack.c.bf16 %v3915_v2, %v3914_v60 }
 0x417   :  { %3878 = vmatmul.msk.f32.gmra.mxu2 %vm871_vm12, %v5559_v28  ;;  %3872 = vmatmul.msk.bf16.gmra.mxu3 %vm273_vm0, %v1318_v3 }
 0x418   :  { %v1224_v29 = vpop.f32.mrf.mxu3  ;;  %1496 = vmatpush.bf16.msrb.mxu2 %v1483_v43 }
 0x419   :  { %v1237_v26 = vpack.c.bf16 %v1224_v29, %v1224_v29  ;;  %v1564_v29 = vpack.c.bf16 %v3919_v16, %v3918_v18  ;;  %v1481_v18 = vpack.c.bf16 %v3898_v55, %v3897_v17 }
 0x41b   :  { %1577 = vmatpush.bf16.msrb.mxu0 %v1564_v29 }
 0x41c   :  { %1497 = vmatpush.bf16.msrb.mxu2 %v1482_v1 }
 0x41f   :  { %3879 = vmatmul.msk.f32.gmra.mxu2 %vm871_vm12, %v5567_v30 }
 0x420   :  { %1498 = vmatpush.bf16.msrb.mxu2 %v1481_v18 }
 0x423   :  { %3855 = vmatmul.msk.bf16.gmra.mxu0 %vm273_vm0, %v1237_v26  ;;  %v3916_v26 = vld [vmem:[%s7491_s29 + $0x210] sm:$0xff] }
 0x424   :  { %v1563_v37 = vpack.c.bf16 %v3917_v9, %v3916_v26 }
 0x426   :  { %1578 = vmatpush.bf16.msrb.mxu0 %v1563_v37 }
 0x427   :  { %3911 = vmatmul.msk.f32.vlgmr.msrb.gmra.mxu3 %vm871_vm12, %v5575_v58 }
 0x42a   :  { %1579 = vmatpush.bf16.msrb.mxu0 %v1562_v12 }
 0x42f   :  { %3912 = vmatmul.msk.f32.gmra.mxu3 %vm871_vm12, %v5582_v33 }
 0x433   :  { %3894 = vmatmul.msk.f32.vlgmr.msra.gmra.mxu0 %vm871_vm12, %v5589_v14 }
 0x437   :  { %3913 = vmatmul.msk.f32.gmra.mxu3 %vm871_vm12, %v5596_v34 }
 0x43b   :  { %3895 = vmatmul.msk.f32.gmra.mxu0 %vm871_vm12, %v5603_v4 }
 0x443   :  { %3896 = vmatmul.msk.f32.gmra.mxu0 %vm871_vm12, %v5610_v10 }
 0x472   :  { %v5626_v31 = vpop.f32.mrf.mxu2 }
 0x47a   :  { %v1178_v6 = vpop.f32.mrf.mxu2 }
 0x47b   :  { %v1186_v59 = vadd.f32 %v1178_v6, %v1105_v13 }
 0x482   :  { %v5640_v7 = vpop.f32.mrf.mxu2 }
 0x48a   :  { %v1183_v61 = vpop.f32.mrf.mxu2  ;;  %v5660_v3 = vpop.f32.mrf.mxu3 }
 0x490   :  { %v1257_v20 = vpop.f32.mrf.mxu0 }
 0x492   :  { %v1380_v8 = vpop.f32.mrf.mxu2  ;;  %v1340_v11 = vpop.f32.mrf.mxu3 }
 0x498   :  { %v1259_v46 = vpop.f32.mrf.mxu0 }
 0x499   :  { %v1267_v16 = vadd.f32 %v1259_v46, %v1186_v59  ;;  %v1018_v59 = vadd.f32 %v5535_v38, %v5527_v48 }
 0x49a   :  { %v1383_v61 = vpop.f32.mrf.mxu2  ;;  %v1343_v29 = vpop.f32.mrf.mxu3 }
 0x49b   :  { %v1348_v26 = vadd.f32 %v1340_v11, %v1267_v16  ;;  %v1398_v9 = vpack.c.bf16 %v1383_v61, %v1380_v8  ;;  %v1104_v16 = vadd.f32 %v5533_v63, %v1018_v59  ;;  %v4351_v63 = vld [vmem:[%s7493_s26] ss:$0 sm:$0xff] }
 0x49d   :  { %3888 = vmatmul.msk.bf16.vlgmr.msra.gmra.mxu1 %vm273_vm0, %v1398_v9  ;;  %v1185_v61 = vadd.f32 %v5626_v31, %v1104_v16 }
 0x49f   :  { %v1266_v9 = vadd.f32 %v1257_v20, %v1185_v61 }
 0x4a0   :  { %v1262_v0 = vpop.f32.mrf.mxu0 }
 0x4a2   :  { %v1345_v37 = vpop.f32.mrf.mxu3  ;;  %v1386_v24 = vpop.f32.mrf.mxu2 }
 0x4a3   :  { %v1399_v43 = vpack.c.bf16 %v1386_v24, %v1386_v24  ;;  %v1347_v24 = vadd.f32 %v5660_v3, %v1266_v9 }
 0x4a8   :  { %v1264_v41 = vpop.f32.mrf.mxu0 }
 0x4aa   :  { %v1542_v44 = vpop.f32.mrf.mxu3 }
 0x4ad   :  { %3889 = vmatmul.msk.bf16.gmra.mxu1 %vm273_vm0, %v1399_v43 }
 0x4b0   :  { %v1461_v45 = vpop.f32.mrf.mxu0 }
 0x4b2   :  { %v1545_v6 = vpop.f32.mrf.mxu3 }
 0x4b3   :  { %v1560_v60 = vpack.c.bf16 %v1545_v6, %v1542_v44  ;;  %v1023_v44 = vadd.f32 %v5544_v40, %v5529_v53 }
 0x4b5   :  { %3922 = vmatmul.msk.bf16.vlgmr.msrb.gmra.mxu0 %vm273_vm0, %v1560_v60  ;;  %v1106_v60 = vadd.f32 %v5542_v5, %v1023_v44 }
 0x4b7   :  { %v1187_v38 = vadd.f32 %v5640_v7, %v1106_v60 }
 0x4b8   :  { %v1464_v32 = vpop.f32.mrf.mxu0 }
 0x4b9   :  { %v1479_v1 = vpack.c.bf16 %v1464_v32, %v1461_v45  ;;  %v1268_v32 = vadd.f32 %v1262_v0, %v1187_v38 }
 0x4ba   :  { %v1548_v2 = vpop.f32.mrf.mxu3 }
 0x4bb   :  { %3905 = vmatmul.msk.bf16.vlgmr.msrb.gmra.mxu2 %vm273_vm0, %v1479_v1  ;;  %v1561_v8 = vpack.c.bf16 %v1548_v2, %v1548_v2 }
 0x4c0   :  { %v1467_v11 = vpop.f32.mrf.mxu0 }
 0x4c1   :  { %v1480_v12 = vpack.c.bf16 %v1467_v11, %v1467_v11  ;;  %v1349_v11 = vadd.f32 %v1343_v29, %v1268_v32 }
 0x4c5   :  { %3923 = vmatmul.msk.bf16.gmra.mxu0 %vm273_vm0, %v1561_v8 }
 0x4cb   :  { %3906 = vmatmul.msk.bf16.gmra.mxu2 %vm273_vm0, %v1480_v12 }
 0x51a   :  { %v1419_v13 = vpop.f32.mrf.mxu1 }
 0x51b   :  { %v1428_v41 = vadd.f32 %v1419_v13, %v1347_v24 }
 0x522   :  { %v1421_v17 = vpop.f32.mrf.mxu1 }
 0x523   :  { %v1429_v31 = vadd.f32 %v1421_v17, %v1348_v26 }
 0x52a   :  { %v1424_v55 = vpop.f32.mrf.mxu1 }
 0x52b   :  { %v1430_v12 = vadd.f32 %v1424_v55, %v1349_v11  ;;  %v3936_v11 = vld [vmem:[%s7453_s14 + $0x60] sm:$0xff] }
 0x532   :  { %v1581_v18 = vpop.f32.mrf.mxu0  ;;  %v1426_v46 = vpop.f32.mrf.mxu1 }
 0x53a   :  { %v1583_v37 = vpop.f32.mrf.mxu0 }
 0x53e   :  { %v1500_v43 = vpop.f32.mrf.mxu2 }
 0x53f   :  { %v1509_v45 = vadd.f32 %v1500_v43, %v1428_v41 }
 0x541   :  { %v1590_v48 = vadd.f32 %v1581_v18, %v1509_v45 }
 0x542   :  { %v1586_v6 = vpop.f32.mrf.mxu0 }
 0x543   :  { %v1596_v3 = vadd.f32 %v4351_v63, %v1590_v48 }
 0x545   :  { %v1599_v53 = vmax.f32 %v1596_v3, 0.0 }
 0x546   :  { %v1502_v20 = vpop.f32.mrf.mxu2 }
 0x547   :  { %v1510_v1 = vadd.f32 %v1502_v20, %v1429_v31  ;;  %v1602_v59 = vsel %vm273_vm0, %v1599_v53, 0.0  ;;  %v3939_v20 = vld [vmem:[%s7453_s14 + $0x78] sm:$0xff] }
 0x549   :  { %v1591_v2 = vadd.f32 %v1583_v37, %v1510_v1 }
 0x54a   :  { %v1588_v8 = vpop.f32.mrf.mxu0 }
 0x54b   :  { %v1597_v40 = vadd.f32 %v4351_v63, %v1591_v2 }
 0x54d   :  { %v1600_v13 = vmax.f32 %v1597_v40, 0.0 }
 0x54e   :  { %v1505_v5 = vpop.f32.mrf.mxu2 }
 0x54f   :  { %v1603_v18 = vsel %vm273_vm0, %v1600_v13, 0.0  ;;  %v1511_v46 = vadd.f32 %v1505_v5, %v1430_v12  ;;  %v3934_v5 = vld [vmem:[%s7453_s14 + $0x50] sm:$0xff] }
 0x550   :  { %v1604_v16 = vadd.f32 %v1603_v18, %v1602_v59  ;;  %v3935_v59 = vld [vmem:[%s7453_s14 + $0x58] sm:$0xff] }
 0x551   :  { %v1592_v7 = vadd.f32 %v1586_v6, %v1511_v46  ;;  %v1734_v46 = vpack.c.bf16 %v3935_v59, %v3934_v5 }
 0x553   :  { %v1598_v26 = vadd.f32 %v4351_v63, %v1592_v7  ;;  %v3938_v63 = vld [vmem:[%s7453_s14 + $0x70] sm:$0xff]  ;;  %v3932_v7 = vld [vmem:[%s7453_s14 + $0x40] sm:$0xff] }
 0x554   :  { %v1736_v32 = vpack.c.bf16 %v3939_v20, %v3938_v63 }
 0x555   :  { %v1601_v17 = vmax.f32 %v1598_v26, 0.0  ;;  %v3933_v26 = vld [vmem:[%s7453_s14 + $0x48] sm:$0xff] }
 0x556   :  { %v1507_v0 = vpop.f32.mrf.mxu2  ;;  %1747 = vmatpush.bf16.msra.mxu2 %v1736_v32  ;;  %v4374_v32 = vld [vmem:[%s7488_s30] ss:$0 sm:$0xff] }
 0x557   :  { %v1605_v61 = vsel %vm297_vm1, %v1601_v17, 0.0  ;;  %v1733_v0 = vpack.c.bf16 %v3933_v26, %v3932_v7  ;;  %v3966_v7 = vld [vmem:[%s7453_s14 + $0xe0] sm:$0xff] }
 0x558   :  { %v1606_v9 = vadd.f32 %v1605_v61, %v1604_v16 }
 0x55a   :  { %v1607_v37 = vrot.slane %v1606_v9, 4 }
 0x55c   :  { %v1608_v29 = vadd.f32 %v1607_v37, %v1606_v9 }
 0x55e   :  { %v1609_v24 = vrot.slane %v1608_v29, 2 }
 0x560   :  { %v1610_v41 = vadd.f32 %v1609_v24, %v1608_v29 }
 0x562   :  { %v1611_v55 = vrot.slane %v1610_v41, 1 }
 0x564   :  { %v1612_v43 = vadd.f32 %v1611_v55, %v1610_v41 }
 0x566   :  { %v1613_v44 = vmul.f32 %v1612_v43, %v5176_v56 }
 0x568   :  { %v1614_v45 = vsub.f32 %v1599_v53, %v1613_v44  ;;  %v1615_v60 = vsub.f32 %v1600_v13, %v1613_v44  ;;  %v1616_v48 = vsub.f32 %v1601_v17, %v1613_v44  ;;  %v3937_v53 = vld [vmem:[%s7453_s14 + $0x68] sm:$0xff] }
 0x569   :  { %v1735_v12 = vpack.c.bf16 %v3937_v53, %v3936_v11 }
 0x56a   :  { %v1617_v38 = vmul.f32 %v1614_v45, %v1614_v45  ;;  %v1618_v31 = vmul.f32 %v1615_v60, %v1615_v60  ;;  %v1619_v6 = vmul.f32 %v1616_v48, %v1616_v48 }
 0x56b   :  { %1748 = vmatpush.bf16.msra.mxu2 %v1735_v12  ;;  %v3954_v12 = vld [vmem:[%s7453_s14 + $0xb0] sm:$0xff] }
 0x56c   :  { %v1620_v3 = vsel %vm273_vm0, %v1617_v38, 0.0  ;;  %v1621_v1 = vsel %vm273_vm0, %v1618_v31, 0.0  ;;  %v1623_v8 = vsel %vm297_vm1, %v1619_v6, 0.0 }
 0x56d   :  { %v1622_v2 = vadd.f32 %v1621_v1, %v1620_v3 }
 0x56f   :  { %v1624_v40 = vadd.f32 %v1623_v8, %v1622_v2  ;;  %1749 = vmatpush.bf16.msra.mxu2 %v1734_v46  ;;  %v4375_v8 = vld [vmem:[%s7489_s4] ss:$0 sm:$0xff] }
 0x570   :  { %v1686_v46 = vld [vmem:[%s7453_s14 + $0x20] sm:$0xff] }
 0x571   :  { %v1625_v13 = vrot.slane %v1624_v40, 4 }
 0x573   :  { %v1626_v18 = vadd.f32 %v1625_v13, %v1624_v40  ;;  %1750 = vmatpush.bf16.msra.mxu2 %v1733_v0  ;;  %v3969_v40 = vld [vmem:[%s7453_s14 + $0xf8] sm:$0xff]  ;;  %v3952_v0 = vld [vmem:[%s7453_s14 + $0xa0] sm:$0xff] }
 0x574   :  { %v3955_v13 = vld [vmem:[%s7453_s14 + $0xb8] sm:$0xff] }
 0x575   :  { %v1627_v16 = vrot.slane %v1626_v18, 2  ;;  %v1825_v26 = vpack.c.bf16 %v3955_v13, %v3954_v12  ;;  %v3977_v12 = vld [vmem:[%s7453_s14 + $0x108] sm:$0xff] }
 0x577   :  { %v1628_v17 = vadd.f32 %v1627_v16, %v1626_v18  ;;  %v1687_v16 = vld [vmem:[%s7453_s14 + $0x28] sm:$0xff] }
 0x579   :  { %v1629_v61 = vrot.slane %v1628_v17, 1 }
 0x57b   :  { %v1630_v9 = vadd.f32 %v1629_v61, %v1628_v17  ;;  %v3967_v17 = vld [vmem:[%s7453_s14 + $0xe8] sm:$0xff] }
 0x57c   :  { %v3953_v61 = vld [vmem:[%s7453_s14 + $0xa8] sm:$0xff] }
 0x57d   :  { %v1631_v37 = vmul.f32 %v1630_v9, %v5176_v56  ;;  %v1694_v9 = vpack.c.bf16 %v1687_v16, %v1686_v46  ;;  %v3996_v46 = vld [vmem:[%s7453_s14 + $0x170] sm:$0xff]  ;;  %v3997_v16 = vld [vmem:[%s7453_s14 + $0x178] sm:$0xff] }
 0x57f   :  { %v1632_v29 = vadd.f32 1e-05, %v1631_v37  ;;  %v1892_v37 = vpack.c.bf16 %v3967_v17, %v3966_v7  ;;  %v2029_v17 = vpack.c.bf16 %v3997_v16, %v3996_v46  ;;  %v4007_v46 = vld [vmem:[%s7453_s14 + $0x198] sm:$0xff]  ;;  %v4024_v16 = vld [vmem:[%s7453_s14 + $0x1f0] sm:$0xff] }
 0x581   :  { %4366 = vrsqrt.f32 %v1632_v29  ;;  %vm1639_vm14 = vweird.f32 %v1632_v29 }
 0x587   :  { %v4367_v24 = vpop.eup %4366 }
 0x588   :  { %v1634_v41 = vmul.f32 %v4367_v24, %v1632_v29  ;;  %vm1640_vm13 = vweird.f32 %v4367_v24  ;;  %v1684_v29 = vld [vmem:[%s7453_s14 + $0x10] sm:$0xff] }
 0x589   :  { %vm1641_vm15 = vmor %vm1639_vm14, %vm1640_vm13 }
 0x58a   :  { %v1635_v55 = vmul.f32 %v4367_v24, %v1634_v41  ;;  %v3950_v41 = vld [vmem:[%s7453_s14 + $0x90] sm:$0xff] }
 0x58c   :  { %v1636_v43 = vmul.f32 0.5, %v1635_v55  ;;  %v3951_v55 = vld [vmem:[%s7453_s14 + $0x98] sm:$0xff] }
 0x58e   :  { %v1637_v44 = vsub.f32 1.5, %v1636_v43 }
 0x590   :  { %v1638_v38 = vmul.f32 %v4367_v24, %v1637_v44 }
 0x592   :  { %v1642_v31 = vsel %vm1641_vm15, %v4367_v24, %v1638_v38  ;;  %v1685_v24 = vld [vmem:[%s7453_s14 + $0x18] sm:$0xff]  ;;  %v1682_v38 = vld [vmem:[%s7453_s14] sm:$0xff] }
 0x593   :  { %v1643_v6 = vmul.f32 %v1642_v31, %v1614_v45  ;;  %v1644_v63 = vmul.f32 %v1642_v31, %v1615_v60  ;;  %v1645_v20 = vmul.f32 %v1642_v31, %v1616_v48  ;;  %v1688_v45 = vld [vmem:[%s7453_s14 + $0x30] sm:$0xff]  ;;  %v1689_v60 = vld [vmem:[%s7453_s14 + $0x38] sm:$0xff]  ;;  %v1693_v43 = vpack.c.bf16 %v1685_v24, %v1684_v29  ;;  %v1683_v31 = vld [vmem:[%s7453_s14 + $0x8] sm:$0xff] }
 0x594   :  { %v3968_v48 = vld [vmem:[%s7453_s14 + $0xf0] sm:$0xff]  ;;  %v1695_v59 = vpack.c.bf16 %v1689_v60, %v1688_v45  ;;  %v3980_v45 = vld [vmem:[%s7453_s14 + $0x120] sm:$0xff] }
 0x595   :  { %v1647_v3 = vmul.f32 %v4374_v32, %v1644_v63  ;;  %v1648_v1 = vmul.f32 %v4374_v32, %v1645_v20  ;;  %v1646_v2 = vmul.f32 %v4374_v32, %v1643_v6  ;;  %v1893_v18 = vpack.c.bf16 %v3969_v40, %v3968_v48  ;;  %v3962_v63 = vld [vmem:[%s7453_s14 + $0xc0] sm:$0xff]  ;;  %v3963_v20 = vld [vmem:[%s7453_s14 + $0xc8] sm:$0xff] }
 0x596   :  { %v1823_v6 = vpack.c.bf16 %v3951_v55, %v3950_v41  ;;  %v3948_v32 = vld [vmem:[%s7453_s14 + $0x80] sm:$0xff] }
 0x597   :  { %v5751_v11 = vadd.f32 %v4375_v8, %v1648_v1  ;;  %v5753_v53 = vadd.f32 %v4375_v8, %v1647_v3  ;;  %v5781_v5 = vadd.f32 %v4375_v8, %v1646_v2  ;;  %v3949_v3 = vld [vmem:[%s7453_s14 + $0x88] sm:$0xff]  ;;  %v1692_v1 = vpack.c.bf16 %v1683_v31, %v1682_v38  ;;  %v3983_v8 = vld [vmem:[%s7453_s14 + $0x138] sm:$0xff]  ;;  %v3976_v40 = vld [vmem:[%s7453_s14 + $0x100] sm:$0xff] }
 0x598   :  { %v1890_v2 = vpack.c.bf16 %v3963_v20, %v3962_v63  ;;  %v1958_v13 = vpack.c.bf16 %v3977_v12, %v3976_v40 }
 0x599   :  { %3924 = vmatpush.msk.msrb.mxu1 %vm441_vm6, %v5751_v11  ;;  %3928 = vmatpush.msk.msra.mxu3 %vm441_vm6, %v5751_v11 }
 0x59a   :  { %3944 = vmatpush.msk.msra.mxu0 %vm441_vm6, %v5751_v11  ;;  %3958 = vmatpush.msk.msrb.mxu2 %vm441_vm6, %v5751_v11 }
 0x59b   :  { %1670 = vmatpush.msrb.mxu1 %v5753_v53  ;;  %1710 = vmatpush.msra.mxu3 %v5753_v53 }
 0x59c   :  { %1799 = vmatpush.msra.mxu0 %v5753_v53  ;;  %1867 = vmatpush.msrb.mxu2 %v5753_v53 }
 0x59d   :  { %1671 = vmatpush.msrb.mxu1 %v5781_v5  ;;  %1711 = vmatpush.msra.mxu3 %v5781_v5 }
 0x59e   :  { %1800 = vmatpush.msra.mxu0 %v5781_v5  ;;  %1868 = vmatpush.msrb.mxu2 %v5781_v5 }
 0x59f   :  { %3925 = vmatmul.msk.f32.vlgmr.msrb.gmra.mxu1 %vm871_vm12, %v5264_v22  ;;  %3929 = vmatmul.msk.f32.vlgmr.msra.gmra.mxu3 %vm871_vm12, %v5252_v54  ;;  %v3964_v22 = vld [vmem:[%s7453_s14 + $0xd0] sm:$0xff]  ;;  %v1824_v54 = vpack.c.bf16 %v3953_v61, %v3952_v0 }
 0x5a0   :  { %1771 = vmatpush.bf16.msra.mxu1 %v1695_v59  ;;  %3945 = vmatmul.msk.f32.vlgmr.msra.gmra.mxu0 %vm871_vm12, %v5299_v23  ;;  %v3965_v23 = vld [vmem:[%s7453_s14 + $0xd8] sm:$0xff] }
 0x5a1   :  { %1904 = vmatpush.bf16.msrb.mxu0 %v1893_v18  ;;  %1836 = vmatpush.bf16.msrb.mxu3 %v1825_v26  ;;  %v1891_v44 = vpack.c.bf16 %v3965_v23, %v3964_v22  ;;  %v3992_v22 = vld [vmem:[%s7453_s14 + $0x150] sm:$0xff] }
 0x5a4   :  { %1772 = vmatpush.bf16.msra.mxu1 %v1694_v9  ;;  %v3994_v9 = vld [vmem:[%s7453_s14 + $0x160] sm:$0xff] }
 0x5a5   :  { %1905 = vmatpush.bf16.msrb.mxu0 %v1892_v37  ;;  %1837 = vmatpush.bf16.msrb.mxu3 %v1824_v54  ;;  %v3995_v37 = vld [vmem:[%s7453_s14 + $0x168] sm:$0xff]  ;;  %v3993_v54 = vld [vmem:[%s7453_s14 + $0x158] sm:$0xff] }
 0x5a6   :  { %v2028_v24 = vpack.c.bf16 %v3995_v37, %v3994_v9  ;;  %v2027_v55 = vpack.c.bf16 %v3993_v54, %v3992_v22  ;;  %v4005_v9 = vld [vmem:[%s7453_s14 + $0x188] sm:$0xff]  ;;  %v4022_v37 = vld [vmem:[%s7453_s14 + $0x1e0] sm:$0xff] }
 0x5a7   :  { %3926 = vmatmul.msk.f32.gmra.mxu1 %vm871_vm12, %v5304_v50  ;;  %3930 = vmatmul.msk.f32.gmra.mxu3 %vm871_vm12, %v5294_v21  ;;  %v1822_v50 = vpack.c.bf16 %v3949_v3, %v3948_v32  ;;  %v3982_v21 = vld [vmem:[%s7453_s14 + $0x130] sm:$0xff]  ;;  %v4023_v22 = vld [vmem:[%s7453_s14 + $0x1e8] sm:$0xff] }
 0x5a8   :  { %1773 = vmatpush.bf16.msra.mxu1 %v1693_v43  ;;  %3946 = vmatmul.msk.f32.gmra.mxu0 %vm871_vm12, %v5335_v19  ;;  %v1961_v19 = vpack.c.bf16 %v3983_v8, %v3982_v21  ;;  %v3990_v43 = vld [vmem:[%s7453_s14 + $0x140] sm:$0xff] }
 0x5a9   :  { %1906 = vmatpush.bf16.msrb.mxu0 %v1891_v44  ;;  %1838 = vmatpush.bf16.msrb.mxu3 %v1823_v6  ;;  %v3991_v44 = vld [vmem:[%s7453_s14 + $0x148] sm:$0xff] }
 0x5aa   :  { %v2026_v31 = vpack.c.bf16 %v3991_v44, %v3990_v43  ;;  %v4020_v43 = vld [vmem:[%s7453_s14 + $0x1d0] sm:$0xff]  ;;  %v4021_v44 = vld [vmem:[%s7453_s14 + $0x1d8] sm:$0xff] }
 0x5ac   :  { %1774 = vmatpush.bf16.msra.mxu1 %v1692_v1 }
 0x5ad   :  { %1907 = vmatpush.bf16.msrb.mxu0 %v1890_v2  ;;  %1839 = vmatpush.bf16.msrb.mxu3 %v1822_v50 }
 0x5af   :  { %3931 = vmatmul.msk.f32.gmra.mxu3 %vm871_vm12, %v5257_v57  ;;  %3927 = vmatmul.msk.f32.gmra.mxu1 %vm871_vm12, %v5340_v39  ;;  %v3981_v57 = vld [vmem:[%s7453_s14 + $0x128] sm:$0xff]  ;;  %v3978_v39 = vld [vmem:[%s7453_s14 + $0x110] sm:$0xff] }
 0x5b0   :  { %3972 = vmatpush.msk.msrb.mxu1 %vm441_vm6, %v5751_v11  ;;  %3947 = vmatmul.msk.f32.gmra.mxu0 %vm871_vm12, %v5353_v15  ;;  %v1960_v60 = vpack.c.bf16 %v3981_v57, %v3980_v45  ;;  %v3979_v15 = vld [vmem:[%s7453_s14 + $0x118] sm:$0xff] }
 0x5b1   :  { %4000 = vmatpush.msk.msra.mxu0 %vm441_vm6, %v5751_v11  ;;  %1972 = vmatpush.bf16.msra.mxu3 %v1961_v19  ;;  %v1959_v48 = vpack.c.bf16 %v3979_v15, %v3978_v39 }
 0x5b2   :  { %1935 = vmatpush.msrb.mxu1 %v5753_v53 }
 0x5b3   :  { %2071 = vmatpush.msra.mxu0 %v5753_v53 }
 0x5b4   :  { %1936 = vmatpush.msrb.mxu1 %v5781_v5 }
 0x5b5   :  { %2072 = vmatpush.msra.mxu0 %v5781_v5  ;;  %1973 = vmatpush.bf16.msra.mxu3 %v1960_v60 }
 0x5b9   :  { %1974 = vmatpush.bf16.msra.mxu3 %v1959_v48 }
 0x5bd   :  { %1975 = vmatpush.bf16.msra.mxu3 %v1958_v13 }
 0x61c   :  { %v1673_v59 = vpop.f32.mrf.mxu1 }
 0x61d   :  { %v1802_v18 = vpop.f32.mrf.mxu0 }
 0x622   :  { %v1713_v7 = vpop.f32.mrf.mxu3 }
 0x624   :  { %v1676_v26 = vpop.f32.mrf.mxu1 }
 0x625   :  { %v1690_v0 = vpack.c.bf16 %v1676_v26, %v1673_v59  ;;  %v1805_v61 = vpop.f32.mrf.mxu0 }
 0x626   :  { %v1820_v29 = vpack.c.bf16 %v1805_v61, %v1802_v18  ;;  %v4004_v61 = vld [vmem:[%s7453_s14 + $0x180] sm:$0xff] }
 0x627   :  { %3942 = vmatmul.msk.bf16.vlgmr.msra.gmra.mxu1 %vm273_vm0, %v1690_v0 }
 0x628   :  { %3956 = vmatmul.msk.bf16.vlgmr.msrb.gmra.mxu3 %vm273_vm0, %v1820_v29  ;;  %2040 = vmatpush.bf16.msra.mxu1 %v2029_v17  ;;  %v4025_v17 = vld [vmem:[%s7453_s14 + $0x1f8] sm:$0xff] }
 0x629   :  { %4014 = vmatpush.msk.msrb.mxu3 %vm441_vm6, %v5751_v11  ;;  %v2165_v0 = vpack.c.bf16 %v4025_v17, %v4024_v16 }
 0x62a   :  { %v1716_v23 = vpop.f32.mrf.mxu3 }
 0x62b   :  { %2139 = vmatpush.msrb.mxu3 %v5753_v53  ;;  %v1731_v41 = vpack.c.bf16 %v1716_v23, %v1713_v7  ;;  %v2164_v23 = vpack.c.bf16 %v4023_v22, %v4022_v37 }
 0x62c   :  { %2041 = vmatpush.bf16.msra.mxu1 %v2028_v24  ;;  %v1679_v38 = vpop.f32.mrf.mxu1  ;;  %v2094_v24 = vpack.c.bf16 %v4005_v9, %v4004_v61 }
 0x62d   :  { %2140 = vmatpush.msrb.mxu3 %v5781_v5  ;;  %3940 = vmatmul.msk.bf16.vlgmr.msra.gmra.mxu2 %vm273_vm0, %v1731_v41  ;;  %v1808_v6 = vpop.f32.mrf.mxu0  ;;  %v1691_v63 = vpack.c.bf16 %v1679_v38, %v1679_v38  ;;  %v2163_v38 = vpack.c.bf16 %v4021_v44, %v4020_v43 }
 0x62e   :  { %3986 = vmatpush.msk.msra.mxu2 %vm441_vm6, %v5751_v11  ;;  %v1821_v20 = vpack.c.bf16 %v1808_v6, %v1808_v6  ;;  %v4019_v6 = vld [vmem:[%s7453_s14 + $0x1c8] sm:$0xff] }
 0x630   :  { %2003 = vmatpush.msra.mxu2 %v5753_v53  ;;  %2042 = vmatpush.bf16.msra.mxu1 %v2027_v55 }
 0x632   :  { %2004 = vmatpush.msra.mxu2 %v5781_v5  ;;  %v1719_v32 = vpop.f32.mrf.mxu3 }
 0x633   :  { %v1732_v3 = vpack.c.bf16 %v1719_v32, %v1719_v32  ;;  %v4038_v32 = vld [vmem:[%s7453_s14 + $0x230] sm:$0xff] }
 0x634   :  { %2043 = vmatpush.bf16.msra.mxu1 %v2026_v31  ;;  %v4018_v31 = vld [vmem:[%s7453_s14 + $0x1c0] sm:$0xff] }
 0x637   :  { %3943 = vmatmul.msk.bf16.gmra.mxu1 %vm273_vm0, %v1691_v63 }
 0x638   :  { %3957 = vmatmul.msk.bf16.gmra.mxu3 %vm273_vm0, %v1821_v20  ;;  %v2162_v20 = vpack.c.bf16 %v4019_v6, %v4018_v31 }
 0x63d   :  { %3941 = vmatmul.msk.bf16.gmra.mxu2 %vm273_vm0, %v1732_v3  ;;  %v4039_v3 = vld [vmem:[%s7453_s14 + $0x238] sm:$0xff] }
 0x647   :  { %3973 = vmatmul.msk.f32.vlgmr.msrb.gmra.mxu1 %vm871_vm12, %v5491_v51 }
 0x648   :  { %4028 = vmatpush.msk.msrb.mxu1 %vm441_vm6, %v5751_v11 }
 0x64a   :  { %2207 = vmatpush.msrb.mxu1 %v5753_v53 }
 0x64c   :  { %2208 = vmatpush.msrb.mxu1 %v5781_v5 }
 0x64d   :  { %3959 = vmatmul.msk.f32.vlgmr.msrb.gmra.mxu2 %vm871_vm12, %v5443_v36 }
 0x64f   :  { %3974 = vmatmul.msk.f32.gmra.mxu1 %vm871_vm12, %v5509_v35 }
 0x655   :  { %3960 = vmatmul.msk.f32.gmra.mxu2 %vm871_vm12, %v5468_v42 }
 0x657   :  { %3975 = vmatmul.msk.f32.gmra.mxu1 %vm871_vm12, %v5523_v27 }
 0x65d   :  { %3961 = vmatmul.msk.f32.gmra.mxu2 %vm871_vm12, %v5475_v47 }
 0x665   :  { %3987 = vmatmul.msk.f32.vlgmr.msra.gmra.mxu2 %vm871_vm12, %v5484_v49 }
 0x66d   :  { %3988 = vmatmul.msk.f32.gmra.mxu2 %vm871_vm12, %v5496_v25 }
 0x675   :  { %3989 = vmatmul.msk.f32.gmra.mxu2 %vm871_vm12, %v5514_v52 }
 0x6a4   :  { %v5955_v36 = vpop.f32.mrf.mxu1 }
 0x6ab   :  { %v5957_v51 = vpop.f32.mrf.mxu3 }
 0x6ac   :  { %v1778_v42 = vpop.f32.mrf.mxu1 }
 0x6b0   :  { %v5959_v35 = vpop.f32.mrf.mxu2 }
 0x6b1   :  { %v1777_v9 = vadd.f32 %v5955_v36, %v5959_v35 }
 0x6b3   :  { %v1843_v27 = vpop.f32.mrf.mxu3 }
 0x6b4   :  { %v5961_v11 = vpop.f32.mrf.mxu1 }
 0x6b8   :  { %v1754_v47 = vpop.f32.mrf.mxu2 }
 0x6b9   :  { %v1779_v53 = vadd.f32 %v1778_v42, %v1754_v47  ;;  %v2233_v42 = vpack.c.bf16 %v4039_v3, %v4038_v32  ;;  %v4036_v47 = vld [vmem:[%s7453_s14 + $0x220] sm:$0xff] }
 0x6bb   :  { %v1851_v5 = vadd.f32 %v1843_v27, %v1779_v53  ;;  %v5963_v49 = vpop.f32.mrf.mxu3  ;;  %v4037_v53 = vld [vmem:[%s7453_s14 + $0x228] sm:$0xff] }
 0x6bc   :  { %v1783_v1 = vpop.f32.mrf.mxu1 }
 0x6c0   :  { %v5965_v25 = vpop.f32.mrf.mxu2 }
 0x6c3   :  { %v1848_v2 = vpop.f32.mrf.mxu3 }
 0x6c4   :  { %v1938_v52 = vpop.f32.mrf.mxu1  ;;  %v2232_v2 = vpack.c.bf16 %v4037_v53, %v4036_v47 }
 0x6c8   :  { %v1759_v50 = vpop.f32.mrf.mxu2 }
 0x6c9   :  { %v4034_v50 = vld [vmem:[%s7453_s14 + $0x210] sm:$0xff] }
 0x6cc   :  { %v1941_v21 = vpop.f32.mrf.mxu1 }
 0x6cd   :  { %v1956_v8 = vpack.c.bf16 %v1941_v21, %v1938_v52  ;;  %v4035_v21 = vld [vmem:[%s7453_s14 + $0x218] sm:$0xff] }
 0x6cf   :  { %3984 = vmatmul.msk.bf16.vlgmr.msra.gmra.mxu3 %vm273_vm0, %v1956_v8  ;;  %v2231_v8 = vpack.c.bf16 %v4035_v21, %v4034_v50 }
 0x6d0   :  { %v1870_v19 = vpop.f32.mrf.mxu2  ;;  %2244 = vmatpush.bf16.msra.mxu3 %v2233_v42 }
 0x6d4   :  { %v1944_v57 = vpop.f32.mrf.mxu1  ;;  %2245 = vmatpush.bf16.msra.mxu3 %v2232_v2 }
 0x6d5   :  { %v1957_v39 = vpack.c.bf16 %v1944_v57, %v1944_v57 }
 0x6d8   :  { %v1873_v45 = vpop.f32.mrf.mxu2  ;;  %2246 = vmatpush.bf16.msra.mxu3 %v2231_v8 }
 0x6d9   :  { %v1888_v60 = vpack.c.bf16 %v1873_v45, %v1870_v19  ;;  %v4032_v19 = vld [vmem:[%s7453_s14 + $0x200] sm:$0xff]  ;;  %v4033_v45 = vld [vmem:[%s7453_s14 + $0x208] sm:$0xff] }
 0x6db   :  { %3970 = vmatmul.msk.bf16.vlgmr.msrb.gmra.mxu0 %vm273_vm0, %v1888_v60 }
 0x6dc   :  { %2176 = vmatpush.bf16.msrb.mxu0 %v2165_v0 }
 0x6df   :  { %3985 = vmatmul.msk.bf16.gmra.mxu3 %vm273_vm0, %v1957_v39  ;;  %v2230_v39 = vpack.c.bf16 %v4033_v45, %v4032_v19  ;;  %v4078_v19 = vld [vmem:[%s7457_s16 + $0x1e0] sm:$0xff]  ;;  %v4080_v45 = vld [vmem:[%s7457_s16 + $0x1f0] sm:$0xff] }
 0x6e0   :  { %v1876_v15 = vpop.f32.mrf.mxu2  ;;  %2177 = vmatpush.bf16.msrb.mxu0 %v2164_v23 }
 0x6e1   :  { %v1889_v40 = vpack.c.bf16 %v1876_v15, %v1876_v15  ;;  %2247 = vmatpush.bf16.msra.mxu3 %v2230_v39 }
 0x6e4   :  { %2178 = vmatpush.bf16.msrb.mxu0 %v2163_v38 }
 0x6e8   :  { %v2006_v48 = vpop.f32.mrf.mxu2  ;;  %2179 = vmatpush.bf16.msrb.mxu0 %v2162_v20 }
 0x6eb   :  { %3971 = vmatmul.msk.bf16.gmra.mxu0 %vm273_vm0, %v1889_v40 }
 0x6ef   :  { %4015 = vmatmul.msk.f32.vlgmr.msrb.gmra.mxu3 %vm871_vm12, %v5589_v14 }
 0x6f0   :  { %v2009_v12 = vpop.f32.mrf.mxu2 }
 0x6f1   :  { %v2024_v13 = vpack.c.bf16 %v2009_v12, %v2006_v48 }
 0x6f3   :  { %3998 = vmatmul.msk.bf16.vlgmr.msra.gmra.mxu1 %vm273_vm0, %v2024_v13 }
 0x6f7   :  { %4016 = vmatmul.msk.f32.gmra.mxu3 %vm871_vm12, %v5603_v4 }
 0x6f8   :  { %v2012_v59 = vpop.f32.mrf.mxu2 }
 0x6f9   :  { %v2025_v18 = vpack.c.bf16 %v2012_v59, %v2012_v59 }
 0x6fb   :  { %4001 = vmatmul.msk.f32.vlgmr.msra.gmra.mxu0 %vm871_vm12, %v5551_v62  ;;  %v4010_v62 = vld [vmem:[%s7453_s14 + $0x1b0] sm:$0xff] }
 0x6ff   :  { %4017 = vmatmul.msk.f32.gmra.mxu3 %vm871_vm12, %v5610_v10  ;;  %v4006_v10 = vld [vmem:[%s7453_s14 + $0x190] sm:$0xff] }
 0x700   :  { %v2095_v26 = vpack.c.bf16 %v4007_v46, %v4006_v10 }
 0x703   :  { %3999 = vmatmul.msk.bf16.gmra.mxu1 %vm273_vm0, %v2025_v18  ;;  %4002 = vmatmul.msk.f32.gmra.mxu0 %vm871_vm12, %v5559_v28  ;;  %v4011_v28 = vld [vmem:[%s7453_s14 + $0x1b8] sm:$0xff] }
 0x70b   :  { %4003 = vmatmul.msk.f32.gmra.mxu0 %vm871_vm12, %v5567_v30  ;;  %v2097_v30 = vpack.c.bf16 %v4011_v28, %v4010_v62 }
 0x70d   :  { %2108 = vmatpush.bf16.msrb.mxu2 %v2097_v30 }
 0x713   :  { %4029 = vmatmul.msk.f32.vlgmr.msrb.gmra.mxu1 %vm871_vm12, %v5575_v58  ;;  %v4008_v58 = vld [vmem:[%s7453_s14 + $0x1a0] sm:$0xff] }
 0x71b   :  { %4030 = vmatmul.msk.f32.gmra.mxu1 %vm871_vm12, %v5582_v33  ;;  %v4009_v33 = vld [vmem:[%s7453_s14 + $0x1a8] sm:$0xff] }
 0x71c   :  { %v2096_v4 = vpack.c.bf16 %v4009_v33, %v4008_v58 }
 0x71e   :  { %2109 = vmatpush.bf16.msrb.mxu2 %v2096_v4 }
 0x722   :  { %2110 = vmatpush.bf16.msrb.mxu2 %v2095_v26 }
 0x723   :  { %4031 = vmatmul.msk.f32.gmra.mxu1 %vm871_vm12, %v5596_v34 }
 0x726   :  { %2111 = vmatpush.bf16.msrb.mxu2 %v2094_v24  ;;  %v1782_v24 = vadd.f32 %v5961_v11, %v5965_v25 }
 0x728   :  { %v1852_v43 = vadd.f32 %v5963_v49, %v1782_v24  ;;  %v4352_v49 = vld [vmem:[%s7454_s15] ss:$0 sm:$0xff] }
 0x752   :  { %v5997_v14 = vpop.f32.mrf.mxu3 }
 0x758   :  { %v6005_v34 = vpop.f32.mrf.mxu0 }
 0x75a   :  { %v1979_v7 = vpop.f32.mrf.mxu3 }
 0x760   :  { %v1911_v29 = vpop.f32.mrf.mxu0 }
 0x761   :  { %v1919_v54 = vadd.f32 %v1911_v29, %v1851_v5  ;;  %v1850_v29 = vadd.f32 %v5957_v51, %v1777_v9 }
 0x762   :  { %v6031_v41 = vpop.f32.mrf.mxu3 }
 0x763   :  { %v6033_v55 = vadd.f32 %v1979_v7, %v1919_v54  ;;  %v1918_v22 = vadd.f32 %v6005_v34, %v1850_v29 }
 0x765   :  { %v1986_v44 = vadd.f32 %v5997_v14, %v1918_v22  ;;  %v4058_v22 = vld [vmem:[%s7457_s16 + $0x140] sm:$0xff] }
 0x768   :  { %v6047_v63 = vpop.f32.mrf.mxu0 }
 0x769   :  { %v1920_v31 = vadd.f32 %v6047_v63, %v1852_v43 }
 0x76a   :  { %v1984_v27 = vpop.f32.mrf.mxu3 }
 0x76b   :  { %v1988_v51 = vadd.f32 %v6031_v41, %v1920_v31  ;;  %v4056_v31 = vld [vmem:[%s7457_s16 + $0x130] sm:$0xff] }
 0x770   :  { %v1916_v5 = vpop.f32.mrf.mxu0  ;;  %v2045_v1 = vpop.f32.mrf.mxu1 }
 0x771   :  { %v2054_v6 = vadd.f32 %v2045_v1, %v1986_v44 }
 0x772   :  { %v2142_v52 = vpop.f32.mrf.mxu3 }
 0x778   :  { %v2047_v57 = vpop.f32.mrf.mxu1  ;;  %v2074_v60 = vpop.f32.mrf.mxu0 }
 0x779   :  { %v2055_v38 = vadd.f32 %v2047_v57, %v6033_v55  ;;  %v2479_v57 = vpack.c.bf16 %v4080_v45, %v4078_v19  ;;  %v2382_v19 = vld [vmem:[%s7457_s16 + $0xe0] sm:$0xff]  ;;  %v2384_v45 = vld [vmem:[%s7457_s16 + $0xf0] sm:$0xff] }
 0x77a   :  { %v2145_v15 = vpop.f32.mrf.mxu3 }
 0x77b   :  { %v2160_v48 = vpack.c.bf16 %v2145_v15, %v2142_v52  ;;  %2481 = vmatpush.bf16.msra.mxu0 %v2479_v57  ;;  %v4074_v15 = vld [vmem:[%s7457_s16 + $0x1c0] sm:$0xff] }
 0x77d   :  { %4026 = vmatmul.msk.bf16.vlgmr.msrb.gmra.mxu0 %vm273_vm0, %v2160_v48  ;;  %v4076_v48 = vld [vmem:[%s7457_s16 + $0x1d0] sm:$0xff] }
 0x780   :  { %v2050_v40 = vpop.f32.mrf.mxu1  ;;  %v2077_v12 = vpop.f32.mrf.mxu0 }
 0x781   :  { %v2092_v13 = vpack.c.bf16 %v2077_v12, %v2074_v60  ;;  %v2056_v11 = vadd.f32 %v2050_v40, %v1988_v51  ;;  %v2477_v40 = vpack.c.bf16 %v4076_v48, %v4074_v15  ;;  %v4050_v51 = vld [vmem:[%s7457_s16 + $0x100] sm:$0xff]  ;;  %v2380_v48 = vld [vmem:[%s7457_s16 + $0xd0] sm:$0xff] }
 0x782   :  { %v2148_v59 = vpop.f32.mrf.mxu3  ;;  %v2378_v15 = vld [vmem:[%s7457_s16 + $0xc0] sm:$0xff] }
 0x783   :  { %4012 = vmatmul.msk.bf16.vlgmr.msrb.gmra.mxu2 %vm273_vm0, %v2092_v13  ;;  %v2161_v62 = vpack.c.bf16 %v2148_v59, %v2148_v59  ;;  %2482 = vmatpush.bf16.msra.mxu0 %v2477_v40  ;;  %v4070_v59 = vld [vmem:[%s7457_s16 + $0x1a0] sm:$0xff] }
 0x784   :  { %v4376_v40 = vld [vmem:[%s7492_s12] sm:$0xff] }
 0x788   :  { %v2052_v18 = vpop.f32.mrf.mxu1  ;;  %v2080_v28 = vpop.f32.mrf.mxu0 }
 0x789   :  { %v2093_v30 = vpack.c.bf16 %v2080_v28, %v2080_v28  ;;  %v4072_v18 = vld [vmem:[%s7457_s16 + $0x1b0] sm:$0xff] }
 0x78d   :  { %4027 = vmatmul.msk.bf16.gmra.mxu0 %vm273_vm0, %v2161_v62  ;;  %v2475_v62 = vpack.c.bf16 %v4072_v18, %v4070_v59  ;;  %v2374_v59 = vld [vmem:[%s7457_s16 + $0xa0] sm:$0xff]  ;;  %v2376_v18 = vld [vmem:[%s7457_s16 + $0xb0] sm:$0xff] }
 0x78f   :  { %2483 = vmatpush.bf16.msra.mxu0 %v2475_v62  ;;  %v2398_v62 = vpack.c.bf16 %v2376_v18, %v2374_v59  ;;  %v4059_v59 = vld [vmem:[%s7457_s16 + $0x148] sm:$0xff] }
 0x790   :  { %v2210_v58 = vpop.f32.mrf.mxu1 }
 0x793   :  { %4013 = vmatmul.msk.bf16.gmra.mxu2 %vm273_vm0, %v2093_v30 }
 0x798   :  { %v2213_v33 = vpop.f32.mrf.mxu1 }
 0x799   :  { %v2228_v4 = vpack.c.bf16 %v2213_v33, %v2210_v58  ;;  %v4066_v58 = vld [vmem:[%s7457_s16 + $0x180] sm:$0xff]  ;;  %v4068_v33 = vld [vmem:[%s7457_s16 + $0x190] sm:$0xff] }
 0x79b   :  { %4040 = vmatmul.msk.bf16.vlgmr.msra.gmra.mxu3 %vm273_vm0, %v2228_v4  ;;  %v2473_v4 = vpack.c.bf16 %v4068_v33, %v4066_v58  ;;  %v4378_v58 = vld [vmem:[%s7492_s12 + $0x8] sm:$0xff]  ;;  %v4379_v33 = vld [vmem:[%s7492_s12 + $0x20] sm:$0xff] }
 0x79d   :  { %2484 = vmatpush.bf16.msra.mxu0 %v2473_v4 }
 0x7a0   :  { %v2216_v10 = vpop.f32.mrf.mxu1 }
 0x7a1   :  { %v2229_v46 = vpack.c.bf16 %v2216_v10, %v2216_v10 }
 0x7ab   :  { %4041 = vmatmul.msk.bf16.gmra.mxu3 %vm273_vm0, %v2229_v46 }
 0x7fa   :  { %v2181_v16 = vpop.f32.mrf.mxu0 }
 0x802   :  { %v2183_v7 = vpop.f32.mrf.mxu0 }
 0x806   :  { %v2113_v26 = vpop.f32.mrf.mxu2 }
 0x807   :  { %v2122_v35 = vadd.f32 %v2113_v26, %v2054_v6 }
 0x809   :  { %v2190_v25 = vadd.f32 %v2181_v16, %v2122_v35 }
 0x80a   :  { %v2186_v17 = vpop.f32.mrf.mxu0 }
 0x80e   :  { %v2115_v0 = vpop.f32.mrf.mxu2 }
 0x80f   :  { %v2123_v36 = vadd.f32 %v2115_v0, %v2055_v38  ;;  %v4062_v0 = vld [vmem:[%s7457_s16 + $0x160] sm:$0xff] }
 0x810   :  { %v4054_v38 = vld [vmem:[%s7457_s16 + $0x120] sm:$0xff] }
 0x811   :  { %v2191_v20 = vadd.f32 %v2183_v7, %v2123_v36  ;;  %v2467_v6 = vpack.c.bf16 %v4056_v31, %v4054_v38  ;;  %v4111_v38 = vld [vmem:[%s7457_s16 + $0x2c8] sm:$0xff]  ;;  %v4113_v31 = vld [vmem:[%s7457_s16 + $0x2d8] sm:$0xff] }
 0x812   :  { %v2188_v61 = vpop.f32.mrf.mxu0 }
 0x813   :  { %v4064_v61 = vld [vmem:[%s7457_s16 + $0x170] sm:$0xff] }
 0x814   :  { %v2471_v9 = vpack.c.bf16 %v4064_v61, %v4062_v0  ;;  %v4381_v0 = vld [vmem:[%s7492_s12 + $0x28] sm:$0x3] }
 0x816   :  { %v2118_v37 = vpop.f32.mrf.mxu2  ;;  %2485 = vmatpush.bf16.msra.mxu0 %v2471_v9  ;;  %v2358_v9 = vld [vmem:[%s7457_s16 + $0x20] sm:$0xff] }
 0x817   :  { %v2124_v3 = vadd.f32 %v2118_v37, %v2056_v11 }
 0x819   :  { %v2192_v55 = vadd.f32 %v2186_v17, %v2124_v3 }
 0x81e   :  { %v2249_v54 = vpop.f32.mrf.mxu3  ;;  %v2120_v23 = vpop.f32.mrf.mxu2 }
 0x81f   :  { %v2258_v42 = vadd.f32 %v2249_v54, %v2190_v25  ;;  %v4060_v54 = vld [vmem:[%s7457_s16 + $0x150] sm:$0xff] }
 0x820   :  { %v2469_v23 = vpack.c.bf16 %v4060_v54, %v4058_v22  ;;  %v2356_v22 = vld [vmem:[%s7457_s16 + $0x10] sm:$0xff]  ;;  %v4115_v54 = vld [vmem:[%s7457_s16 + $0x2e8] sm:$0xff] }
 0x821   :  { %v2264_v27 = vadd.f32 %v4352_v49, %v2258_v42 }
 0x822   :  { %2486 = vmatpush.bf16.msra.mxu0 %v2469_v23  ;;  %v4117_v23 = vld [vmem:[%s7457_s16 + $0x2f8] sm:$0xff] }
 0x823   :  { %v2267_v1 = vmax.f32 %v2264_v27, 0.0 }
 0x826   :  { %v2251_v32 = vpop.f32.mrf.mxu3  ;;  %2487 = vmatpush.bf16.msra.mxu0 %v2467_v6  ;;  %v2627_v6 = vpack.c.bf16 %v4113_v31, %v4111_v38  ;;  %v4091_v38 = vld [vmem:[%s7457_s16 + $0x228] sm:$0xff]  ;;  %v4093_v31 = vld [vmem:[%s7457_s16 + $0x238] sm:$0xff] }
 0x827   :  { %v2259_v34 = vadd.f32 %v2251_v32, %v2191_v20  ;;  %v4052_v20 = vld [vmem:[%s7457_s16 + $0x110] sm:$0xff] }
 0x828   :  { %v2465_v32 = vpack.c.bf16 %v4052_v20, %v4050_v51  ;;  %v4079_v20 = vld [vmem:[%s7457_s16 + $0x1e8] sm:$0xff] }
 0x829   :  { %v2265_v14 = vadd.f32 %v4352_v49, %v2259_v34 }
 0x82a   :  { %2488 = vmatpush.bf16.msra.mxu0 %v2465_v32  ;;  %v4081_v32 = vld [vmem:[%s7457_s16 + $0x1f8] sm:$0xff] }
 0x82b   :  { %v2268_v53 = vmax.f32 %v2265_v14, 0.0 }
 0x82d   :  { %v2272_v2 = vadd.f32 %v2268_v53, %v2267_v1 }
 0x82e   :  { %v2254_v63 = vpop.f32.mrf.mxu3 }
 0x82f   :  { %v2260_v47 = vadd.f32 %v2254_v63, %v2192_v55 }
 0x831   :  { %v2266_v5 = vadd.f32 %v4352_v49, %v2260_v47  ;;  %v4353_v47 = vld [vmem:[%s7455_s5] ss:$0 sm:$0xff] }
 0x833   :  { %v2269_v41 = vmax.f32 %v2266_v5, 0.0 }
 0x835   :  { %v2273_v52 = vsel %vm441_vm6, %v2269_v41, 0.0 }
 0x836   :  { %v2274_v50 = vadd.f32 %v2273_v52, %v2272_v2  ;;  %v2256_v21 = vpop.f32.mrf.mxu3  ;;  %v4354_v2 = vld [vmem:[%s7456_s6] ss:$0 sm:$0xff] }
 0x838   :  { %v2275_v8 = vrot.slane %v2274_v50, 4 }
 0x83a   :  { %v2276_v60 = vadd.f32 %v2275_v8, %v2274_v50 }
 0x83c   :  { %v2277_v39 = vrot.slane %v2276_v60, 2 }
 0x83e   :  { %v2278_v12 = vadd.f32 %v2277_v39, %v2276_v60  ;;  %v2402_v39 = vpack.c.bf16 %v2384_v45, %v2382_v19  ;;  %v4063_v19 = vld [vmem:[%s7457_s16 + $0x168] sm:$0xff]  ;;  %v4065_v45 = vld [vmem:[%s7457_s16 + $0x178] sm:$0xff] }
 0x840   :  { %v2279_v13 = vrot.slane %v2278_v12, 1 }
 0x842   :  { %v2280_v28 = vadd.f32 %v2279_v13, %v2278_v12  ;;  %v4377_v12 = vld [vmem:[%s7492_s12 + $0x18] sm:$0xff]  ;;  %v2400_v13 = vpack.c.bf16 %v2380_v48, %v2378_v15  ;;  %v2371_v15 = vld [vmem:[%s7457_s16 + $0x88] sm:$0xff] }
 0x843   :  { %v2373_v48 = vld [vmem:[%s7457_s16 + $0x98] sm:$0xff] }
 0x844   :  { %v2281_v30 = vmul.f32 %v2280_v28, %v5176_v56  ;;  %v2370_v28 = vld [vmem:[%s7457_s16 + $0x80] sm:$0xff] }
 0x846   :  { %v2282_v10 = vsub.f32 %v2267_v1, %v2281_v30  ;;  %v2283_v46 = vsub.f32 %v2268_v53, %v2281_v30  ;;  %v2284_v16 = vsub.f32 %v2269_v41, %v2281_v30  ;;  %v2372_v30 = vld [vmem:[%s7457_s16 + $0x90] sm:$0xff] }
 0x847   :  { %v2396_v4 = vpack.c.bf16 %v2372_v30, %v2370_v28  ;;  %v4099_v28 = vld [vmem:[%s7457_s16 + $0x268] sm:$0xff]  ;;  %v4101_v30 = vld [vmem:[%s7457_s16 + $0x278] sm:$0xff] }
 0x848   :  { %v2285_v7 = vmul.f32 %v2282_v10, %v2282_v10  ;;  %v2286_v26 = vmul.f32 %v2283_v46, %v2283_v46  ;;  %v2287_v17 = vmul.f32 %v2284_v16, %v2284_v16 }
 0x84a   :  { %v2288_v37 = vadd.f32 %v2286_v26, %v2285_v7  ;;  %v2289_v29 = vsel %vm441_vm6, %v2287_v17, 0.0  ;;  %v2362_v7 = vld [vmem:[%s7457_s16 + $0x40] sm:$0xff]  ;;  %v2364_v26 = vld [vmem:[%s7457_s16 + $0x50] sm:$0xff] }
 0x84b   :  { %v4380_v17 = vld [vmem:[%s7492_s12 + $0x10] sm:$0x3]  ;;  %v2392_v61 = vpack.c.bf16 %v2364_v26, %v2362_v7  ;;  %v4057_v7 = vld [vmem:[%s7457_s16 + $0x138] sm:$0xff] }
 0x84c   :  { %v2290_v24 = vadd.f32 %v2289_v29, %v2288_v37  ;;  %v2360_v37 = vld [vmem:[%s7457_s16 + $0x30] sm:$0xff] }
 0x84d   :  { %v2390_v29 = vpack.c.bf16 %v2360_v37, %v2358_v9  ;;  %v4095_v9 = vld [vmem:[%s7457_s16 + $0x248] sm:$0xff]  ;;  %v4097_v37 = vld [vmem:[%s7457_s16 + $0x258] sm:$0xff] }
 0x84e   :  { %v2291_v43 = vrot.slane %v2290_v24, 4 }
 0x850   :  { %v2292_v44 = vadd.f32 %v2291_v43, %v2290_v24  ;;  %v2354_v24 = vld [vmem:[%s7457_s16] sm:$0xff] }
 0x851   :  { %v2388_v43 = vpack.c.bf16 %v2356_v22, %v2354_v24  ;;  %v2619_v24 = vpack.c.bf16 %v4097_v37, %v4095_v9  ;;  %v4053_v22 = vld [vmem:[%s7457_s16 + $0x118] sm:$0xff]  ;;  %v4098_v37 = vld [vmem:[%s7457_s16 + $0x260] sm:$0xff] }
 0x852   :  { %v2293_v36 = vrot.slane %v2292_v44, 2 }
 0x854   :  { %v2294_v35 = vadd.f32 %v2293_v36, %v2292_v44  ;;  %v2629_v44 = vpack.c.bf16 %v4117_v23, %v4115_v54  ;;  %v4107_v36 = vld [vmem:[%s7457_s16 + $0x2a8] sm:$0xff] }
 0x855   :  { %v2359_v23 = vld [vmem:[%s7457_s16 + $0x28] sm:$0xff] }
 0x856   :  { %v2295_v11 = vrot.slane %v2294_v35, 1 }
 0x858   :  { %v2296_v25 = vadd.f32 %v2295_v11, %v2294_v35  ;;  %v4109_v35 = vld [vmem:[%s7457_s16 + $0x2b8] sm:$0xff]  ;;  %v2480_v11 = vpack.c.bf16 %v4081_v32, %v4079_v20  ;;  %v4087_v20 = vld [vmem:[%s7457_s16 + $0x208] sm:$0xff] }
 0x859   :  { %v2625_v51 = vpack.c.bf16 %v4109_v35, %v4107_v36  ;;  %v2355_v36 = vld [vmem:[%s7457_s16 + $0x8] sm:$0xff]  ;;  %v2357_v35 = vld [vmem:[%s7457_s16 + $0x18] sm:$0xff] }
 0x85a   :  { %v2297_v34 = vmul.f32 %v2296_v25, %v5176_v56  ;;  %2499 = vmatpush.bf16.msrb.mxu3 %v2480_v11  ;;  %v4075_v25 = vld [vmem:[%s7457_s16 + $0x1c8] sm:$0xff]  ;;  %v4089_v32 = vld [vmem:[%s7457_s16 + $0x218] sm:$0xff] }
 0x85b   :  { %v2615_v11 = vpack.c.bf16 %v4089_v32, %v4087_v20  ;;  %v4092_v20 = vld [vmem:[%s7457_s16 + $0x230] sm:$0xff]  ;;  %v4122_v32 = vld [vmem:[%s7457_s16 + $0x300] sm:$0xff] }
 0x85c   :  { %v2298_v3 = vadd.f32 1e-05, %v2297_v34  ;;  %v4077_v34 = vld [vmem:[%s7457_s16 + $0x1d8] sm:$0xff] }
 0x85e   :  { %4368 = vrsqrt.f32 %v2298_v3  ;;  %vm2305_vm2 = vweird.f32 %v2298_v3 }
 0x864   :  { %v4369_v42 = vpop.eup %4368 }
 0x865   :  { %v2300_v49 = vmul.f32 %v4369_v42, %v2298_v3  ;;  %vm2306_vm1 = vweird.f32 %v4369_v42  ;;  %v2478_v3 = vpack.c.bf16 %v4077_v34, %v4075_v25 }
 0x866   :  { %vm2307_vm3 = vmor %vm2305_vm2, %vm2306_vm1 }
 0x867   :  { %v2301_v14 = vmul.f32 %v4369_v42, %v2300_v49  ;;  %v2385_v49 = vld [vmem:[%s7457_s16 + $0xf8] sm:$0xff]  ;;  %2500 = vmatpush.bf16.msrb.mxu3 %v2478_v3 }
 0x869   :  { %v2302_v55 = vmul.f32 0.5, %v2301_v14 }
 0x86b   :  { %v2303_v27 = vsub.f32 1.5, %v2302_v55  ;;  %v4071_v55 = vld [vmem:[%s7457_s16 + $0x1a8] sm:$0xff] }
 0x86d   :  { %v2304_v63 = vmul.f32 %v4369_v42, %v2303_v27  ;;  %v4073_v27 = vld [vmem:[%s7457_s16 + $0x1b8] sm:$0xff] }
 0x86f   :  { %v2308_v53 = vsel %vm2307_vm3, %v4369_v42, %v2304_v63  ;;  %v2383_v42 = vld [vmem:[%s7457_s16 + $0xe8] sm:$0xff]  ;;  %v2476_v63 = vpack.c.bf16 %v4073_v27, %v4071_v55 }
 0x870   :  { %v2309_v5 = vmul.f32 %v2308_v53, %v2282_v10  ;;  %v2310_v1 = vmul.f32 %v2308_v53, %v2283_v46  ;;  %v2311_v41 = vmul.f32 %v2308_v53, %v2284_v16  ;;  %v2366_v10 = vld [vmem:[%s7457_s16 + $0x60] sm:$0xff]  ;;  %v2368_v46 = vld [vmem:[%s7457_s16 + $0x70] sm:$0xff]  ;;  %v2403_v14 = vpack.c.bf16 %v2385_v49, %v2383_v42  ;;  %v2381_v53 = vld [vmem:[%s7457_s16 + $0xd8] sm:$0xff] }
 0x871   :  { %v2394_v16 = vpack.c.bf16 %v2368_v46, %v2366_v10  ;;  %2501 = vmatpush.bf16.msrb.mxu3 %v2476_v63  ;;  %v2369_v10 = vld [vmem:[%s7457_s16 + $0x78] sm:$0xff] }
 0x872   :  { %v2316_v52 = vmul.f32 %v4353_v47, %v2310_v1  ;;  %v2317_v50 = vmul.f32 %v4353_v47, %v2311_v41  ;;  %v2315_v21 = vmul.f32 %v4353_v47, %v2309_v5  ;;  %v2379_v47 = vld [vmem:[%s7457_s16 + $0xc8] sm:$0xff]  ;;  %v4069_v41 = vld [vmem:[%s7457_s16 + $0x198] sm:$0xff] }
 0x873   :  { %v2401_v5 = vpack.c.bf16 %v2381_v53, %v2379_v47  ;;  %v4067_v1 = vld [vmem:[%s7457_s16 + $0x188] sm:$0xff]  ;;  %v4382_v53 = vld [vmem:[%s7492_s12 + $0x30] sm:$0xff] }
 0x874   :  { %v6151_v8 = vadd.f32 %v4354_v2, %v2317_v50  ;;  %v6159_v57 = vadd.f32 %v4354_v2, %v2316_v52  ;;  %v6167_v60 = vadd.f32 %v4354_v2, %v2315_v21  ;;  %v2474_v2 = vpack.c.bf16 %v4069_v41, %v4067_v1  ;;  %v2375_v52 = vld [vmem:[%s7457_s16 + $0xa8] sm:$0xff]  ;;  %v2377_v50 = vld [vmem:[%s7457_s16 + $0xb8] sm:$0xff]  ;;  %v4384_v1 = vld [vmem:[%s7492_s12 + $0x40] sm:$0x3] }
 0x875   :  { %v2399_v21 = vpack.c.bf16 %v2377_v50, %v2375_v52  ;;  %v4385_v41 = vld [vmem:[%s7492_s12 + $0x48] sm:$0xff]  ;;  %v4387_v52 = vld [vmem:[%s7492_s12 + $0x58] sm:$0x3]  ;;  %v4150_v50 = vld [vmem:[%s7457_s16 + $0x3e0] sm:$0xff] }
 0x876   :  { %4042 = vmatpush.msk.msra.mxu2 %vm441_vm6, %v6151_v8  ;;  %4046 = vmatpush.msk.msra.mxu1 %vm441_vm6, %v6151_v8 }
 0x877   :  { %4082 = vmatpush.msk.msrb.mxu0 %vm441_vm6, %v6151_v8  ;;  %2502 = vmatpush.bf16.msrb.mxu3 %v2474_v2  ;;  %v4386_v2 = vld [vmem:[%s7492_s12 + $0x50] sm:$0xff] }
 0x878   :  { %2342 = vmatpush.msra.mxu2 %v6159_v57  ;;  %2418 = vmatpush.msra.mxu1 %v6159_v57 }
 0x879   :  { %2567 = vmatpush.msrb.mxu0 %v6159_v57 }
 0x87a   :  { %2343 = vmatpush.msra.mxu2 %v6167_v60  ;;  %2419 = vmatpush.msra.mxu1 %v6167_v60 }
 0x87b   :  { %2568 = vmatpush.msrb.mxu0 %v6167_v60  ;;  %4043 = vmatmul.msk.f32.vlgmr.msra.gmra.mxu2 %vm871_vm12, %v4376_v40  ;;  %v2397_v40 = vpack.c.bf16 %v2373_v48, %v2371_v15  ;;  %v4146_v15 = vld [vmem:[%s7457_s16 + $0x3c0] sm:$0xff] }
 0x87c   :  { %4047 = vmatmul.msk.f32.vlgmr.msra.gmra.mxu1 %vm871_vm12, %v4377_v12  ;;  %2517 = vmatpush.bf16.msrb.mxu2 %v2402_v39  ;;  %v2472_v39 = vpack.c.bf16 %v4065_v45, %v4063_v19  ;;  %v4103_v12 = vld [vmem:[%s7457_s16 + $0x288] sm:$0xff]  ;;  %v4114_v45 = vld [vmem:[%s7457_s16 + $0x2e0] sm:$0xff] }
 0x87d   :  { %2535 = vmatpush.bf16.msrb.mxu1 %v2403_v14 }
 0x87e   :  { %2503 = vmatpush.bf16.msrb.mxu3 %v2472_v39  ;;  %v4116_v39 = vld [vmem:[%s7457_s16 + $0x2f0] sm:$0xff] }
 0x87f   :  { %v2628_v48 = vpack.c.bf16 %v4116_v39, %v4114_v45  ;;  %v4179_v45 = vld [vmem:[%s7457_s16 + $0x4a8] sm:$0xff]  ;;  %v4181_v39 = vld [vmem:[%s7457_s16 + $0x4b8] sm:$0xff] }
 0x880   :  { %2518 = vmatpush.bf16.msrb.mxu2 %v2400_v13  ;;  %v4105_v13 = vld [vmem:[%s7457_s16 + $0x298] sm:$0xff] }
 0x881   :  { %2536 = vmatpush.bf16.msrb.mxu1 %v2401_v5  ;;  %v2623_v18 = vpack.c.bf16 %v4105_v13, %v4103_v12  ;;  %v4383_v5 = vld [vmem:[%s7492_s12 + $0x38] sm:$0xff]  ;;  %v4110_v13 = vld [vmem:[%s7457_s16 + $0x2c0] sm:$0xff] }
 0x883   :  { %4044 = vmatmul.msk.f32.gmra.mxu2 %vm871_vm12, %v4378_v58 }
 0x884   :  { %4048 = vmatmul.msk.f32.gmra.mxu1 %vm871_vm12, %v4379_v33  ;;  %2519 = vmatpush.bf16.msrb.mxu2 %v2398_v62  ;;  %v4061_v62 = vld [vmem:[%s7457_s16 + $0x158] sm:$0xff]  ;;  %v2367_v33 = vld [vmem:[%s7457_s16 + $0x68] sm:$0xff] }
 0x885   :  { %2537 = vmatpush.bf16.msrb.mxu1 %v2399_v21  ;;  %v2470_v58 = vpack.c.bf16 %v4061_v62, %v4059_v59  ;;  %v2395_v46 = vpack.c.bf16 %v2369_v10, %v2367_v33  ;;  %v4152_v21 = vld [vmem:[%s7457_s16 + $0x3f0] sm:$0xff]  ;;  %v4142_v62 = vld [vmem:[%s7457_s16 + $0x3a0] sm:$0xff] }
 0x886   :  { %v2747_v19 = vpack.c.bf16 %v4152_v21, %v4150_v50  ;;  %v4112_v59 = vld [vmem:[%s7457_s16 + $0x2d0] sm:$0xff]  ;;  %v4153_v50 = vld [vmem:[%s7457_s16 + $0x3f8] sm:$0xff] }
 0x887   :  { %2504 = vmatpush.bf16.msrb.mxu3 %v2470_v58  ;;  %v4106_v58 = vld [vmem:[%s7457_s16 + $0x2a0] sm:$0xff]  ;;  %v4108_v33 = vld [vmem:[%s7457_s16 + $0x2b0] sm:$0xff] }
 0x888   :  { %2520 = vmatpush.bf16.msrb.mxu2 %v2396_v4  ;;  %v2621_v4 = vpack.c.bf16 %v4101_v30, %v4099_v28  ;;  %v4144_v28 = vld [vmem:[%s7457_s16 + $0x3b0] sm:$0xff]  ;;  %v2624_v10 = vpack.c.bf16 %v4108_v33, %v4106_v58  ;;  %v4143_v33 = vld [vmem:[%s7457_s16 + $0x3a8] sm:$0xff] }
 0x889   :  { %2538 = vmatpush.bf16.msrb.mxu1 %v2397_v40  ;;  %v4148_v40 = vld [vmem:[%s7457_s16 + $0x3d0] sm:$0xff]  ;;  %v2743_v30 = vpack.c.bf16 %v4144_v28, %v4142_v62  ;;  %v4175_v28 = vld [vmem:[%s7457_s16 + $0x488] sm:$0xff] }
 0x88a   :  { %v2745_v12 = vpack.c.bf16 %v4148_v40, %v4146_v15  ;;  %v4147_v40 = vld [vmem:[%s7457_s16 + $0x3c8] sm:$0xff] }
 0x88b   :  { %4045 = vmatmul.msk.f32.gmra.mxu2 %vm871_vm12, %v4380_v17  ;;  %v2363_v17 = vld [vmem:[%s7457_s16 + $0x48] sm:$0xff] }
 0x88c   :  { %4049 = vmatmul.msk.f32.gmra.mxu1 %vm871_vm12, %v4381_v0  ;;  %2521 = vmatpush.bf16.msrb.mxu2 %v2394_v16  ;;  %v4055_v16 = vld [vmem:[%s7457_s16 + $0x128] sm:$0xff]  ;;  %v2365_v0 = vld [vmem:[%s7457_s16 + $0x58] sm:$0xff] }
 0x88d   :  { %v2468_v26 = vpack.c.bf16 %v4057_v7, %v4055_v16  ;;  %2539 = vmatpush.bf16.msrb.mxu1 %v2395_v46  ;;  %v4140_v46 = vld [vmem:[%s7457_s16 + $0x390] sm:$0xff]  ;;  %v4102_v7 = vld [vmem:[%s7457_s16 + $0x280] sm:$0xff] }
 0x88f   :  { %2505 = vmatpush.bf16.msrb.mxu3 %v2468_v26  ;;  %v4104_v26 = vld [vmem:[%s7457_s16 + $0x290] sm:$0xff] }
 0x890   :  { %2522 = vmatpush.bf16.msrb.mxu2 %v2392_v61  ;;  %v2393_v61 = vpack.c.bf16 %v2365_v0, %v2363_v17  ;;  %v2622_v17 = vpack.c.bf16 %v4104_v26, %v4102_v7  ;;  %v4134_v0 = vld [vmem:[%s7457_s16 + $0x360] sm:$0xff] }
 0x892   :  { %2540 = vmatpush.bf16.msrb.mxu1 %v2393_v61  ;;  %v4136_v61 = vld [vmem:[%s7457_s16 + $0x370] sm:$0xff] }
 0x893   :  { %v2739_v9 = vpack.c.bf16 %v4136_v61, %v4134_v0  ;;  %v4141_v0 = vld [vmem:[%s7457_s16 + $0x398] sm:$0xff] }
 0x894   :  { %2523 = vmatpush.bf16.msrb.mxu2 %v2390_v29  ;;  %v4051_v29 = vld [vmem:[%s7457_s16 + $0x108] sm:$0xff] }
 0x895   :  { %v2466_v54 = vpack.c.bf16 %v4053_v22, %v4051_v29  ;;  %v4100_v29 = vld [vmem:[%s7457_s16 + $0x270] sm:$0xff] }
 0x896   :  { %v2620_v22 = vpack.c.bf16 %v4100_v29, %v4098_v37 }
 0x897   :  { %2506 = vmatpush.bf16.msrb.mxu3 %v2466_v54  ;;  %v4132_v54 = vld [vmem:[%s7457_s16 + $0x350] sm:$0xff] }
 0x898   :  { %2524 = vmatpush.bf16.msrb.mxu2 %v2388_v43  ;;  %v2361_v43 = vld [vmem:[%s7457_s16 + $0x38] sm:$0xff] }
 0x89b   :  { %2630 = vmatpush.bf16.msra.mxu3 %v2628_v48  ;;  %v2863_v48 = vpack.c.bf16 %v4181_v39, %v4179_v45 }
 0x89c   :  { %2648 = vmatpush.bf16.msra.mxu2 %v2629_v44  ;;  %v2391_v44 = vpack.c.bf16 %v2361_v43, %v2359_v23  ;;  %v4094_v43 = vld [vmem:[%s7457_s16 + $0x240] sm:$0xff] }
 0x89e   :  { %2541 = vmatpush.bf16.msrb.mxu1 %v2391_v44  ;;  %v4096_v44 = vld [vmem:[%s7457_s16 + $0x250] sm:$0xff] }
 0x8a0   :  { %2649 = vmatpush.bf16.msra.mxu2 %v2627_v6  ;;  %v2617_v6 = vpack.c.bf16 %v4093_v31, %v4091_v38  ;;  %v2618_v38 = vpack.c.bf16 %v4096_v44, %v4094_v43  ;;  %v4126_v31 = vld [vmem:[%s7457_s16 + $0x320] sm:$0xff]  ;;  %v4135_v43 = vld [vmem:[%s7457_s16 + $0x368] sm:$0xff]  ;;  %v4137_v44 = vld [vmem:[%s7457_s16 + $0x378] sm:$0xff] }
 0x8a4   :  { %2650 = vmatpush.bf16.msra.mxu2 %v2625_v51  ;;  %v2389_v51 = vpack.c.bf16 %v2357_v35, %v2355_v36 }
 0x8a6   :  { %2542 = vmatpush.bf16.msrb.mxu1 %v2389_v51  ;;  %v4090_v51 = vld [vmem:[%s7457_s16 + $0x220] sm:$0xff] }
 0x8a8   :  { %2651 = vmatpush.bf16.msra.mxu2 %v2623_v18  ;;  %v2626_v18 = vpack.c.bf16 %v4112_v59, %v4110_v13 }
 0x8aa   :  { %2749 = vmatpush.bf16.msra.mxu1 %v2747_v19  ;;  %2631 = vmatpush.bf16.msra.mxu3 %v2626_v18 }
 0x8ac   :  { %2652 = vmatpush.bf16.msra.mxu2 %v2621_v4  ;;  %v4138_v4 = vld [vmem:[%s7457_s16 + $0x380] sm:$0xff] }
 0x8ad   :  { %v2741_v16 = vpack.c.bf16 %v4140_v46, %v4138_v4  ;;  %v4145_v4 = vld [vmem:[%s7457_s16 + $0x3b8] sm:$0xff] }
 0x8ae   :  { %2750 = vmatpush.bf16.msra.mxu1 %v2745_v12  ;;  %2632 = vmatpush.bf16.msra.mxu3 %v2624_v10  ;;  %v4149_v12 = vld [vmem:[%s7457_s16 + $0x3d8] sm:$0xff]  ;;  %v4171_v10 = vld [vmem:[%s7457_s16 + $0x468] sm:$0xff]  ;;  %v2744_v46 = vpack.c.bf16 %v4145_v4, %v4143_v33  ;;  %v4186_v4 = vld [vmem:[%s7457_s16 + $0x4e0] sm:$0xff] }
 0x8af   :  { %v2746_v18 = vpack.c.bf16 %v4149_v12, %v4147_v40  ;;  %v4388_v40 = vld [vmem:[%s7492_s12 + $0x60] sm:$0xff]  ;;  %v4393_v33 = vld [vmem:[%s7492_s12 + $0x88] sm:$0x3] }
 0x8b0   :  { %2653 = vmatpush.bf16.msra.mxu2 %v2619_v24  ;;  %v4130_v24 = vld [vmem:[%s7457_s16 + $0x340] sm:$0xff] }
 0x8b1   :  { %v2737_v23 = vpack.c.bf16 %v4132_v54, %v4130_v24  ;;  %v4169_v54 = vld [vmem:[%s7457_s16 + $0x458] sm:$0xff] }
 0x8b2   :  { %2751 = vmatpush.bf16.msra.mxu1 %v2743_v30  ;;  %2633 = vmatpush.bf16.msra.mxu3 %v2622_v17  ;;  %v4177_v30 = vld [vmem:[%s7457_s16 + $0x498] sm:$0xff]  ;;  %v4139_v17 = vld [vmem:[%s7457_s16 + $0x388] sm:$0xff] }
 0x8b3   :  { %v2861_v58 = vpack.c.bf16 %v4177_v30, %v4175_v28  ;;  %v2742_v37 = vpack.c.bf16 %v4141_v0, %v4139_v17  ;;  %v4390_v28 = vld [vmem:[%s7492_s12 + $0x70] sm:$0x3]  ;;  %v4391_v30 = vld [vmem:[%s7492_s12 + $0x78] sm:$0xff]  ;;  %v4178_v0 = vld [vmem:[%s7457_s16 + $0x4a0] sm:$0xff] }
 0x8b4   :  { %2654 = vmatpush.bf16.msra.mxu2 %v2617_v6  ;;  %v4128_v6 = vld [vmem:[%s7457_s16 + $0x330] sm:$0xff] }
 0x8b5   :  { %v2735_v35 = vpack.c.bf16 %v4128_v6, %v4126_v31  ;;  %v4163_v31 = vld [vmem:[%s7457_s16 + $0x428] sm:$0xff]  ;;  %v4165_v6 = vld [vmem:[%s7457_s16 + $0x438] sm:$0xff] }
 0x8b6   :  { %2752 = vmatpush.bf16.msra.mxu1 %v2741_v16  ;;  %2634 = vmatpush.bf16.msra.mxu3 %v2620_v22  ;;  %v4173_v16 = vld [vmem:[%s7457_s16 + $0x478] sm:$0xff]  ;;  %v4167_v22 = vld [vmem:[%s7457_s16 + $0x448] sm:$0xff] }
 0x8b7   :  { %v2859_v7 = vpack.c.bf16 %v4173_v16, %v4171_v10  ;;  %v4188_v10 = vld [vmem:[%s7457_s16 + $0x4f0] sm:$0xff]  ;;  %v4182_v16 = vld [vmem:[%s7457_s16 + $0x4c0] sm:$0xff] }
 0x8b8   :  { %2655 = vmatpush.bf16.msra.mxu2 %v2615_v11  ;;  %v2616_v11 = vpack.c.bf16 %v4092_v20, %v4090_v51  ;;  %v4131_v20 = vld [vmem:[%s7457_s16 + $0x348] sm:$0xff] }
 0x8ba   :  { %2753 = vmatpush.bf16.msra.mxu1 %v2739_v9  ;;  %2635 = vmatpush.bf16.msra.mxu3 %v2618_v38  ;;  %v2740_v38 = vpack.c.bf16 %v4137_v44, %v4135_v43  ;;  %v4166_v44 = vld [vmem:[%s7457_s16 + $0x440] sm:$0xff] }
 0x8be   :  { %2754 = vmatpush.bf16.msra.mxu1 %v2737_v23  ;;  %2636 = vmatpush.bf16.msra.mxu3 %v2616_v11  ;;  %v2857_v23 = vpack.c.bf16 %v4169_v54, %v4167_v22  ;;  %v4170_v54 = vld [vmem:[%s7457_s16 + $0x460] sm:$0xff] }
 0x8c2   :  { %2755 = vmatpush.bf16.msra.mxu1 %v2735_v35  ;;  %v2855_v35 = vpack.c.bf16 %v4165_v6, %v4163_v31 }
 0x8f9   :  { %v2421_v25 = vpop.f32.mrf.mxu1 }
 0x8fe   :  { %v2345_v34 = vpop.f32.mrf.mxu2 }
 0x901   :  { %v2424_v3 = vpop.f32.mrf.mxu1 }
 0x902   :  { %v2463_v42 = vpack.c.bf16 %v2424_v3, %v2421_v25  ;;  %v4124_v25 = vld [vmem:[%s7457_s16 + $0x310] sm:$0xff]  ;;  %v4189_v3 = vld [vmem:[%s7457_s16 + $0x4f8] sm:$0xff] }
 0x904   :  { %2489 = vmatmul.bf16.vlgmr.msra.gmra.mxu0 %v2463_v42  ;;  %2507 = vmatmul.bf16.vlgmr.msrb.gmra.mxu3 %v2463_v42  ;;  %v2733_v42 = vpack.c.bf16 %v4124_v25, %v4122_v32  ;;  %v4133_v32 = vld [vmem:[%s7457_s16 + $0x358] sm:$0xff] }
 0x905   :  { %4118 = vmatpush.msk.msra.mxu0 %vm441_vm6, %v6151_v8 }
 0x906   :  { %v2348_v49 = vpop.f32.mrf.mxu2  ;;  %2756 = vmatpush.bf16.msra.mxu1 %v2733_v42  ;;  %v4159_v42 = vld [vmem:[%s7457_s16 + $0x408] sm:$0xff] }
 0x907   :  { %2686 = vmatpush.msra.mxu0 %v6159_v57  ;;  %v2386_v14 = vpack.c.bf16 %v2348_v49, %v2345_v34  ;;  %v4187_v34 = vld [vmem:[%s7457_s16 + $0x4e8] sm:$0xff] }
 0x908   :  { %v2867_v49 = vpack.c.bf16 %v4189_v3, %v4187_v34  ;;  %v2738_v34 = vpack.c.bf16 %v4133_v32, %v4131_v20  ;;  %v4162_v32 = vld [vmem:[%s7457_s16 + $0x420] sm:$0xff] }
 0x909   :  { %2687 = vmatpush.msra.mxu0 %v6167_v60  ;;  %2525 = vmatmul.bf16.vlgmr.msrb.gmra.mxu2 %v2386_v14  ;;  %v2427_v55 = vpop.f32.mrf.mxu1 }
 0x90a   :  { %4154 = vmatpush.msk.msrb.mxu2 %vm441_vm6, %v6151_v8  ;;  %2543 = vmatmul.bf16.vlgmr.msrb.gmra.mxu1 %v2386_v14  ;;  %v2464_v27 = vpack.c.bf16 %v2427_v55, %v2427_v55  ;;  %v4086_v14 = vld [vmem:[%s7457_s16 + $0x200] sm:$0xff]  ;;  %v4088_v55 = vld [vmem:[%s7457_s16 + $0x210] sm:$0xff] }
 0x90b   :  { %2886 = vmatpush.bf16.msrb.mxu1 %v2867_v49  ;;  %v4161_v49 = vld [vmem:[%s7457_s16 + $0x418] sm:$0xff] }
 0x90c   :  { %2805 = vmatpush.msrb.mxu2 %v6159_v57 }
 0x90e   :  { %2806 = vmatpush.msrb.mxu2 %v6167_v60  ;;  %v2351_v63 = vpop.f32.mrf.mxu2 }
 0x90f   :  { %v2387_v47 = vpack.c.bf16 %v2351_v63, %v2351_v63 }
 0x914   :  { %2494 = vmatmul.bf16.gmra.mxu0 %v2464_v27  ;;  %2512 = vmatmul.bf16.gmra.mxu3 %v2464_v27 }
 0x919   :  { %2530 = vmatmul.bf16.gmra.mxu2 %v2387_v47 }
 0x91a   :  { %2548 = vmatmul.bf16.gmra.mxu1 %v2387_v47  ;;  %v2614_v47 = vpack.c.bf16 %v4088_v55, %v4086_v14  ;;  %v2853_v14 = vpack.c.bf16 %v4161_v49, %v4159_v42  ;;  %v4127_v55 = vld [vmem:[%s7457_s16 + $0x328] sm:$0xff]  ;;  %v4160_v42 = vld [vmem:[%s7457_s16 + $0x410] sm:$0xff]  ;;  %v4218_v49 = vld [vmem:[%s7457_s16 + $0x5c0] sm:$0xff] }
 0x91c   :  { %2637 = vmatpush.bf16.msra.mxu3 %v2614_v47 }
 0x924   :  { %4083 = vmatmul.msk.f32.vlgmr.msrb.gmra.mxu0 %vm871_vm12, %v4382_v53 }
 0x92c   :  { %4084 = vmatmul.msk.f32.gmra.mxu0 %vm871_vm12, %v4383_v5 }
 0x934   :  { %4085 = vmatmul.msk.f32.gmra.mxu0 %vm871_vm12, %v4384_v1  ;;  %v4183_v1 = vld [vmem:[%s7457_s16 + $0x4c8] sm:$0xff] }
 0x93c   :  { %4119 = vmatmul.msk.f32.vlgmr.msra.gmra.mxu0 %vm871_vm12, %v4385_v41  ;;  %v4185_v41 = vld [vmem:[%s7457_s16 + $0x4d8] sm:$0xff] }
 0x944   :  { %4120 = vmatmul.msk.f32.gmra.mxu0 %vm871_vm12, %v4386_v2  ;;  %v2865_v2 = vpack.c.bf16 %v4185_v41, %v4183_v1  ;;  %v4123_v1 = vld [vmem:[%s7457_s16 + $0x308] sm:$0xff]  ;;  %v4125_v41 = vld [vmem:[%s7457_s16 + $0x318] sm:$0xff] }
 0x946   :  { %2887 = vmatpush.bf16.msrb.mxu1 %v2865_v2  ;;  %v2734_v2 = vpack.c.bf16 %v4125_v41, %v4123_v1 }
 0x94a   :  { %2888 = vmatpush.bf16.msrb.mxu1 %v2863_v48 }
 0x94c   :  { %4121 = vmatmul.msk.f32.gmra.mxu0 %vm871_vm12, %v4387_v52  ;;  %v4151_v52 = vld [vmem:[%s7457_s16 + $0x3e8] sm:$0xff] }
 0x94d   :  { %v2748_v21 = vpack.c.bf16 %v4153_v50, %v4151_v52 }
 0x94e   :  { %2889 = vmatpush.bf16.msrb.mxu1 %v2861_v58  ;;  %v4392_v58 = vld [vmem:[%s7492_s12 + $0x80] sm:$0xff] }
 0x94f   :  { %2767 = vmatpush.bf16.msrb.mxu3 %v2748_v21 }
 0x952   :  { %2890 = vmatpush.bf16.msrb.mxu1 %v2859_v7  ;;  %v4184_v7 = vld [vmem:[%s7457_s16 + $0x4d0] sm:$0xff] }
 0x953   :  { %2768 = vmatpush.bf16.msrb.mxu3 %v2746_v18  ;;  %v2864_v17 = vpack.c.bf16 %v4184_v7, %v4182_v16  ;;  %v4202_v7 = vld [vmem:[%s7457_s16 + $0x540] sm:$0xff] }
 0x956   :  { %2891 = vmatpush.bf16.msrb.mxu1 %v2857_v23  ;;  %v4172_v23 = vld [vmem:[%s7457_s16 + $0x470] sm:$0xff] }
 0x957   :  { %2769 = vmatpush.bf16.msrb.mxu3 %v2744_v46  ;;  %v2866_v46 = vpack.c.bf16 %v4188_v10, %v4186_v4  ;;  %v2858_v43 = vpack.c.bf16 %v4172_v23, %v4170_v54  ;;  %v4215_v4 = vld [vmem:[%s7457_s16 + $0x5a8] sm:$0xff]  ;;  %v4198_v23 = vld [vmem:[%s7457_s16 + $0x520] sm:$0xff] }
 0x959   :  { %2868 = vmatpush.bf16.msrb.mxu0 %v2866_v46 }
 0x95a   :  { %2892 = vmatpush.bf16.msrb.mxu1 %v2855_v35 }
 0x95b   :  { %2770 = vmatpush.bf16.msrb.mxu3 %v2742_v37  ;;  %v4174_v37 = vld [vmem:[%s7457_s16 + $0x480] sm:$0xff] }
 0x95d   :  { %2869 = vmatpush.bf16.msrb.mxu0 %v2864_v17  ;;  %v4204_v17 = vld [vmem:[%s7457_s16 + $0x550] sm:$0xff] }
 0x95e   :  { %2893 = vmatpush.bf16.msrb.mxu1 %v2853_v14 }
 0x95f   :  { %2771 = vmatpush.bf16.msrb.mxu3 %v2740_v38  ;;  %v4168_v38 = vld [vmem:[%s7457_s16 + $0x450] sm:$0xff] }
 0x960   :  { %v2856_v31 = vpack.c.bf16 %v4168_v38, %v4166_v44  ;;  %v4207_v44 = vld [vmem:[%s7457_s16 + $0x568] sm:$0xff] }
 0x963   :  { %2772 = vmatpush.bf16.msrb.mxu3 %v2738_v34 }
 0x981   :  { %v2490_v36 = vpop.f32.mrf.mxu0 }
 0x987   :  { %v2508_v27 = vpop.f32.mrf.mxu3  ;;  %v2544_v63 = vpop.f32.mrf.mxu1 }
 0x988   :  { %v6519_v53 = vadd.f32 %v2544_v63, %v2508_v27  ;;  %v4129_v27 = vld [vmem:[%s7457_s16 + $0x338] sm:$0xff] }
 0x989   :  { %v6521_v5 = vpop.f32.mrf.mxu0  ;;  %v2736_v63 = vpack.c.bf16 %v4129_v27, %v4127_v55 }
 0x98b   :  { %2773 = vmatpush.bf16.msrb.mxu3 %v2736_v63  ;;  %v4220_v63 = vld [vmem:[%s7457_s16 + $0x5d0] sm:$0xff] }
 0x98c   :  { %v2526_v19 = vpop.f32.mrf.mxu2  ;;  %v2983_v41 = vpack.c.bf16 %v4220_v63, %v4218_v49 }
 0x98d   :  { %v6541_v15 = vadd.f32 %v2526_v19, %v2490_v36 }
 0x98f   :  { %v6549_v13 = vpop.f32.mrf.mxu3  ;;  %v6551_v59 = vpop.f32.mrf.mxu1  ;;  %2774 = vmatpush.bf16.msrb.mxu3 %v2734_v2 }
 0x990   :  { %v2547_v55 = vadd.f32 %v6551_v59, %v6549_v13  ;;  %v4216_v13 = vld [vmem:[%s7457_s16 + $0x5b0] sm:$0xff]  ;;  %v4223_v59 = vld [vmem:[%s7457_s16 + $0x5e8] sm:$0xff] }
 0x991   :  { %v2495_v62 = vpop.f32.mrf.mxu0 }
 0x994   :  { %v6571_v26 = vpop.f32.mrf.mxu2 }
 0x995   :  { %v2529_v14 = vadd.f32 %v6571_v26, %v6521_v5  ;;  %v4214_v5 = vld [vmem:[%s7457_s16 + $0x5a0] sm:$0xff] }
 0x996   :  { %v2981_v26 = vpack.c.bf16 %v4216_v13, %v4214_v5 }
 0x997   :  { %v2513_v61 = vpop.f32.mrf.mxu3  ;;  %v2549_v9 = vpop.f32.mrf.mxu1 }
 0x998   :  { %v6579_v29 = vadd.f32 %v2549_v9, %v2513_v61  ;;  %v4180_v61 = vld [vmem:[%s7457_s16 + $0x4b0] sm:$0xff] }
 0x999   :  { %v2497_v24 = vpop.f32.mrf.mxu0  ;;  %v2862_v9 = vpack.c.bf16 %v4180_v61, %v4178_v0  ;;  %v4211_v0 = vld [vmem:[%s7457_s16 + $0x588] sm:$0xff]  ;;  %v2975_v61 = vpack.c.bf16 %v4204_v17, %v4202_v7  ;;  %v4254_v17 = vld [vmem:[%s7457_s16 + $0x6c0] sm:$0xff] }
 0x99a   :  { %v4176_v24 = vld [vmem:[%s7457_s16 + $0x490] sm:$0xff] }
 0x99b   :  { %2870 = vmatpush.bf16.msrb.mxu0 %v2862_v9  ;;  %v2860_v22 = vpack.c.bf16 %v4176_v24, %v4174_v37  ;;  %v4213_v9 = vld [vmem:[%s7457_s16 + $0x598] sm:$0xff] }
 0x99c   :  { %v2531_v36 = vpop.f32.mrf.mxu2 }
 0x99d   :  { %v6599_v51 = vadd.f32 %v2531_v36, %v2495_v62  ;;  %v4389_v62 = vld [vmem:[%s7492_s12 + $0x68] sm:$0xff] }
 0x99f   :  { %v2515_v11 = vpop.f32.mrf.mxu3  ;;  %v2551_v25 = vpop.f32.mrf.mxu1  ;;  %2871 = vmatpush.bf16.msrb.mxu0 %v2860_v22  ;;  %v2980_v22 = vpack.c.bf16 %v4213_v9, %v4211_v0  ;;  %v4256_v0 = vld [vmem:[%s7457_s16 + $0x6d0] sm:$0xff] }
 0x9a0   :  { %v4164_v11 = vld [vmem:[%s7457_s16 + $0x430] sm:$0xff]  ;;  %v4222_v25 = vld [vmem:[%s7457_s16 + $0x5e0] sm:$0xff]  ;;  %v3102_v9 = vpack.c.bf16 %v4256_v0, %v4254_v17 }
 0x9a1   :  { %v2570_v3 = vpop.f32.mrf.mxu0  ;;  %v2854_v34 = vpack.c.bf16 %v4164_v11, %v4162_v32  ;;  %v4196_v32 = vld [vmem:[%s7457_s16 + $0x510] sm:$0xff]  ;;  %v4203_v11 = vld [vmem:[%s7457_s16 + $0x548] sm:$0xff]  ;;  %v4282_v0 = vld [vmem:[%s7457_s16 + $0x780] sm:$0xff] }
 0x9a3   :  { %2872 = vmatpush.bf16.msrb.mxu0 %v2858_v43  ;;  %v4200_v43 = vld [vmem:[%s7457_s16 + $0x530] sm:$0xff] }
 0x9a4   :  { %v2533_v47 = vpop.f32.mrf.mxu2 }
 0x9a7   :  { %2873 = vmatpush.bf16.msrb.mxu0 %v2856_v31  ;;  %v2973_v31 = vpack.c.bf16 %v4200_v43, %v4198_v23  ;;  %v4251_v23 = vld [vmem:[%s7457_s16 + $0x6a8] sm:$0xff] }
 0x9a9   :  { %v2573_v52 = vpop.f32.mrf.mxu0 }
 0x9aa   :  { %v2612_v50 = vpack.c.bf16 %v2573_v52, %v2570_v3  ;;  %v4158_v3 = vld [vmem:[%s7457_s16 + $0x400] sm:$0xff] }
 0x9ab   :  { %2874 = vmatpush.bf16.msrb.mxu0 %v2854_v34  ;;  %v2852_v27 = vpack.c.bf16 %v4160_v42, %v4158_v3  ;;  %v4205_v34 = vld [vmem:[%s7457_s16 + $0x558] sm:$0xff] }
 0x9ac   :  { %2638 = vmatmul.bf16.vlgmr.msra.gmra.mxu3 %v2612_v50  ;;  %2656 = vmatmul.bf16.vlgmr.msra.gmra.mxu2 %v2612_v50  ;;  %v4225_v50 = vld [vmem:[%s7457_s16 + $0x5f8] sm:$0xff]  ;;  %v2976_v3 = vpack.c.bf16 %v4205_v34, %v4203_v11  ;;  %v4242_v34 = vld [vmem:[%s7457_s16 + $0x660] sm:$0xff] }
 0x9ad   :  { %4190 = vmatpush.msk.msra.mxu2 %vm441_vm6, %v6151_v8  ;;  %v4249_v11 = vld [vmem:[%s7457_s16 + $0x698] sm:$0xff] }
 0x9af   :  { %2924 = vmatpush.msra.mxu2 %v6159_v57  ;;  %2875 = vmatpush.bf16.msrb.mxu0 %v2852_v27 }
 0x9b1   :  { %2925 = vmatpush.msra.mxu2 %v6167_v60  ;;  %v2576_v21 = vpop.f32.mrf.mxu0 }
 0x9b2   :  { %v2613_v19 = vpack.c.bf16 %v2576_v21, %v2576_v21  ;;  %v2986_v21 = vpack.c.bf16 %v4225_v50, %v4223_v59 }
 0x9b4   :  { %3005 = vmatpush.bf16.msra.mxu0 %v2986_v21 }
 0x9b9   :  { %v2689_v45 = vpop.f32.mrf.mxu0 }
 0x9bc   :  { %2643 = vmatmul.bf16.gmra.mxu3 %v2613_v19  ;;  %2661 = vmatmul.bf16.gmra.mxu2 %v2613_v19  ;;  %v4210_v19 = vld [vmem:[%s7457_s16 + $0x580] sm:$0xff] }
 0x9c1   :  { %v2692_v39 = vpop.f32.mrf.mxu0 }
 0x9c2   :  { %v2731_v48 = vpack.c.bf16 %v2692_v39, %v2689_v45  ;;  %v4212_v45 = vld [vmem:[%s7457_s16 + $0x590] sm:$0xff]  ;;  %v4219_v39 = vld [vmem:[%s7457_s16 + $0x5c8] sm:$0xff] }
 0x9c4   :  { %2757 = vmatmul.bf16.vlgmr.msra.gmra.mxu1 %v2731_v48 }
 0x9c5   :  { %4226 = vmatpush.msk.msra.mxu1 %vm441_vm6, %v6151_v8 }
 0x9c7   :  { %3043 = vmatpush.msra.mxu1 %v6159_v57 }
 0x9c9   :  { %3044 = vmatpush.msra.mxu1 %v6167_v60  ;;  %v2695_v12 = vpop.f32.mrf.mxu0 }
 0x9ca   :  { %v2732_v18 = vpack.c.bf16 %v2695_v12, %v2695_v12 }
 0x9cc   :  { %2775 = vmatmul.bf16.vlgmr.msrb.gmra.mxu3 %v2731_v48  ;;  %4155 = vmatmul.msk.f32.vlgmr.msrb.gmra.mxu2 %vm871_vm12, %v4388_v40  ;;  %v2979_v48 = vpack.c.bf16 %v4212_v45, %v4210_v19  ;;  %v4221_v40 = vld [vmem:[%s7457_s16 + $0x5d8] sm:$0xff] }
 0x9d4   :  { %2762 = vmatmul.bf16.gmra.mxu1 %v2732_v18  ;;  %4156 = vmatmul.msk.f32.gmra.mxu2 %vm871_vm12, %v4389_v62  ;;  %v2984_v62 = vpack.c.bf16 %v4221_v40, %v4219_v39  ;;  %v4394_v40 = vld [vmem:[%s7492_s12 + $0x90] sm:$0xff] }
 0x9d6   :  { %3006 = vmatpush.bf16.msra.mxu0 %v2984_v62  ;;  %v4395_v62 = vld [vmem:[%s7492_s12 + $0x98] sm:$0xff] }
 0x9dc   :  { %2780 = vmatmul.bf16.gmra.mxu3 %v2732_v18  ;;  %4157 = vmatmul.msk.f32.gmra.mxu2 %vm871_vm12, %v4390_v28 }
 0x9e4   :  { %4191 = vmatmul.msk.f32.vlgmr.msra.gmra.mxu2 %vm871_vm12, %v4391_v30 }
 0x9ec   :  { %4192 = vmatmul.msk.f32.gmra.mxu2 %vm871_vm12, %v4392_v58  ;;  %v4206_v58 = vld [vmem:[%s7457_s16 + $0x560] sm:$0xff] }
 0x9f4   :  { %4193 = vmatmul.msk.f32.gmra.mxu2 %vm871_vm12, %v4393_v33  ;;  %v4208_v33 = vld [vmem:[%s7457_s16 + $0x570] sm:$0xff] }
 0x9f5   :  { %v2977_v46 = vpack.c.bf16 %v4208_v33, %v4206_v58  ;;  %v4401_v58 = vld [vmem:[%s7492_s12 + $0xc8] sm:$0xff]  ;;  %v4402_v33 = vld [vmem:[%s7492_s12 + $0xd0] sm:$0x3] }
 0xa2f   :  { %v2639_v6 = vpop.f32.mrf.mxu3  ;;  %v2657_v36 = vpop.f32.mrf.mxu2 }
 0xa30   :  { %v2666_v35 = vadd.f32 %v2639_v6, %v6541_v15  ;;  %v6695_v20 = vadd.f32 %v2657_v36, %v6519_v53  ;;  %v4224_v15 = vld [vmem:[%s7457_s16 + $0x5f0] sm:$0xff]  ;;  %v4209_v6 = vld [vmem:[%s7457_s16 + $0x578] sm:$0xff] }
 0xa31   :  { %v2985_v53 = vpack.c.bf16 %v4224_v15, %v4222_v25  ;;  %v2978_v36 = vpack.c.bf16 %v4209_v6, %v4207_v44  ;;  %v4253_v44 = vld [vmem:[%s7457_s16 + $0x6b8] sm:$0xff]  ;;  %v4246_v6 = vld [vmem:[%s7457_s16 + $0x680] sm:$0xff] }
 0xa33   :  { %2987 = vmatpush.bf16.msra.mxu3 %v2985_v53 }
 0xa37   :  { %v2641_v47 = vpop.f32.mrf.mxu3  ;;  %v2659_v1 = vpop.f32.mrf.mxu2  ;;  %2988 = vmatpush.bf16.msra.mxu3 %v2983_v41 }
 0xa38   :  { %v2668_v2 = vadd.f32 %v2641_v47, %v2529_v14  ;;  %v6725_v52 = vadd.f32 %v2659_v1, %v2547_v55  ;;  %v4199_v14 = vld [vmem:[%s7457_s16 + $0x528] sm:$0xff]  ;;  %v4201_v55 = vld [vmem:[%s7457_s16 + $0x538] sm:$0xff] }
 0xa39   :  { %v2974_v63 = vpack.c.bf16 %v4201_v55, %v4199_v14  ;;  %v4195_v47 = vld [vmem:[%s7457_s16 + $0x508] sm:$0xff]  ;;  %v4238_v55 = vld [vmem:[%s7457_s16 + $0x640] sm:$0xff] }
 0xa3b   :  { %2989 = vmatpush.bf16.msra.mxu3 %v2981_v26 }
 0xa3f   :  { %v2644_v12 = vpop.f32.mrf.mxu3  ;;  %v2662_v18 = vpop.f32.mrf.mxu2  ;;  %2990 = vmatpush.bf16.msra.mxu3 %v2979_v48 }
 0xa40   :  { %v2670_v28 = vadd.f32 %v2644_v12, %v6599_v51  ;;  %v6753_v30 = vadd.f32 %v2662_v18, %v6579_v29  ;;  %v4217_v29 = vld [vmem:[%s7457_s16 + $0x5b8] sm:$0xff] }
 0xa41   :  { %v2758_v10 = vpop.f32.mrf.mxu1  ;;  %v2982_v16 = vpack.c.bf16 %v4217_v29, %v4215_v4  ;;  %v4258_v4 = vld [vmem:[%s7457_s16 + $0x6e0] sm:$0xff] }
 0xa42   :  { %v6767_v51 = vadd.f32 %v2758_v10, %v2666_v35  ;;  %v4194_v35 = vld [vmem:[%s7457_s16 + $0x500] sm:$0xff]  ;;  %v4260_v10 = vld [vmem:[%s7457_s16 + $0x6f0] sm:$0xff] }
 0xa43   :  { %2991 = vmatpush.bf16.msra.mxu3 %v2977_v46  ;;  %3007 = vmatpush.bf16.msra.mxu0 %v2982_v16  ;;  %v2971_v25 = vpack.c.bf16 %v4196_v32, %v4194_v35  ;;  %v4259_v46 = vld [vmem:[%s7457_s16 + $0x6e8] sm:$0xff]  ;;  %v3104_v29 = vpack.c.bf16 %v4260_v10, %v4258_v4  ;;  %v4261_v16 = vld [vmem:[%s7457_s16 + $0x6f8] sm:$0xff] }
 0xa44   :  { %v3105_v7 = vpack.c.bf16 %v4261_v16, %v4259_v46  ;;  %v4247_v35 = vld [vmem:[%s7457_s16 + $0x688] sm:$0xff]  ;;  %v4288_v16 = vld [vmem:[%s7457_s16 + $0x7b0] sm:$0xff] }
 0xa45   :  { %3106 = vmatpush.bf16.msrb.mxu2 %v3104_v29  ;;  %v4286_v29 = vld [vmem:[%s7457_s16 + $0x7a0] sm:$0xff] }
 0xa47   :  { %v2646_v37 = vpop.f32.mrf.mxu3  ;;  %v2664_v24 = vpop.f32.mrf.mxu2  ;;  %2992 = vmatpush.bf16.msra.mxu3 %v2975_v61  ;;  %3008 = vmatpush.bf16.msra.mxu0 %v2980_v22  ;;  %v4255_v61 = vld [vmem:[%s7457_s16 + $0x6c8] sm:$0xff]  ;;  %v4250_v22 = vld [vmem:[%s7457_s16 + $0x6a0] sm:$0xff] }
 0xa48   :  { %v4257_v37 = vld [vmem:[%s7457_s16 + $0x6d8] sm:$0xff] }
 0xa49   :  { %v2760_v54 = vpop.f32.mrf.mxu1  ;;  %v3103_v24 = vpack.c.bf16 %v4257_v37, %v4255_v61  ;;  %3107 = vmatpush.bf16.msrb.mxu2 %v3102_v9  ;;  %v4284_v61 = vld [vmem:[%s7457_s16 + $0x790] sm:$0xff]  ;;  %v4291_v9 = vld [vmem:[%s7457_s16 + $0x7c8] sm:$0xff] }
 0xa4a   :  { %v6790_v38 = vadd.f32 %v2760_v54, %v2668_v2  ;;  %v4252_v54 = vld [vmem:[%s7457_s16 + $0x6b0] sm:$0xff]  ;;  %v3217_v37 = vpack.c.bf16 %v4284_v61, %v4282_v0 }
 0xa4b   :  { %2993 = vmatpush.bf16.msra.mxu3 %v2973_v31  ;;  %3009 = vmatpush.bf16.msra.mxu0 %v2978_v36  ;;  %v3100_v43 = vpack.c.bf16 %v4252_v54, %v4250_v22  ;;  %v3101_v31 = vpack.c.bf16 %v4253_v44, %v4251_v23  ;;  %v4248_v36 = vld [vmem:[%s7457_s16 + $0x690] sm:$0xff] }
 0xa4c   :  { %v3098_v32 = vpack.c.bf16 %v4248_v36, %v4246_v6  ;;  %v4280_v6 = vld [vmem:[%s7457_s16 + $0x770] sm:$0xff]  ;;  %v4287_v36 = vld [vmem:[%s7457_s16 + $0x7a8] sm:$0xff] }
 0xa4d   :  { %3108 = vmatpush.bf16.msrb.mxu2 %v3100_v43  ;;  %v4320_v61 = vld [vmem:[%s7457_s16 + $0x890] sm:$0xff] }
 0xa4f   :  { %v2776_v15 = vpop.f32.mrf.mxu3  ;;  %v2808_v53 = vpop.f32.mrf.mxu2  ;;  %2994 = vmatpush.bf16.msra.mxu3 %v2971_v25  ;;  %3010 = vmatpush.bf16.msra.mxu0 %v2976_v3  ;;  %v3099_v25 = vpack.c.bf16 %v4249_v11, %v4247_v35  ;;  %v4276_v11 = vld [vmem:[%s7457_s16 + $0x750] sm:$0xff] }
 0xa50   :  { %v6808_v42 = vadd.f32 %v2776_v15, %v6695_v20  ;;  %v4197_v20 = vld [vmem:[%s7457_s16 + $0x518] sm:$0xff]  ;;  %v4244_v15 = vld [vmem:[%s7457_s16 + $0x670] sm:$0xff] }
 0xa51   :  { %v2763_v49 = vpop.f32.mrf.mxu1  ;;  %v2972_v1 = vpack.c.bf16 %v4197_v20, %v4195_v47  ;;  %3109 = vmatpush.bf16.msrb.mxu2 %v3098_v32  ;;  %v3096_v3 = vpack.c.bf16 %v4244_v15, %v4242_v34  ;;  %v4239_v47 = vld [vmem:[%s7457_s16 + $0x648] sm:$0xff]  ;;  %v4274_v32 = vld [vmem:[%s7457_s16 + $0x740] sm:$0xff]  ;;  %v4285_v15 = vld [vmem:[%s7457_s16 + $0x798] sm:$0xff] }
 0xa52   :  { %v6816_v27 = vadd.f32 %v2763_v49, %v2670_v28  ;;  %v4396_v28 = vld [vmem:[%s7492_s12 + $0xa0] sm:$0x3]  ;;  %v4245_v49 = vld [vmem:[%s7457_s16 + $0x678] sm:$0xff]  ;;  %v3213_v34 = vpack.c.bf16 %v4276_v11, %v4274_v32 }
 0xa53   :  { %3011 = vmatpush.bf16.msra.mxu0 %v2974_v63  ;;  %3124 = vmatpush.bf16.msrb.mxu3 %v3105_v7  ;;  %v4240_v63 = vld [vmem:[%s7457_s16 + $0x650] sm:$0xff]  ;;  %v4295_v7 = vld [vmem:[%s7457_s16 + $0x7e8] sm:$0xff]  ;;  %v4310_v11 = vld [vmem:[%s7457_s16 + $0x840] sm:$0xff] }
 0xa54   :  { %v3094_v20 = vpack.c.bf16 %v4240_v63, %v4238_v55  ;;  %v4272_v55 = vld [vmem:[%s7457_s16 + $0x730] sm:$0xff]  ;;  %v4279_v63 = vld [vmem:[%s7457_s16 + $0x768] sm:$0xff] }
 0xa55   :  { %3110 = vmatpush.bf16.msrb.mxu2 %v3096_v3 }
 0xa57   :  { %v2778_v41 = vpop.f32.mrf.mxu3  ;;  %v2811_v2 = vpop.f32.mrf.mxu2  ;;  %3012 = vmatpush.bf16.msra.mxu0 %v2972_v1  ;;  %3125 = vmatpush.bf16.msrb.mxu3 %v3103_v24  ;;  %v4241_v1 = vld [vmem:[%s7457_s16 + $0x658] sm:$0xff] }
 0xa58   :  { %v6825_v5 = vadd.f32 %v2778_v41, %v6725_v52  ;;  %v2850_v13 = vpack.c.bf16 %v2811_v2, %v2808_v53  ;;  %v4243_v53 = vld [vmem:[%s7457_s16 + $0x668] sm:$0xff]  ;;  %v4293_v24 = vld [vmem:[%s7457_s16 + $0x7d8] sm:$0xff] }
 0xa59   :  { %v2765_v59 = vpop.f32.mrf.mxu1  ;;  %v3097_v14 = vpack.c.bf16 %v4245_v49, %v4243_v53  ;;  %3111 = vmatpush.bf16.msrb.mxu2 %v3094_v20  ;;  %v3222_v23 = vpack.c.bf16 %v4293_v24, %v4291_v9  ;;  %v4281_v20 = vld [vmem:[%s7457_s16 + $0x778] sm:$0xff]  ;;  %v4327_v9 = vld [vmem:[%s7457_s16 + $0x8c8] sm:$0xff] }
 0xa5a   :  { %2876 = vmatmul.bf16.vlgmr.msrb.gmra.mxu0 %v2850_v13  ;;  %2894 = vmatmul.bf16.vlgmr.msrb.gmra.mxu1 %v2850_v13  ;;  %v3095_v13 = vpack.c.bf16 %v4241_v1, %v4239_v47  ;;  %v4330_v1 = vld [vmem:[%s7457_s16 + $0x8e0] sm:$0xff] }
 0xa5b   :  { %4262 = vmatpush.msk.msrb.mxu1 %vm441_vm6, %v6151_v8  ;;  %3126 = vmatpush.bf16.msrb.mxu3 %v3101_v31  ;;  %v4278_v31 = vld [vmem:[%s7457_s16 + $0x760] sm:$0xff] }
 0xa5c   :  { %v3215_v35 = vpack.c.bf16 %v4280_v6, %v4278_v31  ;;  %v4314_v6 = vld [vmem:[%s7457_s16 + $0x860] sm:$0xff] }
 0xa5d   :  { %3162 = vmatpush.msrb.mxu1 %v6159_v57 }
 0xa5f   :  { %3163 = vmatpush.msrb.mxu1 %v6167_v60  ;;  %v2781_v26 = vpop.f32.mrf.mxu3  ;;  %v2814_v50 = vpop.f32.mrf.mxu2  ;;  %3127 = vmatpush.bf16.msrb.mxu3 %v3099_v25  ;;  %v4283_v25 = vld [vmem:[%s7457_s16 + $0x788] sm:$0xff] }
 0xa60   :  { %v6832_v21 = vadd.f32 %v2781_v26, %v6753_v30  ;;  %v2851_v19 = vpack.c.bf16 %v2814_v50, %v2814_v50  ;;  %v4400_v30 = vld [vmem:[%s7492_s12 + $0xc0] sm:$0xff]  ;;  %v3218_v49 = vpack.c.bf16 %v4285_v15, %v4283_v25  ;;  %v4312_v25 = vld [vmem:[%s7457_s16 + $0x850] sm:$0xff] }
 0xa61   :  { %v4234_v50 = vld [vmem:[%s7457_s16 + $0x620] sm:$0xff] }
 0xa63   :  { %3128 = vmatpush.bf16.msrb.mxu3 %v3097_v14  ;;  %v4270_v14 = vld [vmem:[%s7457_s16 + $0x720] sm:$0xff] }
 0xa64   :  { %v3211_v47 = vpack.c.bf16 %v4272_v55, %v4270_v14  ;;  %v3332_v14 = vpack.c.bf16 %v4312_v25, %v4310_v11 }
 0xa67   :  { %v2927_v52 = vpop.f32.mrf.mxu2  ;;  %v2783_v45 = vpop.f32.mrf.mxu3  ;;  %3129 = vmatpush.bf16.msrb.mxu3 %v3095_v13 }
 0xa6a   :  { %2881 = vmatmul.bf16.gmra.mxu0 %v2851_v19  ;;  %2899 = vmatmul.bf16.gmra.mxu1 %v2851_v19  ;;  %v4236_v19 = vld [vmem:[%s7457_s16 + $0x630] sm:$0xff] }
 0xa6b   :  { %v3092_v45 = vpack.c.bf16 %v4236_v19, %v4234_v50  ;;  %v4266_v19 = vld [vmem:[%s7457_s16 + $0x700] sm:$0xff] }
 0xa6d   :  { %3112 = vmatpush.bf16.msrb.mxu2 %v3092_v45  ;;  %v4275_v45 = vld [vmem:[%s7457_s16 + $0x748] sm:$0xff] }
 0xa6f   :  { %v2930_v39 = vpop.f32.mrf.mxu2 }
 0xa70   :  { %v2969_v48 = vpack.c.bf16 %v2930_v39, %v2927_v52  ;;  %v4235_v52 = vld [vmem:[%s7457_s16 + $0x628] sm:$0xff]  ;;  %v4296_v39 = vld [vmem:[%s7457_s16 + $0x7f0] sm:$0xff] }
 0xa72   :  { %2995 = vmatmul.bf16.vlgmr.msra.gmra.mxu3 %v2969_v48 }
 0xa77   :  { %v2933_v12 = vpop.f32.mrf.mxu2 }
 0xa78   :  { %v2970_v18 = vpack.c.bf16 %v2933_v12, %v2933_v12  ;;  %v4230_v12 = vld [vmem:[%s7457_s16 + $0x600] sm:$0xff] }
 0xa7a   :  { %3013 = vmatmul.bf16.vlgmr.msra.gmra.mxu0 %v2969_v48  ;;  %4227 = vmatmul.msk.f32.vlgmr.msra.gmra.mxu1 %vm871_vm12, %v4394_v40 }
 0xa7b   :  { %4298 = vmatpush.msk.msra.mxu1 %vm441_vm6, %v6151_v8  ;;  %v4397_v8 = vld [vmem:[%s7492_s12 + $0xa8] sm:$0xff] }
 0xa7d   :  { %3281 = vmatpush.msra.mxu1 %v6159_v57  ;;  %v4398_v57 = vld [vmem:[%s7492_s12 + $0xb0] sm:$0xff] }
 0xa7f   :  { %3282 = vmatpush.msra.mxu1 %v6167_v60  ;;  %v4399_v60 = vld [vmem:[%s7492_s12 + $0xb8] sm:$0x3] }
 0xa82   :  { %3000 = vmatmul.bf16.gmra.mxu3 %v2970_v18  ;;  %4228 = vmatmul.msk.f32.gmra.mxu1 %vm871_vm12, %v4395_v62  ;;  %v4231_v62 = vld [vmem:[%s7457_s16 + $0x608] sm:$0xff] }
 0xa8a   :  { %3018 = vmatmul.bf16.gmra.mxu0 %v2970_v18  ;;  %4229 = vmatmul.msk.f32.gmra.mxu1 %vm871_vm12, %v4396_v28  ;;  %v4232_v18 = vld [vmem:[%s7457_s16 + $0x610] sm:$0xff] }
 0xa8b   :  { %v3090_v28 = vpack.c.bf16 %v4232_v18, %v4230_v12 }
 0xa8d   :  { %3113 = vmatpush.bf16.msrb.mxu2 %v3090_v28 }
 0xa92   :  { %4263 = vmatmul.msk.f32.vlgmr.msrb.gmra.mxu1 %vm871_vm12, %v4397_v8  ;;  %v4233_v8 = vld [vmem:[%s7457_s16 + $0x618] sm:$0xff] }
 0xa9a   :  { %4264 = vmatmul.msk.f32.gmra.mxu1 %vm871_vm12, %v4398_v57  ;;  %v4290_v57 = vld [vmem:[%s7457_s16 + $0x7c0] sm:$0xff] }
 0xaa2   :  { %4265 = vmatmul.msk.f32.gmra.mxu1 %vm871_vm12, %v4399_v60  ;;  %v4292_v60 = vld [vmem:[%s7457_s16 + $0x7d0] sm:$0xff] }
 0xaa3   :  { %v3221_v4 = vpack.c.bf16 %v4292_v60, %v4290_v57  ;;  %v4273_v57 = vld [vmem:[%s7457_s16 + $0x738] sm:$0xff]  ;;  %v4322_v60 = vld [vmem:[%s7457_s16 + $0x8a0] sm:$0xff] }
 0xaaa   :  { %4299 = vmatmul.msk.f32.vlgmr.msra.gmra.mxu1 %vm871_vm12, %v4400_v30 }
 0xab2   :  { %4300 = vmatmul.msk.f32.gmra.mxu1 %vm871_vm12, %v4401_v58 }
 0xaba   :  { %4301 = vmatmul.msk.f32.gmra.mxu1 %vm871_vm12, %v4402_v33  ;;  %v3091_v33 = vpack.c.bf16 %v4233_v8, %v4231_v62  ;;  %v4271_v8 = vld [vmem:[%s7457_s16 + $0x728] sm:$0xff] }
 0xad7   :  { %v2877_v41 = vpop.f32.mrf.mxu0  ;;  %v2895_v2 = vpop.f32.mrf.mxu1 }
 0xad8   :  { %v6947_v59 = vadd.f32 %v2877_v41, %v6767_v51  ;;  %v6950_v26 = vadd.f32 %v2895_v2, %v6808_v42  ;;  %v4237_v51 = vld [vmem:[%s7457_s16 + $0x638] sm:$0xff]  ;;  %v4294_v42 = vld [vmem:[%s7457_s16 + $0x7e0] sm:$0xff]  ;;  %v4332_v41 = vld [vmem:[%s7457_s16 + $0x8f0] sm:$0xff]  ;;  %v3216_v2 = vpack.c.bf16 %v4281_v20, %v4279_v63 }
 0xad9   :  { %v3093_v48 = vpack.c.bf16 %v4237_v51, %v4235_v52  ;;  %v3223_v40 = vpack.c.bf16 %v4296_v39, %v4294_v42  ;;  %v3342_v13 = vpack.c.bf16 %v4332_v41, %v4330_v1  ;;  %v4268_v52 = vld [vmem:[%s7457_s16 + $0x710] sm:$0xff]  ;;  %v4277_v39 = vld [vmem:[%s7457_s16 + $0x758] sm:$0xff]  ;;  %v4315_v20 = vld [vmem:[%s7457_s16 + $0x868] sm:$0xff] }
 0xada   :  { %v3209_v42 = vpack.c.bf16 %v4268_v52, %v4266_v19  ;;  %v3214_v62 = vpack.c.bf16 %v4277_v39, %v4275_v45  ;;  %v4317_v1 = vld [vmem:[%s7457_s16 + $0x878] sm:$0xff] }
 0xadb   :  { %3225 = vmatpush.bf16.msrb.mxu0 %v3223_v40  ;;  %3130 = vmatpush.bf16.msrb.mxu3 %v3093_v48  ;;  %v4326_v48 = vld [vmem:[%s7457_s16 + $0x8c0] sm:$0xff]  ;;  %v4328_v40 = vld [vmem:[%s7457_s16 + $0x8d0] sm:$0xff]  ;;  %v3335_v41 = vpack.c.bf16 %v4317_v1, %v4315_v20  ;;  %v4313_v52 = vld [vmem:[%s7457_s16 + $0x858] sm:$0xff] }
 0xadc   :  { %v3340_v28 = vpack.c.bf16 %v4328_v40, %v4326_v48 }
 0xadf   :  { %v2879_v30 = vpop.f32.mrf.mxu0  ;;  %v2897_v58 = vpop.f32.mrf.mxu1  ;;  %3131 = vmatpush.bf16.msrb.mxu3 %v3091_v33  ;;  %3226 = vmatpush.bf16.msrb.mxu0 %v3221_v4  ;;  %v4333_v33 = vld [vmem:[%s7457_s16 + $0x8f8] sm:$0xff] }
 0xae0   :  { %v6989_v10 = vadd.f32 %v2879_v30, %v6790_v38  ;;  %v6992_v46 = vadd.f32 %v2897_v58, %v6825_v5  ;;  %v3219_v38 = vpack.c.bf16 %v4288_v16, %v4286_v29  ;;  %v4297_v5 = vld [vmem:[%s7457_s16 + $0x7f8] sm:$0xff]  ;;  %v3212_v30 = vpack.c.bf16 %v4273_v57, %v4271_v8  ;;  %v4331_v58 = vld [vmem:[%s7457_s16 + $0x8e8] sm:$0xff] }
 0xae1   :  { %v3224_v17 = vpack.c.bf16 %v4297_v5, %v4295_v7  ;;  %v3343_v29 = vpack.c.bf16 %v4333_v33, %v4331_v58  ;;  %v4267_v7 = vld [vmem:[%s7457_s16 + $0x708] sm:$0xff]  ;;  %v4318_v5 = vld [vmem:[%s7457_s16 + $0x880] sm:$0xff]  ;;  %v4305_v8 = vld [vmem:[%s7457_s16 + $0x818] sm:$0xff] }
 0xae3   :  { %3227 = vmatpush.bf16.msrb.mxu0 %v3219_v38  ;;  %3243 = vmatpush.bf16.msra.mxu2 %v3224_v17  ;;  %v4269_v38 = vld [vmem:[%s7457_s16 + $0x718] sm:$0xff] }
 0xae4   :  { %3344 = vmatpush.bf16.msra.mxu3 %v3342_v13  ;;  %v3210_v0 = vpack.c.bf16 %v4269_v38, %v4267_v7  ;;  %v4304_v13 = vld [vmem:[%s7457_s16 + $0x810] sm:$0xff] }
 0xae7   :  { %v2882_v22 = vpop.f32.mrf.mxu0  ;;  %v2900_v54 = vpop.f32.mrf.mxu1  ;;  %3228 = vmatpush.bf16.msrb.mxu0 %v3217_v37  ;;  %3244 = vmatpush.bf16.msra.mxu2 %v3222_v23  ;;  %v4329_v37 = vld [vmem:[%s7457_s16 + $0x8d8] sm:$0xff] }
 0xae8   :  { %v7019_v43 = vadd.f32 %v2882_v22, %v6816_v27  ;;  %v7022_v44 = vadd.f32 %v2900_v54, %v6832_v21  ;;  %v4289_v27 = vld [vmem:[%s7457_s16 + $0x7b8] sm:$0xff]  ;;  %3345 = vmatpush.bf16.msra.mxu3 %v3340_v28  ;;  %v3336_v54 = vpack.c.bf16 %v4320_v61, %v4318_v5  ;;  %v3341_v23 = vpack.c.bf16 %v4329_v37, %v4327_v9  ;;  %v4303_v28 = vld [vmem:[%s7457_s16 + $0x808] sm:$0xff] }
 0xae9   :  { %v3220_v21 = vpack.c.bf16 %v4289_v27, %v4287_v36  ;;  %v4316_v36 = vld [vmem:[%s7457_s16 + $0x870] sm:$0xff]  ;;  %v3329_v57 = vpack.c.bf16 %v4305_v8, %v4303_v28 }
 0xaea   :  { %v3334_v27 = vpack.c.bf16 %v4316_v36, %v4314_v6 }
 0xaeb   :  { %3229 = vmatpush.bf16.msrb.mxu0 %v3215_v35  ;;  %3245 = vmatpush.bf16.msra.mxu2 %v3220_v21  ;;  %v4323_v35 = vld [vmem:[%s7457_s16 + $0x8a8] sm:$0xff] }
 0xaef   :  { %v2884_v53 = vpop.f32.mrf.mxu0  ;;  %v2902_v3 = vpop.f32.mrf.mxu1  ;;  %3230 = vmatpush.bf16.msrb.mxu0 %v3213_v34  ;;  %3246 = vmatpush.bf16.msra.mxu2 %v3218_v49  ;;  %v4319_v34 = vld [vmem:[%s7457_s16 + $0x888] sm:$0xff] }
 0xaf0   :  { %v4321_v53 = vld [vmem:[%s7457_s16 + $0x898] sm:$0xff] }
 0xaf1   :  { %v3337_v55 = vpack.c.bf16 %v4321_v53, %v4319_v34 }
 0xaf3   :  { %3231 = vmatpush.bf16.msrb.mxu0 %v3211_v47  ;;  %3247 = vmatpush.bf16.msra.mxu2 %v3216_v2  ;;  %v4306_v47 = vld [vmem:[%s7457_s16 + $0x820] sm:$0xff] }
 0xaf4   :  { %v4302_v2 = vld [vmem:[%s7457_s16 + $0x800] sm:$0xff] }
 0xaf5   :  { %v2996_v50 = vpop.f32.mrf.mxu3 }
 0xaf6   :  { %v7076_v51 = vadd.f32 %v2996_v50, %v6947_v59  ;;  %v4311_v50 = vld [vmem:[%s7457_s16 + $0x848] sm:$0xff] }
 0xaf7   :  { %v3014_v12 = vpop.f32.mrf.mxu0  ;;  %v3046_v18 = vpop.f32.mrf.mxu1  ;;  %3232 = vmatpush.bf16.msrb.mxu0 %v3209_v42  ;;  %3248 = vmatpush.bf16.msra.mxu2 %v3214_v62  ;;  %v3328_v42 = vpack.c.bf16 %v4304_v13, %v4302_v2  ;;  %v3333_v39 = vpack.c.bf16 %v4313_v52, %v4311_v50 }
 0xaf8   :  { %v7088_v59 = vadd.f32 %v3014_v12, %v6950_v26  ;;  %v4324_v26 = vld [vmem:[%s7457_s16 + $0x8b0] sm:$0xff]  ;;  %v4307_v12 = vld [vmem:[%s7457_s16 + $0x828] sm:$0xff] }
 0xaf9   :  { %v3338_v4 = vpack.c.bf16 %v4324_v26, %v4322_v60 }
 0xafb   :  { %3249 = vmatpush.bf16.msra.mxu2 %v3212_v30  ;;  %3362 = vmatpush.bf16.msra.mxu0 %v3343_v29 }
 0xafc   :  { %3346 = vmatpush.bf16.msra.mxu3 %v3338_v4 }
 0xafd   :  { %v2998_v16 = vpop.f32.mrf.mxu3 }
 0xafe   :  { %v7118_v17 = vadd.f32 %v2998_v16, %v6989_v10 }
 0xaff   :  { %v3016_v24 = vpop.f32.mrf.mxu0  ;;  %v3049_v22 = vpop.f32.mrf.mxu1  ;;  %3250 = vmatpush.bf16.msra.mxu2 %v3210_v0  ;;  %3363 = vmatpush.bf16.msra.mxu0 %v3341_v23 }
 0xb00   :  { %v7130_v10 = vadd.f32 %v3016_v24, %v6992_v46  ;;  %v3088_v31 = vpack.c.bf16 %v3049_v22, %v3046_v18  ;;  %v4325_v46 = vld [vmem:[%s7457_s16 + $0x8b8] sm:$0xff]  ;;  %3347 = vmatpush.bf16.msra.mxu3 %v3336_v54 }
 0xb01   :  { %v3339_v21 = vpack.c.bf16 %v4325_v46, %v4323_v35  ;;  %v4309_v18 = vld [vmem:[%s7457_s16 + $0x838] sm:$0xff] }
 0xb02   :  { %3114 = vmatmul.bf16.vlgmr.msrb.gmra.mxu2 %v3088_v31  ;;  %3132 = vmatmul.bf16.vlgmr.msrb.gmra.mxu3 %v3088_v31  ;;  %v3331_v62 = vpack.c.bf16 %v4309_v18, %v4307_v12 }
 0xb03   :  { %3364 = vmatpush.bf16.msra.mxu0 %v3339_v21 }
 0xb04   :  { %3348 = vmatpush.bf16.msra.mxu3 %v3334_v27 }
 0xb05   :  { %v3001_v32 = vpop.f32.mrf.mxu3 }
 0xb06   :  { %v7154_v15 = vadd.f32 %v3001_v32, %v7019_v43  ;;  %v4308_v43 = vld [vmem:[%s7457_s16 + $0x830] sm:$0xff]  ;;  %v2324_v32 = vld [vmem:[%s7458_s17] sm:$0x3] }
 0xb07   :  { %v3019_v3 = vpop.f32.mrf.mxu0  ;;  %v3052_v49 = vpop.f32.mrf.mxu1  ;;  %3365 = vmatpush.bf16.msra.mxu0 %v3337_v55  ;;  %v3388_v20 = vperm.slane %v2324_v32, 1 }
 0xb08   :  { %v7160_v63 = vadd.f32 %v3019_v3, %v7022_v44  ;;  %3349 = vmatpush.bf16.msra.mxu3 %v3332_v14  ;;  %v3330_v44 = vpack.c.bf16 %v4308_v43, %v4306_v47  ;;  %v3089_v40 = vpack.c.bf16 %v3052_v49, %v3052_v49  ;;  %v3387_v14 = vperm.slane %v2324_v32, 0 }
 0xb0b   :  { %3366 = vmatpush.bf16.msra.mxu0 %v3335_v41 }
 0xb0c   :  { %3350 = vmatpush.bf16.msra.mxu3 %v3330_v44 }
 0xb0d   :  { %v3003_v19 = vpop.f32.mrf.mxu3 }
 0xb0f   :  { %v3165_v45 = vpop.f32.mrf.mxu1  ;;  %v3021_v48 = vpop.f32.mrf.mxu0  ;;  %3367 = vmatpush.bf16.msra.mxu0 %v3333_v39 }
 0xb10   :  { %3351 = vmatpush.bf16.msra.mxu3 %v3328_v42 }
 0xb12   :  { %3119 = vmatmul.bf16.gmra.mxu2 %v3089_v40  ;;  %3137 = vmatmul.bf16.gmra.mxu3 %v3089_v40 }
 0xb13   :  { %3368 = vmatpush.bf16.msra.mxu0 %v3331_v62 }
 0xb17   :  { %v3168_v60 = vpop.f32.mrf.mxu1  ;;  %3369 = vmatpush.bf16.msra.mxu0 %v3329_v57 }
 0xb18   :  { %v3207_v30 = vpack.c.bf16 %v3168_v60, %v3165_v45 }
 0xb1a   :  { %3233 = vmatmul.bf16.vlgmr.msrb.gmra.mxu0 %v3207_v30 }
 0xb1f   :  { %v3171_v26 = vpop.f32.mrf.mxu1 }
 0xb20   :  { %v3208_v33 = vpack.c.bf16 %v3171_v26, %v3171_v26 }
 0xb22   :  { %3251 = vmatmul.bf16.vlgmr.msra.gmra.mxu2 %v3207_v30 }
 0xb27   :  { %v3284_v58 = vpop.f32.mrf.mxu1 }
 0xb2a   :  { %3238 = vmatmul.bf16.gmra.mxu0 %v3208_v33 }
 0xb2f   :  { %v3287_v4 = vpop.f32.mrf.mxu1 }
 0xb30   :  { %v3326_v29 = vpack.c.bf16 %v3287_v4, %v3284_v58 }
 0xb32   :  { %3256 = vmatmul.bf16.gmra.mxu2 %v3208_v33  ;;  %3352 = vmatmul.bf16.vlgmr.msra.gmra.mxu3 %v3326_v29 }
 0xb37   :  { %v3290_v16 = vpop.f32.mrf.mxu1 }
 0xb38   :  { %v3327_v7 = vpack.c.bf16 %v3290_v16, %v3290_v16 }
 0xb3a   :  { %3370 = vmatmul.bf16.vlgmr.msra.gmra.mxu0 %v3326_v29 }
 0xb42   :  { %3357 = vmatmul.bf16.gmra.mxu3 %v3327_v7 }
 0xb4a   :  { %3375 = vmatmul.bf16.gmra.mxu0 %v3327_v7 }
 0xb85   :  { %v3115_v38 = vpop.f32.mrf.mxu2  ;;  %v3133_v5 = vpop.f32.mrf.mxu3 }
 0xb86   :  { %v3142_v21 = vadd.f32 %v3115_v38, %v7076_v51  ;;  %v3143_v25 = vadd.f32 %v3133_v5, %v7088_v59 }
 0xb8d   :  { %v3117_v0 = vpop.f32.mrf.mxu2  ;;  %v3135_v61 = vpop.f32.mrf.mxu3 }
 0xb8e   :  { %v3144_v53 = vadd.f32 %v3117_v0, %v7118_v17  ;;  %v3145_v55 = vadd.f32 %v3135_v61, %v7130_v10 }
 0xb95   :  { %v3120_v9 = vpop.f32.mrf.mxu2  ;;  %v3138_v37 = vpop.f32.mrf.mxu3 }
 0xb96   :  { %v3146_v52 = vadd.f32 %v3120_v9, %v7154_v15  ;;  %v3147_v39 = vadd.f32 %v3138_v37, %v7160_v63 }
 0xb97   :  { %v3234_v24 = vpop.f32.mrf.mxu0 }
 0xb98   :  { %v3261_v34 = vadd.f32 %v3234_v24, %v3142_v21 }
 0xb9d   :  { %v3122_v22 = vpop.f32.mrf.mxu2  ;;  %v3140_v54 = vpop.f32.mrf.mxu3 }
 0xb9f   :  { %v3236_v23 = vpop.f32.mrf.mxu0 }
 0xba0   :  { %v3263_v47 = vadd.f32 %v3236_v23, %v3144_v53 }
 0xba5   :  { %v3252_v31 = vpop.f32.mrf.mxu2 }
 0xba6   :  { %v3262_v3 = vadd.f32 %v3252_v31, %v3143_v25 }
 0xba7   :  { %v3239_v6 = vpop.f32.mrf.mxu0 }
 0xba8   :  { %v3265_v10 = vadd.f32 %v3239_v6, %v3146_v52 }
 0xbad   :  { %v3254_v36 = vpop.f32.mrf.mxu2 }
 0xbae   :  { %v3264_v44 = vadd.f32 %v3254_v36, %v3145_v55 }
 0xbaf   :  { %v3241_v35 = vpop.f32.mrf.mxu0 }
 0xbb5   :  { %v3257_v46 = vpop.f32.mrf.mxu2  ;;  %v3353_v27 = vpop.f32.mrf.mxu3 }
 0xbb6   :  { %v3380_v49 = vadd.f32 %v3353_v27, %v3261_v34  ;;  %v3266_v62 = vadd.f32 %v3257_v46, %v3147_v39 }
 0xbb7   :  { %v3371_v11 = vpop.f32.mrf.mxu0 }
 0xbb8   :  { %v3381_v43 = vadd.f32 %v3371_v11, %v3262_v3  ;;  %v3391_v41 = vadd.f32 %v3387_v14, %v3380_v49 }
 0xbba   :  { %v3392_v50 = vadd.f32 %v3388_v20, %v3381_v43  ;;  %v3397_v17 = vmax.f32 %v3391_v41, 0.0 }
 0xbbc   :  { %v3398_v48 = vmax.f32 %v3392_v50, 0.0 }
 0xbbd   :  { %v3355_v1 = vpop.f32.mrf.mxu3  ;;  %v3259_v51 = vpop.f32.mrf.mxu2 }
 0xbbe   :  { %v3382_v2 = vadd.f32 %v3355_v1, %v3263_v47 }
 0xbbf   :  { %v3373_v13 = vpop.f32.mrf.mxu0 }
 0xbc0   :  { %v3393_v19 = vadd.f32 %v3387_v14, %v3382_v2  ;;  %v3383_v59 = vadd.f32 %v3373_v13, %v3264_v44 }
 0xbc2   :  { %v3399_v45 = vmax.f32 %v3393_v19, 0.0  ;;  %v3394_v42 = vadd.f32 %v3388_v20, %v3383_v59 }
 0xbc4   :  { %v3405_v40 = vadd.f32 %v3399_v45, %v3397_v17  ;;  %v3400_v12 = vmax.f32 %v3394_v42, 0.0 }
 0xbc5   :  { %v3358_v18 = vpop.f32.mrf.mxu3 }
 0xbc6   :  { %v3414_v28 = vadd.f32 %v3400_v12, %v3398_v48  ;;  %v3384_v8 = vadd.f32 %v3358_v18, %v3265_v10  ;;  %v3571_v18 = vld [vmem:[%s7459_s18 + $0x70] sm:$0xff] }
 0xbc7   :  { %v3376_v57 = vpop.f32.mrf.mxu0 }
 0xbc8   :  { %v3395_v60 = vadd.f32 %v3387_v14, %v3384_v8  ;;  %v3385_v30 = vadd.f32 %v3376_v57, %v3266_v62  ;;  %v3572_v62 = vld [vmem:[%s7459_s18 + $0x78] sm:$0xff] }
 0xbc9   :  { %v3598_v57 = vpack.c.bf16 %v3572_v62, %v3571_v18  ;;  %v3559_v18 = vld [vmem:[%s7459_s18 + $0x10] sm:$0xff] }
 0xbca   :  { %v3401_v26 = vmax.f32 %v3395_v60, 0.0  ;;  %v3396_v58 = vadd.f32 %v3388_v20, %v3385_v30  ;;  %v3587_v60 = vld [vmem:[%s7459_s18 + $0xf0] sm:$0xff]  ;;  %v3588_v30 = vld [vmem:[%s7459_s18 + $0xf8] sm:$0xff] }
 0xbcb   :  { %3611 = vmatpush.bf16.msrb.mxu3 %v3598_v57 }
 0xbcc   :  { %v3406_v15 = vsel %vm441_vm6, %v3401_v26, 0.0  ;;  %v3402_v33 = vmax.f32 %v3396_v58, 0.0  ;;  %v3606_v58 = vpack.c.bf16 %v3588_v30, %v3587_v60 }
 0xbcd   :  { %v3407_v4 = vadd.f32 %v3406_v15, %v3405_v40  ;;  %v3360_v29 = vpop.f32.mrf.mxu3  ;;  %v3585_v15 = vld [vmem:[%s7459_s18 + $0xe0] sm:$0xff] }
 0xbce   :  { %v3415_v63 = vsel %vm441_vm6, %v3402_v33, 0.0  ;;  %v3568_v29 = vld [vmem:[%s7459_s18 + $0x58] sm:$0xff]  ;;  %3624 = vmatpush.bf16.msrb.mxu0 %v3606_v58 }
 0xbcf   :  { %v3408_v16 = vrot.slane %v3407_v4, 4  ;;  %v3416_v7 = vadd.f32 %v3415_v63, %v3414_v28  ;;  %v3378_v38 = vpop.f32.mrf.mxu0  ;;  %v3569_v28 = vld [vmem:[%s7459_s18 + $0x60] sm:$0xff] }
 0xbd0   :  { %v3584_v38 = vld [vmem:[%s7459_s18 + $0xd8] sm:$0xff] }
 0xbd1   :  { %v3409_v5 = vadd.f32 %v3408_v16, %v3407_v4  ;;  %v3417_v0 = vrot.slane %v3416_v7, 4  ;;  %v3567_v4 = vld [vmem:[%s7459_s18 + $0x50] sm:$0xff] }
 0xbd3   :  { %v3410_v61 = vrot.slane %v3409_v5, 2  ;;  %v3418_v9 = vadd.f32 %v3417_v0, %v3416_v7  ;;  %v3583_v7 = vld [vmem:[%s7459_s18 + $0xd0] sm:$0xff]  ;;  %v3596_v0 = vpack.c.bf16 %v3568_v29, %v3567_v4  ;;  %v3557_v4 = vld [vmem:[%s7459_s18] sm:$0xff]  ;;  %v3558_v29 = vld [vmem:[%s7459_s18 + $0x8] sm:$0xff] }
 0xbd5   :  { %v3411_v37 = vadd.f32 %v3410_v61, %v3409_v5  ;;  %v3419_v24 = vrot.slane %v3418_v9, 2  ;;  %v3565_v61 = vld [vmem:[%s7459_s18 + $0x40] sm:$0xff] }
 0xbd7   :  { %v3412_v22 = vrot.slane %v3411_v37, 1  ;;  %v3420_v54 = vadd.f32 %v3419_v24, %v3418_v9  ;;  %v3566_v9 = vld [vmem:[%s7459_s18 + $0x48] sm:$0xff] }
 0xbd9   :  { %v3413_v23 = vadd.f32 %v3412_v22, %v3411_v37  ;;  %v3421_v31 = vrot.slane %v3420_v54, 1  ;;  %v3604_v22 = vpack.c.bf16 %v3584_v38, %v3583_v7  ;;  %v3578_v7 = vld [vmem:[%s7459_s18 + $0xa8] sm:$0xff] }
 0xbdb   :  { %v3423_v6 = vmul.f32 %v3413_v23, %v5176_v56  ;;  %v3422_v36 = vadd.f32 %v3421_v31, %v3420_v54  ;;  %v3581_v23 = vld [vmem:[%s7459_s18 + $0xc0] sm:$0xff]  ;;  %v3582_v31 = vld [vmem:[%s7459_s18 + $0xc8] sm:$0xff] }
 0xbdd   :  { %v7210_v35 = vsub.f32 %v3397_v17, %v3423_v6  ;;  %v7212_v46 = vsub.f32 %v3399_v45, %v3423_v6  ;;  %v7214_v27 = vsub.f32 %v3401_v26, %v3423_v6  ;;  %v3424_v21 = vmul.f32 %v3422_v36, %v5176_v56 }
 0xbde   :  { %v3595_v36 = vpack.c.bf16 %v3566_v9, %v3565_v61  ;;  %v3573_v9 = vld [vmem:[%s7459_s18 + $0x80] sm:$0xff] }
 0xbdf   :  { %v3431_v32 = vmul.f32 %v7210_v35, %v7210_v35  ;;  %v3433_v11 = vmul.f32 %v7212_v46, %v7212_v46  ;;  %v3435_v25 = vmul.f32 %v7214_v27, %v7214_v27  ;;  %v7223_v34 = vsub.f32 %v3398_v48, %v3424_v21 }
 0xbe0   :  { %v7225_v53 = vsub.f32 %v3400_v12, %v3424_v21  ;;  %v7227_v3 = vsub.f32 %v3402_v33, %v3424_v21  ;;  %v3586_v33 = vld [vmem:[%s7459_s18 + $0xe8] sm:$0xff] }
 0xbe1   :  { %v3437_v49 = vadd.f32 %v3433_v11, %v3431_v32  ;;  %v3438_v14 = vsel %vm441_vm6, %v3435_v25, 0.0  ;;  %v3432_v55 = vmul.f32 %v7223_v34, %v7223_v34  ;;  %v3605_v63 = vpack.c.bf16 %v3586_v33, %v3585_v15  ;;  %v3563_v32 = vld [vmem:[%s7459_s18 + $0x30] sm:$0xff]  ;;  %v3564_v11 = vld [vmem:[%s7459_s18 + $0x38] sm:$0xff]  ;;  %v3403_v25 = vld [vmem:[%s7460_s7] sm:$0x3] }
 0xbe2   :  { %v3434_v47 = vmul.f32 %v7225_v53, %v7225_v53  ;;  %v3436_v43 = vmul.f32 %v7227_v3, %v7227_v3 }
 0xbe3   :  { %v3439_v20 = vadd.f32 %v3438_v14, %v3437_v49  ;;  %3625 = vmatpush.bf16.msrb.mxu0 %v3605_v63  ;;  %v3603_v14 = vpack.c.bf16 %v3582_v31, %v3581_v23  ;;  %v3577_v63 = vld [vmem:[%s7459_s18 + $0xa0] sm:$0xff] }
 0xbe4   :  { %v3446_v1 = vadd.f32 %v3434_v47, %v3432_v55  ;;  %v3447_v51 = vsel %vm441_vm6, %v3436_v43, 0.0  ;;  %v3404_v55 = vld [vmem:[%s7461_s8] sm:$0x3]  ;;  %v3579_v43 = vld [vmem:[%s7459_s18 + $0xb0] sm:$0xff]  ;;  %v3601_v38 = vpack.c.bf16 %v3578_v7, %v3577_v63 }
 0xbe5   :  { %v3440_v44 = vrot.slane %v3439_v20, 4  ;;  %v3650_v23 = vld [vmem:[%s7464_s20 + $0x60] sm:$0xff] }
 0xbe6   :  { %v3448_v41 = vadd.f32 %v3447_v51, %v3446_v1  ;;  %v3594_v51 = vpack.c.bf16 %v3564_v11, %v3563_v32  ;;  %v3649_v32 = vld [vmem:[%s7464_s20 + $0x58] sm:$0xff] }
 0xbe7   :  { %v3441_v2 = vadd.f32 %v3440_v44, %v3439_v20  ;;  %3626 = vmatpush.bf16.msrb.mxu0 %v3604_v22  ;;  %v3580_v20 = vld [vmem:[%s7459_s18 + $0xb8] sm:$0xff]  ;;  %v3486_v44 = vperm.slane %v3403_v25, 0  ;;  %v3652_v22 = vld [vmem:[%s7464_s20 + $0x70] sm:$0xff] }
 0xbe8   :  { %v3449_v13 = vrot.slane %v3448_v41, 4 }
 0xbe9   :  { %v3442_v50 = vrot.slane %v3441_v2, 2 }
 0xbea   :  { %v3450_v19 = vadd.f32 %v3449_v13, %v3448_v41  ;;  %v3562_v13 = vld [vmem:[%s7459_s18 + $0x28] sm:$0xff] }
 0xbeb   :  { %v3443_v59 = vadd.f32 %v3442_v50, %v3441_v2  ;;  %v3561_v2 = vld [vmem:[%s7459_s18 + $0x20] sm:$0xff]  ;;  %3627 = vmatpush.bf16.msrb.mxu0 %v3603_v14 }
 0xbec   :  { %v3451_v52 = vrot.slane %v3450_v19, 2 }
 0xbed   :  { %v3444_v17 = vrot.slane %v3443_v59, 1 }
 0xbee   :  { %v3452_v45 = vadd.f32 %v3451_v52, %v3450_v19  ;;  %v3497_v19 = vperm.slane %v3404_v55, 0 }
 0xbef   :  { %v3445_v42 = vadd.f32 %v3444_v17, %v3443_v59  ;;  %v3602_v59 = vpack.c.bf16 %v3580_v20, %v3579_v43  ;;  %v3642_v20 = vld [vmem:[%s7464_s20 + $0x20] sm:$0xff] }
 0xbf0   :  { %v3453_v39 = vrot.slane %v3452_v45, 1 }
 0xbf1   :  { %v3455_v10 = vmul.f32 %v3445_v42, %v5176_v56  ;;  %3628 = vmatpush.bf16.msrb.mxu0 %v3602_v59 }
 0xbf2   :  { %v3454_v48 = vadd.f32 %v3453_v39, %v3452_v45  ;;  %v3487_v39 = vperm.slane %v3403_v25, 1  ;;  %v3646_v25 = vld [vmem:[%s7464_s20 + $0x40] sm:$0xff] }
 0xbf3   :  { %v3457_v40 = vadd.f32 1e-05, %v3455_v10  ;;  %v3593_v10 = vpack.c.bf16 %v3562_v13, %v3561_v2 }
 0xbf4   :  { %v3456_v12 = vmul.f32 %v3454_v48, %v5176_v56  ;;  %v3570_v56 = vld [vmem:[%s7459_s18 + $0x68] sm:$0xff] }
 0xbf5   :  { %4370 = vrsqrt.f32 %v3457_v40  ;;  %v3597_v26 = vpack.c.bf16 %v3570_v56, %v3569_v28  ;;  %vm3465_vm5 = vweird.f32 %v3457_v40  ;;  %3629 = vmatpush.bf16.msrb.mxu0 %v3601_v38 }
 0xbf6   :  { %v7248_v8 = vadd.f32 1e-05, %v3456_v12 }
 0xbf7   :  { %3612 = vmatpush.bf16.msrb.mxu3 %v3597_v26 }
 0xbf8   :  { %4372 = vrsqrt.f32 %v7248_v8  ;;  %vm3475_vm9 = vweird.f32 %v7248_v8 }
 0xbfb   :  { %v4371_v16 = vpop.eup %4370  ;;  %3613 = vmatpush.bf16.msrb.mxu3 %v3596_v0  ;;  %v3576_v0 = vld [vmem:[%s7459_s18 + $0x98] sm:$0xff] }
 0xbfc   :  { %v3460_v5 = vmul.f32 %v4371_v16, %v3457_v40  ;;  %vm3466_vm4 = vweird.f32 %v4371_v16 }
 0xbfd   :  { %vm3467_vm7 = vmor %vm3465_vm5, %vm3466_vm4 }
 0xbfe   :  { %v4373_v37 = vpop.eup %4372  ;;  %v3461_v24 = vmul.f32 %v4371_v16, %v3460_v5  ;;  %v3575_v5 = vld [vmem:[%s7459_s18 + $0x90] sm:$0xff] }
 0xbff   :  { %v3470_v54 = vmul.f32 %v4373_v37, %v7248_v8  ;;  %3614 = vmatpush.bf16.msrb.mxu3 %v3595_v36  ;;  %vm3476_vm8 = vweird.f32 %v4373_v37  ;;  %v3600_v61 = vpack.c.bf16 %v3576_v0, %v3575_v5 }
 0xc00   :  { %v3462_v6 = vmul.f32 0.5, %v3461_v24  ;;  %vm3477_vm10 = vmor %vm3475_vm9, %vm3476_vm8 }
 0xc01   :  { %v3471_v21 = vmul.f32 %v4373_v37, %v3470_v54  ;;  %3630 = vmatpush.bf16.msrb.mxu0 %v3600_v61  ;;  %v3653_v54 = vld [vmem:[%s7464_s20 + $0x78] sm:$0xff] }
 0xc02   :  { %v3463_v49 = vsub.f32 1.5, %v3462_v6  ;;  %v3662_v31 = vpack.c.bf16 %v3653_v54, %v3652_v22  ;;  %v3651_v6 = vld [vmem:[%s7464_s20 + $0x68] sm:$0xff] }
 0xc03   :  { %v3472_v47 = vmul.f32 0.5, %v3471_v21  ;;  %3615 = vmatpush.bf16.msrb.mxu3 %v3594_v51  ;;  %v3661_v36 = vpack.c.bf16 %v3651_v6, %v3650_v23  ;;  %v3648_v21 = vld [vmem:[%s7464_s20 + $0x50] sm:$0xff] }
 0xc04   :  { %v3464_v1 = vmul.f32 %v4371_v16, %v3463_v49  ;;  %v3660_v11 = vpack.c.bf16 %v3649_v32, %v3648_v21  ;;  %v3647_v49 = vld [vmem:[%s7464_s20 + $0x48] sm:$0xff] }
 0xc05   :  { %v3473_v41 = vsub.f32 1.5, %v3472_v47  ;;  %v3659_v14 = vpack.c.bf16 %v3647_v49, %v3646_v25  ;;  %v3645_v47 = vld [vmem:[%s7464_s20 + $0x38] sm:$0xff] }
 0xc06   :  { %v3468_v50 = vsel %vm3467_vm7, %v4371_v16, %v3464_v1  ;;  %v3591_v16 = vpack.c.bf16 %v3558_v29, %v3557_v4  ;;  %v3643_v1 = vld [vmem:[%s7464_s20 + $0x28] sm:$0xff] }
 0xc07   :  { %v3483_v52 = vmul.f32 %v3468_v50, %v7214_v27  ;;  %v3474_v17 = vmul.f32 %v4373_v37, %v3473_v41  ;;  %v3481_v45 = vmul.f32 %v3468_v50, %v7212_v46  ;;  %v3479_v42 = vmul.f32 %v3468_v50, %v7210_v35  ;;  %v3560_v27 = vld [vmem:[%s7459_s18 + $0x18] sm:$0xff]  ;;  %3616 = vmatpush.bf16.msrb.mxu3 %v3593_v10  ;;  %v3640_v50 = vld [vmem:[%s7464_s20 + $0x10] sm:$0xff] }
 0xc08   :  { %v3498_v46 = vperm.slane %v3404_v55, 1  ;;  %v3592_v30 = vpack.c.bf16 %v3560_v27, %v3559_v18  ;;  %v3644_v55 = vld [vmem:[%s7464_s20 + $0x30] sm:$0xff]  ;;  %v3657_v51 = vpack.c.bf16 %v3643_v1, %v3642_v20 }
 0xc09   :  { %v3494_v48 = vmul.f32 %v3486_v44, %v3483_v52  ;;  %v3478_v40 = vsel %vm3477_vm10, %v4373_v37, %v3474_v17  ;;  %v3492_v12 = vmul.f32 %v3486_v44, %v3481_v45  ;;  %v3490_v57 = vmul.f32 %v3486_v44, %v3479_v42  ;;  %v3574_v37 = vld [vmem:[%s7459_s18 + $0x88] sm:$0xff]  ;;  %v3638_v52 = vld [vmem:[%s7464_s20] sm:$0xff]  ;;  %v3688_v42 = vld [vmem:[%s7466_s22 + $0x38] sm:$0xff] }
 0xc0a   :  { %v3484_v62 = vmul.f32 %v3478_v40, %v7227_v3  ;;  %v3482_v35 = vmul.f32 %v3478_v40, %v7225_v53  ;;  %v3480_v28 = vmul.f32 %v3478_v40, %v7223_v34  ;;  %v3507_v53 = vld [vmem:[%s7462_s11] sm:$0x3]  ;;  %v3599_v24 = vpack.c.bf16 %v3574_v37, %v3573_v9  ;;  %v3639_v17 = vld [vmem:[%s7464_s20 + $0x8] sm:$0xff] }
 0xc0b   :  { %v3505_v8 = vadd.f32 %v3497_v19, %v3494_v48  ;;  %v3503_v26 = vadd.f32 %v3497_v19, %v3492_v12  ;;  %v3501_v33 = vadd.f32 %v3497_v19, %v3490_v57  ;;  %3617 = vmatpush.bf16.msrb.mxu3 %v3592_v30  ;;  %v3658_v43 = vpack.c.bf16 %v3645_v47, %v3644_v55  ;;  %v3641_v19 = vld [vmem:[%s7464_s20 + $0x18] sm:$0xff]  ;;  %v3681_v30 = vld [vmem:[%s7466_s22] sm:$0xff] }
 0xc0c   :  { %v3495_v56 = vmul.f32 %v3487_v39, %v3484_v62  ;;  %v3493_v60 = vmul.f32 %v3487_v39, %v3482_v35  ;;  %v3491_v15 = vmul.f32 %v3487_v39, %v3480_v28  ;;  %3631 = vmatpush.bf16.msrb.mxu0 %v3599_v24  ;;  %v3656_v59 = vpack.c.bf16 %v3641_v19, %v3640_v50  ;;  %v4355_v39 = vld [vmem:[%s7463_s19] ss:$0 sm:$0xff]  ;;  %v3687_v35 = vld [vmem:[%s7466_s22 + $0x30] sm:$0xff]  ;;  %v3686_v28 = vld [vmem:[%s7466_s22 + $0x28] sm:$0xff] }
 0xc0d   :  { %4334 = vmatpush.msk.msrb.mxu1 %vm441_vm6, %v3505_v8  ;;  %v3655_v45 = vpack.c.bf16 %v3639_v17, %v3638_v52  ;;  %v3685_v8 = vld [vmem:[%s7466_s22 + $0x20] sm:$0xff]  ;;  %v3684_v57 = vld [vmem:[%s7466_s22 + $0x18] sm:$0xff] }
 0xc0e   :  { %v3506_v58 = vadd.f32 %v3498_v46, %v3495_v56  ;;  %v3504_v34 = vadd.f32 %v3498_v46, %v3493_v60  ;;  %v3502_v3 = vadd.f32 %v3498_v46, %v3491_v15  ;;  %v3683_v56 = vld [vmem:[%s7466_s22 + $0x10] sm:$0xff]  ;;  %v3682_v60 = vld [vmem:[%s7466_s22 + $0x8] sm:$0xff] }
 0xc0f   :  { %3531 = vmatpush.msrb.mxu1 %v3503_v26  ;;  %3618 = vmatpush.bf16.msrb.mxu3 %v3591_v16  ;;  %v29_v26 = vstv %s7467_s23 }
 0xc10   :  { %4336 = vmatpush.msk.msrb.mxu2 %vm441_vm6, %v3506_v58  ;;  %30 = vst [vmem:[#allocation2] sm:$0x1] %v29_v26  ;;  %v4356_v58 = vld [vmem:[%s7465_s21] ss:$0 sm:$0xff]  ;;  %vm3716_vm6 = vcmask 1024  }
 0xc11   :  { %3532 = vmatpush.msrb.mxu1 %v3501_v33 }
 0xc12   :  { %3551 = vmatpush.msrb.mxu2 %v3504_v34  ;;  %4335 = vmatmul.msk.f32.vlgmr.msrb.gmra.mxu1 %vm871_vm12, %v3507_v53 }
 0xc13   :  { %3667 = vmatpush.bf16.msra.mxu1 %v3662_v31 }
 0xc14   :  { %3552 = vmatpush.msrb.mxu2 %v3502_v3 }
 0xc15   :  { %4337 = vmatmul.msk.f32.vlgmr.msrb.gmra.mxu2 %vm871_vm12, %v3507_v53 }
 0xc16   :  { %3704 = vmatpush.msra.mxu2 %v3688_v42 }
 0xc17   :  { %3668 = vmatpush.bf16.msra.mxu1 %v3661_v36  ;;  %v4357_v3 = vld [vmem:[#allocation2] ss:$0 sm:$0xff] }
 0xc18   :  { %3705 = vmatpush.msra.mxu2 %v3687_v35 }
 0xc1a   :  { %3706 = vmatpush.msra.mxu2 %v3686_v28 }
 0xc1b   :  { %3669 = vmatpush.bf16.msra.mxu1 %v3660_v11 }
 0xc1c   :  { %3707 = vmatpush.msra.mxu2 %v3685_v8 }
 0xc1e   :  { %3708 = vmatpush.msra.mxu2 %v3684_v57 }
 0xc1f   :  { %3670 = vmatpush.bf16.msra.mxu1 %v3659_v14 }
 0xc20   :  { %3709 = vmatpush.msra.mxu2 %v3683_v56 }
 0xc22   :  { %3710 = vmatpush.msra.mxu2 %v3682_v60 }
 0xc23   :  { %3671 = vmatpush.bf16.msra.mxu1 %v3658_v43 }
 0xc24   :  { %3711 = vmatpush.msra.mxu2 %v3681_v30 }
 0xc27   :  { %3672 = vmatpush.bf16.msra.mxu1 %v3657_v51 }
 0xc2b   :  { %3673 = vmatpush.bf16.msra.mxu1 %v3656_v59 }
 0xc2f   :  { %3674 = vmatpush.bf16.msra.mxu1 %v3655_v45 }
 0xc8f   :  { %v3534_v44 = vpop.f32.mrf.mxu1 }
 0xc90   :  { %v3589_v41 = vpack.c.bf16 %v3534_v44, %v3534_v44 }
 0xc92   :  { %3619 = vmatmul.bf16.vlgmr.msrb.gmra.mxu3 %v3589_v41 }
 0xc98   :  { %v3554_v2 = vpop.f32.mrf.mxu2 }
 0xc99   :  { %v3590_v13 = vpack.c.bf16 %v3554_v2, %v3554_v2 }
 0xc9b   :  { %3632 = vmatmul.bf16.vlgmr.msrb.gmra.mxu0 %v3590_v13 }
 0xd15   :  { %v3620_v10 = vpop.f32.mrf.mxu3 }
 0xd16   :  { %v3621_v48 = vadd.f32 %v4355_v39, %v3620_v10 }
 0xd18   :  { %v3633_v40 = vpop.f32.mrf.mxu0 }
 0xd19   :  { %v3634_v12 = vadd.f32 %v3633_v40, %v3621_v48 }
 0xd1b   :  { %v3637_v18 = vmax.f32 %v3634_v12, 0.0 }
 0xd1d   :  { %v3654_v27 = vpack.c.bf16 %v3637_v18, %v3637_v18  ;;  %v3622_v62 = vpop.f32.mrf.mxu3 }
 0xd1f   :  { %3675 = vmatmul.bf16.vlgmr.msra.gmra.mxu1 %v3654_v27 }
 0xd20   :  { %v3635_v46 = vpop.f32.mrf.mxu0 }
 0xd9c   :  { %v3676_v15 = vpop.f32.mrf.mxu1 }
 0xd9d   :  { %v3677_v33 = vadd.f32 %v4356_v58, %v3676_v15 }
 0xd9f   :  { %v3680_v53 = vmax.f32 %v3677_v33, 0.0 }
 0xda1   :  { %4338 = vmatmul.msk.f32.vlgmr.msra.gmra.mxu2 %vm273_vm0, %v3680_v53 }
 0xda4   :  { %v3678_v34 = vpop.f32.mrf.mxu1 }
 0xe24   :  { %v3713_v4 = vpop.f32.mrf.mxu2 }
 0xe25   :  { %v3714_v29 = vadd.f32 %v4357_v3, %v3713_v4 }
 0xe27   :  { %3717 = vst.msk [vmem:[%s7468_s24] sm:$0x3] %vm3716_vm6, %v3714_v29 }

</bundles_post_ra>
